<compile_context>
chip_gen: v6e
topology: v6e:2x2x1
jax: 0.10.0
libtpu: 0.0.40
codegen_flags: <defaults>
</compile_context>

<pallas_src>
import functools

import jax
import jax.numpy as jnp
from jax.experimental import pallas as pl
from jax.experimental.pallas import tpu as pltpu

D_MODEL = 768
NHEAD = 4
HEAD_DIM = D_MODEL // NHEAD          # 192
DFF = 512
OUT_DIM = 3
OUT_PAD = 128                        # lane-dense padded width of the final head
LN_EPS = 1e-5


# ----------------------------------------------------------------------------
# Fused kernel: per-head attention over a 4-step grid + fused FFN/LN/head tail
# ----------------------------------------------------------------------------
def _fused_kernel(q_ref, k_ref, v_ref,
                  wqh_ref, wkh_ref, wvh_ref,
                  bqh_ref, bkh_ref, bvh_ref,
                  woh_ref, bo_ref,
                  b1_ref, b2_ref, g_ref, beta_ref, b3_ref,
                  w1_hbm, w2_hbm, w3_hbm,
                  o_ref,
                  acc_ref, w1_vmem, w2_vmem, w3_vmem, dma_sems,
                  *, n_batch):
    h = pl.program_id(0)
    NL = q_ref.shape[0]                          # L * N (seq-major flattened)
    NS = k_ref.shape[0]                          # S * N
    scale = 1.0 / (HEAD_DIM ** 0.5)

    # Prefetch the FFN / head weights on the first step so their ~1.7 MB DMA
    # overlaps the whole 4-head attention phase.
    @pl.when(h == 0)
    def _():
        pltpu.make_async_copy(w1_hbm, w1_vmem, dma_sems.at[0]).start()
        pltpu.make_async_copy(w2_hbm, w2_vmem, dma_sems.at[1]).start()
        pltpu.make_async_copy(w3_hbm, w3_vmem, dma_sems.at[2]).start()

    q_bf = q_ref[...]                            # (NL, E) bf16 (cast in wrapper)
    k_bf = k_ref[...]                            # (NS, E) bf16
    v_bf = v_ref[...]                            # (NS, E) bf16

    # Seq-major flattening: row r <-> (l = r // n_batch, b = r % n_batch).
    # A query row may only attend to key rows of the same batch element.
    row_b = jax.lax.broadcasted_iota(jnp.int32, (NL, NS), 0) % n_batch
    col_b = jax.lax.broadcasted_iota(jnp.int32, (NL, NS), 1) % n_batch
    same_batch = row_b == col_b

    # This grid step's head: projections + masked softmax + per-head out-proj.
    qh = jnp.dot(q_bf, wqh_ref[...], preferred_element_type=jnp.float32) + bqh_ref[...]
    kh = jnp.dot(k_bf, wkh_ref[...], preferred_element_type=jnp.float32) + bkh_ref[...]
    vh = jnp.dot(v_bf, wvh_ref[...], preferred_element_type=jnp.float32) + bvh_ref[...]
    # Scores: contract the head dim directly (no kh.T materialization).
    s = jax.lax.dot_general(qh, kh, (((1,), (1,)), ((), ())),
                            preferred_element_type=jnp.float32) * scale
    s = jnp.where(same_batch, s, -1e30)
    s = s - jnp.max(s, axis=-1, keepdims=True)
    p = jnp.exp(s)
    p = p * pl.reciprocal(jnp.sum(p, axis=-1, keepdims=True), approx=True)
    head_out = jnp.dot(p, vh, preferred_element_type=jnp.float32)         # (NL, Dh)
    partial = jnp.dot(head_out.astype(jnp.bfloat16), woh_ref[...],
                      preferred_element_type=jnp.float32)                 # (NL, E)

    @pl.when(h == 0)
    def _():
        acc_ref[...] = partial                   # init from first partial (no zeros)

    @pl.when(h > 0)
    def _():
        acc_ref[...] += partial

    # Tail (out-proj bias + FFN + LayerNorm + padded head) on the last step only.
    @pl.when(h == NHEAD - 1)
    def _():
        attn = acc_ref[...] + bo_ref[...]

        # dropout1 / dropout / dropout2 == identity (inference)
        pltpu.make_async_copy(w1_hbm, w1_vmem, dma_sems.at[0]).wait()
        h1 = jnp.dot(attn.astype(jnp.bfloat16), w1_vmem[...],
                     preferred_element_type=jnp.float32) + b1_ref[...]
        h1 = jnp.maximum(h1, 0.0)                                         # ReLU

        pltpu.make_async_copy(w2_hbm, w2_vmem, dma_sems.at[1]).wait()
        h2 = jnp.dot(h1.astype(jnp.bfloat16), w2_vmem[...],
                     preferred_element_type=jnp.float32) + b2_ref[...]

        mu = jnp.mean(h2, axis=-1, keepdims=True)
        var = jnp.mean((h2 - mu) ** 2, axis=-1, keepdims=True)
        hn = (h2 - mu) * jax.lax.rsqrt(var + LN_EPS)
        hn = hn * g_ref[...] + beta_ref[...]

        # Lane-dense (padded to 128 cols) head output; wrapper slices to OUT_DIM.
        pltpu.make_async_copy(w3_hbm, w3_vmem, dma_sems.at[2]).wait()
        o_ref[...] = jnp.dot(hn.astype(jnp.bfloat16), w3_vmem[...],
                             preferred_element_type=jnp.float32) + b3_ref[...]


# ----------------------------------------------------------------------------
# Wrappers
# ----------------------------------------------------------------------------
def fused_forward_pallas(q2, k2, v2, p, *, n_batch):
    NL, E = q2.shape
    NS = k2.shape[0]

    args = (q2, k2, v2,
            p["wqh"], p["wkh"], p["wvh"],
            p["bqh"], p["bkh"], p["bvh"],
            p["woh"], p["bo"],
            p["b1"], p["b2"], p["ln_g"], p["ln_b"], p["b3p"],
            p["w1_t"], p["w2_t"], p["w3p"])

    const2d = lambda shape: pl.BlockSpec(shape, lambda h: (0, 0))
    per_head = lambda d1, d2: pl.BlockSpec((None, d1, d2), lambda h: (h, 0, 0))

    in_specs = [
        const2d((NL, E)), const2d((NS, E)), const2d((NS, E)),        # q, k, v
        per_head(E, HEAD_DIM), per_head(E, HEAD_DIM), per_head(E, HEAD_DIM),   # wq/wk/wv
        per_head(1, HEAD_DIM), per_head(1, HEAD_DIM), per_head(1, HEAD_DIM),   # bq/bk/bv
        per_head(HEAD_DIM, E),                                       # out-proj (per head)
        const2d((1, E)),                                             # bo
        const2d((1, DFF)), const2d((1, E)),                          # b1, b2
        const2d((1, E)), const2d((1, E)),                            # ln gamma, beta
        const2d((1, OUT_PAD)),                                       # b3 (padded)
        pl.BlockSpec(memory_space=pl.ANY),                           # w1 (manual DMA)
        pl.BlockSpec(memory_space=pl.ANY),                           # w2 (manual DMA)
        pl.BlockSpec(memory_space=pl.ANY),                           # w3 (manual DMA)
    ]

    flops = (2 * NL * E * E                 # Q projection
             + 2 * NS * E * E * 2           # K, V projections
             + 2 * NL * NS * E * 2          # scores + p @ V (all heads)
             + 2 * NL * E * E               # out projection
             + 2 * NL * E * DFF * 2         # linear1 + linear2
             + 2 * NL * E * OUT_PAD)        # padded head
    bytes_accessed = (sum(int(a.size) * a.dtype.itemsize for a in args)
                      + NL * OUT_PAD * 4)
    cost = pl.CostEstimate(flops=int(flops),
                           transcendentals=int(NL * NS * NHEAD + NL * (NHEAD + 1)),
                           bytes_accessed=int(bytes_accessed))

    return pl.pallas_call(
        functools.partial(_fused_kernel, n_batch=n_batch),
        out_shape=jax.ShapeDtypeStruct((NL, OUT_PAD), jnp.float32),
        grid=(NHEAD,),
        in_specs=in_specs,
        out_specs=pl.BlockSpec((NL, OUT_PAD), lambda h: (0, 0)),
        scratch_shapes=[
            pltpu.VMEM((NL, D_MODEL), jnp.float32),        # attention accumulator
            pltpu.VMEM((D_MODEL, DFF), jnp.bfloat16),      # linear1 weight
            pltpu.VMEM((DFF, D_MODEL), jnp.bfloat16),      # linear2 weight
            pltpu.VMEM((D_MODEL, OUT_PAD), jnp.bfloat16),  # linear3 weight (padded)
            pltpu.SemaphoreType.DMA((3,)),
        ],
        compiler_params=pltpu.CompilerParams(
            dimension_semantics=("arbitrary",),            # head axis carries the acc
            vmem_limit_bytes=32 * 1024 * 1024,             # actual need ~5 MiB
        ),
        cost_estimate=cost,
    )(*args)


@jax.jit
def model_forward(query, key, value, params):
    """query: (L, N, E); key/value: (S, N, E). Returns torch.squeeze((L, N, 3))."""
    L, N, E = query.shape
    S = key.shape[0]
    # Free reshape (seq-major rows, no transpose); cast activations to bf16 in the
    # wrapper so the kernel streams half the activation bytes and skips pack passes.
    q2 = query.reshape(L * N, E).astype(jnp.bfloat16)
    k2 = key.reshape(S * N, E).astype(jnp.bfloat16)
    v2 = value.reshape(S * N, E).astype(jnp.bfloat16)
    out = fused_forward_pallas(q2, k2, v2, params, n_batch=N)   # (L*N, OUT_PAD)
    out = out[:, :OUT_DIM].reshape(L, N, OUT_DIM)
    return jnp.squeeze(out)             # mirrors torch.squeeze semantics


# ----------------------------------------------------------------------------
# Parameters: PyTorch-layout init + conversion to kernel layout
# ----------------------------------------------------------------------------
def init_torch_params(rng):
    ks = jax.random.split(rng, 8)
    s = 0.02
    rnd = lambda k, shape: (s * jax.random.normal(k, shape)).astype(jnp.float32)
    return {
        # nn.MultiheadAttention packed in_proj: rows [0:E]=Q, [E:2E]=K, [2E:3E]=V
        "in_proj_weight": rnd(ks[0], (3 * D_MODEL, D_MODEL)),
        "in_proj_bias": rnd(ks[1], (3 * D_MODEL,)),
        "out_proj_weight": rnd(ks[2], (D_MODEL, D_MODEL)),
        "out_proj_bias": jnp.zeros((D_MODEL,), jnp.float32),
        "linear1_weight": rnd(ks[3], (DFF, D_MODEL)),      # PyTorch (out, in)
        "linear1_bias": rnd(ks[4], (DFF,)),
        "linear2_weight": rnd(ks[5], (D_MODEL, DFF)),
        "linear2_bias": rnd(ks[6], (D_MODEL,)),
        "norm_weight": jnp.ones((D_MODEL,), jnp.float32),
        "norm_bias": jnp.zeros((D_MODEL,), jnp.float32),
        "linear3_weight": rnd(ks[7], (OUT_DIM, D_MODEL)),
        "linear3_bias": jnp.zeros((OUT_DIM,), jnp.float32),
    }


def prepare_params(tp):
    """PyTorch-layout params -> kernel layout (per-head split, bf16 weights)."""
    E, H, Dh = D_MODEL, NHEAD, HEAD_DIM
    wq = tp["in_proj_weight"][:E]
    wk = tp["in_proj_weight"][E:2 * E]
    wv = tp["in_proj_weight"][2 * E:]
    bq = tp["in_proj_bias"][:E]
    bk = tp["in_proj_bias"][E:2 * E]
    bv = tp["in_proj_bias"][2 * E:]

    def head_w(w):   # (E_out, E_in) PyTorch -> (H, E_in, Dh) so head h == x @ w.T cols
        return jnp.transpose(w.T.reshape(E, H, Dh), (1, 0, 2)).astype(jnp.bfloat16)

    def head_b(b):   # (E,) -> (H, 1, Dh)
        return b.reshape(H, 1, Dh).astype(jnp.float32)

    w3p = jnp.zeros((E, OUT_PAD), jnp.float32).at[:, :OUT_DIM].set(
        tp["linear3_weight"].T).astype(jnp.bfloat16)
    b3p = jnp.zeros((1, OUT_PAD), jnp.float32).at[0, :OUT_DIM].set(
        tp["linear3_bias"])

    return {
        "wqh": head_w(wq), "wkh": head_w(wk), "wvh": head_w(wv),
        "bqh": head_b(bq), "bkh": head_b(bk), "bvh": head_b(bv),
        "woh": tp["out_proj_weight"].T.reshape(H, Dh, E).astype(jnp.bfloat16),
        "bo": tp["out_proj_bias"].reshape(1, E),
        "w1_t": tp["linear1_weight"].T.astype(jnp.bfloat16),
        "b1": tp["linear1_bias"].reshape(1, DFF),
        "w2_t": tp["linear2_weight"].T.astype(jnp.bfloat16),
        "b2": tp["linear2_bias"].reshape(1, E),
        "ln_g": tp["norm_weight"].reshape(1, E),
        "ln_b": tp["norm_bias"].reshape(1, E),
        "w3p": w3p, "b3p": b3p,
    }


# ----------------------------------------------------------------------------
# Pure-JAX reference (same bf16-rounded weights) for a sanity check
# ----------------------------------------------------------------------------
def reference_forward(query, key, value, tp):
    f = lambda w: w.astype(jnp.bfloat16).astype(jnp.float32)
    E, H, Dh = D_MODEL, NHEAD, HEAD_DIM
    L, N, _ = query.shape
    S = key.shape[0]
    wq, wk, wv = (tp["in_proj_weight"][:E], tp["in_proj_weight"][E:2 * E],
                  tp["in_proj_weight"][2 * E:])
    bq, bk, bv = (tp["in_proj_bias"][:E], tp["in_proj_bias"][E:2 * E],
                  tp["in_proj_bias"][2 * E:])
    Q = (query @ f(wq).T + bq).reshape(L, N, H, Dh)
    K = (key @ f(wk).T + bk).reshape(S, N, H, Dh)
    V = (value @ f(wv).T + bv).reshape(S, N, H, Dh)
    s = jnp.einsum("lnhd,snhd->nhls", Q, K) / (Dh ** 0.5)
    p = jax.nn.softmax(s, axis=-1)
    o = jnp.einsum("nhls,snhd->lnhd", p, V).reshape(L, N, E)
    attn = o @ f(tp["out_proj_weight"]).T + tp["out_proj_bias"]
    h = jnp.maximum(attn @ f(tp["linear1_weight"]).T + tp["linear1_bias"], 0.0)
    h = h @ f(tp["linear2_weight"]).T + tp["linear2_bias"]
    mu = h.mean(-1, keepdims=True)
    var = ((h - mu) ** 2).mean(-1, keepdims=True)
    h = (h - mu) / jnp.sqrt(var + LN_EPS)
    h = h * tp["norm_weight"] + tp["norm_bias"]
    h = h @ f(tp["linear3_weight"]).T + tp["linear3_bias"]
    return jnp.squeeze(h)


if __name__ == "__main__":
    L, S, N = 8, 8, 2
    rng = jax.random.PRNGKey(0)
    kq, kk, kv, kp = jax.random.split(rng, 4)
    query = jax.random.normal(kq, (L, N, D_MODEL), dtype=jnp.float32)
    key_in = jax.random.normal(kk, (S, N, D_MODEL), dtype=jnp.float32)
    value = jax.random.normal(kv, (S, N, D_MODEL), dtype=jnp.float32)

    torch_params = init_torch_params(kp)
    params = prepare_params(torch_params)

    out = model_forward(query, key_in, value, params)
    jax.block_until_ready(out)
    assert out.shape == (L, N, OUT_DIM), out.shape

    ref = reference_forward(query, key_in, value, torch_params)
    assert jnp.allclose(out, ref, rtol=5e-2, atol=5e-2), \
        float(jnp.max(jnp.abs(out - ref)))

    print("KERNEL_OK")
</pallas_src>

<mosaic_0001>
module attributes {stable_mosaic.version = 11 : i64} {
  func.func @_fused_kernel(%arg0: i32, %arg1: memref<16x768xbf16, #tpu.memory_space<vmem>>, %arg2: memref<16x768xbf16, #tpu.memory_space<vmem>>, %arg3: memref<16x768xbf16, #tpu.memory_space<vmem>>, %arg4: memref<1x768x192xbf16, #tpu.memory_space<vmem>>, %arg5: memref<1x768x192xbf16, #tpu.memory_space<vmem>>, %arg6: memref<1x768x192xbf16, #tpu.memory_space<vmem>>, %arg7: memref<1x1x192xf32, #tpu.memory_space<vmem>>, %arg8: memref<1x1x192xf32, #tpu.memory_space<vmem>>, %arg9: memref<1x1x192xf32, #tpu.memory_space<vmem>>, %arg10: memref<1x192x768xbf16, #tpu.memory_space<vmem>>, %arg11: memref<1x768xf32, #tpu.memory_space<vmem>>, %arg12: memref<1x512xf32, #tpu.memory_space<vmem>>, %arg13: memref<1x768xf32, #tpu.memory_space<vmem>>, %arg14: memref<1x768xf32, #tpu.memory_space<vmem>>, %arg15: memref<1x768xf32, #tpu.memory_space<vmem>>, %arg16: memref<1x128xf32, #tpu.memory_space<vmem>>, %arg17: memref<768x512xbf16, #tpu.memory_space<any>>, %arg18: memref<512x768xbf16, #tpu.memory_space<any>>, %arg19: memref<768x128xbf16, #tpu.memory_space<any>>, %arg20: memref<16x128xf32, #tpu.memory_space<vmem>>, %arg21: memref<16x768xf32, #tpu.memory_space<vmem>>, %arg22: memref<768x512xbf16, #tpu.memory_space<vmem>>, %arg23: memref<512x768xbf16, #tpu.memory_space<vmem>>, %arg24: memref<768x128xbf16, #tpu.memory_space<vmem>>, %arg25: memref<3x!tpu.dma_semaphore, #tpu.memory_space<semaphore_mem>>) attributes {dimension_semantics = [#tpu.dimension_semantics<arbitrary>], iteration_bounds = array<i64: 4>, scalar_prefetch = 0 : i64, scratch_operands = 5 : i64, tpu.core_type = #tpu.core_type<tc>, window_params = [{pipeline_mode = #tpu.pipeline_mode<synchronous>, transform_indices = @transform_0, window_bounds = array<i64: 16, 768>}, {pipeline_mode = #tpu.pipeline_mode<synchronous>, transform_indices = @transform_1, window_bounds = array<i64: 16, 768>}, {pipeline_mode = #tpu.pipeline_mode<synchronous>, transform_indices = @transform_2, window_bounds = array<i64: 16, 768>}, {transform_indices = @transform_3, window_bounds = array<i64: 1, 768, 192>}, {transform_indices = @transform_4, window_bounds = array<i64: 1, 768, 192>}, {transform_indices = @transform_5, window_bounds = array<i64: 1, 768, 192>}, {transform_indices = @transform_6, window_bounds = array<i64: 1, 1, 192>}, {transform_indices = @transform_7, window_bounds = array<i64: 1, 1, 192>}, {transform_indices = @transform_8, window_bounds = array<i64: 1, 1, 192>}, {transform_indices = @transform_9, window_bounds = array<i64: 1, 192, 768>}, {pipeline_mode = #tpu.pipeline_mode<synchronous>, transform_indices = @transform_10, window_bounds = array<i64: 1, 768>}, {pipeline_mode = #tpu.pipeline_mode<synchronous>, transform_indices = @transform_11, window_bounds = array<i64: 1, 512>}, {pipeline_mode = #tpu.pipeline_mode<synchronous>, transform_indices = @transform_12, window_bounds = array<i64: 1, 768>}, {pipeline_mode = #tpu.pipeline_mode<synchronous>, transform_indices = @transform_13, window_bounds = array<i64: 1, 768>}, {pipeline_mode = #tpu.pipeline_mode<synchronous>, transform_indices = @transform_14, window_bounds = array<i64: 1, 768>}, {pipeline_mode = #tpu.pipeline_mode<synchronous>, transform_indices = @transform_15, window_bounds = array<i64: 1, 128>}, {}, {}, {}, {pipeline_mode = #tpu.pipeline_mode<synchronous>, transform_indices = @transform_19, window_bounds = array<i64: 16, 128>}]} {
    %c0_i32 = arith.constant 0 : i32
    %0 = arith.cmpi eq, %arg0, %c0_i32 : i32
    %1 = arith.extui %0 : i1 to i32
    %c0_i32_0 = arith.constant 0 : i32
    %2 = arith.cmpi ne, %1, %c0_i32_0 : i32
    scf.if %2 {
      %c0_i32_51 = arith.constant 0 : i32
      %91 = tpu.memref_slice %arg25[%c0_i32_51] : memref<3x!tpu.dma_semaphore, #tpu.memory_space<semaphore_mem>> -> memref<1x!tpu.dma_semaphore, #tpu.memory_space<semaphore_mem>>
      %92 = tpu.memref_squeeze %91 : memref<1x!tpu.dma_semaphore, #tpu.memory_space<semaphore_mem>> -> memref<!tpu.dma_semaphore, #tpu.memory_space<semaphore_mem>>
      tpu.enqueue_dma source(%arg17 : memref<768x512xbf16, #tpu.memory_space<any>>) target(%arg22 : memref<768x512xbf16, #tpu.memory_space<vmem>>) target_semaphore(%92 : memref<!tpu.dma_semaphore, #tpu.memory_space<semaphore_mem>>)
      %c1_i32_52 = arith.constant 1 : i32
      %93 = tpu.memref_slice %arg25[%c1_i32_52] : memref<3x!tpu.dma_semaphore, #tpu.memory_space<semaphore_mem>> -> memref<1x!tpu.dma_semaphore, #tpu.memory_space<semaphore_mem>>
      %94 = tpu.memref_squeeze %93 : memref<1x!tpu.dma_semaphore, #tpu.memory_space<semaphore_mem>> -> memref<!tpu.dma_semaphore, #tpu.memory_space<semaphore_mem>>
      tpu.enqueue_dma source(%arg18 : memref<512x768xbf16, #tpu.memory_space<any>>) target(%arg23 : memref<512x768xbf16, #tpu.memory_space<vmem>>) target_semaphore(%94 : memref<!tpu.dma_semaphore, #tpu.memory_space<semaphore_mem>>)
      %c2_i32_53 = arith.constant 2 : i32
      %95 = tpu.memref_slice %arg25[%c2_i32_53] : memref<3x!tpu.dma_semaphore, #tpu.memory_space<semaphore_mem>> -> memref<1x!tpu.dma_semaphore, #tpu.memory_space<semaphore_mem>>
      %96 = tpu.memref_squeeze %95 : memref<1x!tpu.dma_semaphore, #tpu.memory_space<semaphore_mem>> -> memref<!tpu.dma_semaphore, #tpu.memory_space<semaphore_mem>>
      tpu.enqueue_dma source(%arg19 : memref<768x128xbf16, #tpu.memory_space<any>>) target(%arg24 : memref<768x128xbf16, #tpu.memory_space<vmem>>) target_semaphore(%96 : memref<!tpu.dma_semaphore, #tpu.memory_space<semaphore_mem>>)
    } else {
    }
    %c0 = arith.constant 0 : index
    %c0_1 = arith.constant 0 : index
    %3 = vector.load %arg1[%c0, %c0_1] : memref<16x768xbf16, #tpu.memory_space<vmem>>, vector<16x768xbf16>
    %c0_2 = arith.constant 0 : index
    %c0_3 = arith.constant 0 : index
    %4 = vector.load %arg2[%c0_2, %c0_3] : memref<16x768xbf16, #tpu.memory_space<vmem>>, vector<16x768xbf16>
    %c0_4 = arith.constant 0 : index
    %c0_5 = arith.constant 0 : index
    %5 = vector.load %arg3[%c0_4, %c0_5] : memref<16x768xbf16, #tpu.memory_space<vmem>>, vector<16x768xbf16>
    %6 = tpu.iota {dimensions = array<i32: 0>} : vector<16x16xi32>
    %c2_i32 = arith.constant 2 : i32
    %c0_i32_6 = arith.constant 0 : i32
    %7 = arith.cmpi eq, %c2_i32, %c0_i32_6 : i32
    %c1_i32 = arith.constant 1 : i32
    %8 = arith.select %7, %c1_i32, %c2_i32 : i32
    %9 = vector.broadcast %8 : i32 to vector<16x16xi32>
    %10 = arith.remsi %6, %9 : vector<16x16xi32>
    %c0_i32_7 = arith.constant 0 : i32
    %11 = vector.broadcast %c0_i32_7 : i32 to vector<16x16xi32>
    %12 = arith.cmpi ne, %10, %11 : vector<16x16xi32>
    %c0_i32_8 = arith.constant 0 : i32
    %13 = vector.broadcast %c0_i32_8 : i32 to vector<16x16xi32>
    %14 = arith.cmpi slt, %10, %13 : vector<16x16xi32>
    %c0_i32_9 = arith.constant 0 : i32
    %15 = arith.cmpi slt, %8, %c0_i32_9 : i32
    %16 = vector.broadcast %15 : i1 to vector<16x16xi1>
    %17 = vector.broadcast %16 : vector<16x16xi1> to vector<16x16xi1>
    %18 = arith.xori %14, %17 : vector<16x16xi1>
    %19 = arith.andi %18, %12 : vector<16x16xi1>
    %20 = vector.broadcast %8 : i32 to vector<16x16xi32>
    %21 = arith.addi %10, %20 : vector<16x16xi32>
    %22 = arith.select %19, %21, %10 : vector<16x16xi1>, vector<16x16xi32>
    %23 = tpu.iota {dimensions = array<i32: 1>} : vector<16x16xi32>
    %c2_i32_10 = arith.constant 2 : i32
    %c0_i32_11 = arith.constant 0 : i32
    %24 = arith.cmpi eq, %c2_i32_10, %c0_i32_11 : i32
    %c1_i32_12 = arith.constant 1 : i32
    %25 = arith.select %24, %c1_i32_12, %c2_i32_10 : i32
    %26 = vector.broadcast %25 : i32 to vector<16x16xi32>
    %27 = arith.remsi %23, %26 : vector<16x16xi32>
    %c0_i32_13 = arith.constant 0 : i32
    %28 = vector.broadcast %c0_i32_13 : i32 to vector<16x16xi32>
    %29 = arith.cmpi ne, %27, %28 : vector<16x16xi32>
    %c0_i32_14 = arith.constant 0 : i32
    %30 = vector.broadcast %c0_i32_14 : i32 to vector<16x16xi32>
    %31 = arith.cmpi slt, %27, %30 : vector<16x16xi32>
    %c0_i32_15 = arith.constant 0 : i32
    %32 = arith.cmpi slt, %25, %c0_i32_15 : i32
    %33 = vector.broadcast %32 : i1 to vector<16x16xi1>
    %34 = vector.broadcast %33 : vector<16x16xi1> to vector<16x16xi1>
    %35 = arith.xori %31, %34 : vector<16x16xi1>
    %36 = arith.andi %35, %29 : vector<16x16xi1>
    %37 = vector.broadcast %25 : i32 to vector<16x16xi32>
    %38 = arith.addi %27, %37 : vector<16x16xi32>
    %39 = arith.select %36, %38, %27 : vector<16x16xi1>, vector<16x16xi32>
    %40 = arith.cmpi eq, %22, %39 : vector<16x16xi32>
    %c0_16 = arith.constant 0 : index
    %c0_17 = arith.constant 0 : index
    %c0_18 = arith.constant 0 : index
    %41 = vector.load %arg4[%c0_16, %c0_17, %c0_18] : memref<1x768x192xbf16, #tpu.memory_space<vmem>>, vector<1x768x192xbf16>
    %42 = vector.shape_cast %41 : vector<1x768x192xbf16> to vector<768x192xbf16>
    %cst = arith.constant dense<0.000000e+00> : vector<16x192xf32>
    %43 = tpu.matmul %3, %42, %cst {dimension_numbers = #tpu.dot_dimension_numbers<[1], [0], [0], [1], [0, 0, 1, 1], [], []>} : vector<16x768xbf16>, vector<768x192xbf16>, vector<16x192xf32> -> vector<16x192xf32>
    %c0_19 = arith.constant 0 : index
    %c0_20 = arith.constant 0 : index
    %c0_21 = arith.constant 0 : index
    %44 = vector.load %arg7[%c0_19, %c0_20, %c0_21] : memref<1x1x192xf32, #tpu.memory_space<vmem>>, vector<1x1x192xf32>
    %45 = vector.shape_cast %44 : vector<1x1x192xf32> to vector<1x192xf32>
    %46 = vector.broadcast %45 : vector<1x192xf32> to vector<16x192xf32>
    %47 = arith.addf %43, %46 : vector<16x192xf32>
    %c0_22 = arith.constant 0 : index
    %c0_23 = arith.constant 0 : index
    %c0_24 = arith.constant 0 : index
    %48 = vector.load %arg5[%c0_22, %c0_23, %c0_24] : memref<1x768x192xbf16, #tpu.memory_space<vmem>>, vector<1x768x192xbf16>
    %49 = vector.shape_cast %48 : vector<1x768x192xbf16> to vector<768x192xbf16>
    %cst_25 = arith.constant dense<0.000000e+00> : vector<16x192xf32>
    %50 = tpu.matmul %4, %49, %cst_25 {dimension_numbers = #tpu.dot_dimension_numbers<[1], [0], [0], [1], [0, 0, 1, 1], [], []>} : vector<16x768xbf16>, vector<768x192xbf16>, vector<16x192xf32> -> vector<16x192xf32>
    %c0_26 = arith.constant 0 : index
    %c0_27 = arith.constant 0 : index
    %c0_28 = arith.constant 0 : index
    %51 = vector.load %arg8[%c0_26, %c0_27, %c0_28] : memref<1x1x192xf32, #tpu.memory_space<vmem>>, vector<1x1x192xf32>
    %52 = vector.shape_cast %51 : vector<1x1x192xf32> to vector<1x192xf32>
    %53 = vector.broadcast %52 : vector<1x192xf32> to vector<16x192xf32>
    %54 = arith.addf %50, %53 : vector<16x192xf32>
    %c0_29 = arith.constant 0 : index
    %c0_30 = arith.constant 0 : index
    %c0_31 = arith.constant 0 : index
    %55 = vector.load %arg6[%c0_29, %c0_30, %c0_31] : memref<1x768x192xbf16, #tpu.memory_space<vmem>>, vector<1x768x192xbf16>
    %56 = vector.shape_cast %55 : vector<1x768x192xbf16> to vector<768x192xbf16>
    %cst_32 = arith.constant dense<0.000000e+00> : vector<16x192xf32>
    %57 = tpu.matmul %5, %56, %cst_32 {dimension_numbers = #tpu.dot_dimension_numbers<[1], [0], [0], [1], [0, 0, 1, 1], [], []>} : vector<16x768xbf16>, vector<768x192xbf16>, vector<16x192xf32> -> vector<16x192xf32>
    %c0_33 = arith.constant 0 : index
    %c0_34 = arith.constant 0 : index
    %c0_35 = arith.constant 0 : index
    %58 = vector.load %arg9[%c0_33, %c0_34, %c0_35] : memref<1x1x192xf32, #tpu.memory_space<vmem>>, vector<1x1x192xf32>
    %59 = vector.shape_cast %58 : vector<1x1x192xf32> to vector<1x192xf32>
    %60 = vector.broadcast %59 : vector<1x192xf32> to vector<16x192xf32>
    %61 = arith.addf %57, %60 : vector<16x192xf32>
    %cst_36 = arith.constant dense<0.000000e+00> : vector<16x16xf32>
    %62 = tpu.matmul %47, %54, %cst_36 {dimension_numbers = #tpu.dot_dimension_numbers<[1], [1], [0], [0], [0, 0, 1, 0], [], []>} : vector<16x192xf32>, vector<16x192xf32>, vector<16x16xf32> -> vector<16x16xf32>
    %cst_37 = arith.constant 0.0721687824 : f32
    %63 = vector.broadcast %cst_37 : f32 to vector<16x16xf32>
    %64 = arith.mulf %62, %63 : vector<16x16xf32>
    %cst_38 = arith.constant -1.000000e+30 : f32
    %65 = vector.broadcast %cst_38 : f32 to vector<16x16xf32>
    %66 = arith.select %40, %64, %65 : vector<16x16xi1>, vector<16x16xf32>
    %cst_39 = arith.constant dense<0xFF800000> : vector<16xf32>
    %67 = vector.multi_reduction <maximumf>, %66, %cst_39 [1] : vector<16x16xf32> to vector<16xf32>
    %68 = vector.shape_cast %67 : vector<16xf32> to vector<16x1xf32>
    %69 = vector.broadcast %68 : vector<16x1xf32> to vector<16x16xf32>
    %70 = arith.subf %66, %69 : vector<16x16xf32>
    %71 = math.exp %70 : vector<16x16xf32>
    %cst_40 = arith.constant dense<0.000000e+00> : vector<16xf32>
    %72 = vector.multi_reduction <add>, %71, %cst_40 [1] : vector<16x16xf32> to vector<16xf32>
    %73 = vector.shape_cast %72 : vector<16xf32> to vector<16x1xf32>
    %74 = tpu.reciprocal %73 {approx = true} : vector<16x1xf32> -> vector<16x1xf32>
    %75 = vector.broadcast %74 : vector<16x1xf32> to vector<16x16xf32>
    %76 = arith.mulf %71, %75 : vector<16x16xf32>
    %cst_41 = arith.constant dense<0.000000e+00> : vector<16x192xf32>
    %77 = tpu.matmul %76, %61, %cst_41 {dimension_numbers = #tpu.dot_dimension_numbers<[1], [0], [0], [1], [0, 0, 1, 1], [], []>} : vector<16x16xf32>, vector<16x192xf32>, vector<16x192xf32> -> vector<16x192xf32>
    %78 = arith.truncf %77 : vector<16x192xf32> to vector<16x192xbf16>
    %c0_42 = arith.constant 0 : index
    %c0_43 = arith.constant 0 : index
    %c0_44 = arith.constant 0 : index
    %79 = vector.load %arg10[%c0_42, %c0_43, %c0_44] : memref<1x192x768xbf16, #tpu.memory_space<vmem>>, vector<1x192x768xbf16>
    %80 = vector.shape_cast %79 : vector<1x192x768xbf16> to vector<192x768xbf16>
    %cst_45 = arith.constant dense<0.000000e+00> : vector<16x768xf32>
    %81 = tpu.matmul %78, %80, %cst_45 {dimension_numbers = #tpu.dot_dimension_numbers<[1], [0], [0], [1], [0, 0, 1, 1], [], []>} : vector<16x192xbf16>, vector<192x768xbf16>, vector<16x768xf32> -> vector<16x768xf32>
    %c0_i32_46 = arith.constant 0 : i32
    %82 = arith.cmpi eq, %arg0, %c0_i32_46 : i32
    %83 = arith.extui %82 : i1 to i32
    %c0_i32_47 = arith.constant 0 : i32
    %84 = arith.cmpi ne, %83, %c0_i32_47 : i32
    scf.if %84 {
      %c0_51 = arith.constant 0 : index
      %c0_52 = arith.constant 0 : index
      %91 = vector.load %arg21[%c0_51, %c0_52] : memref<16x768xf32, #tpu.memory_space<vmem>>, vector<16x768xf32>
      tpu.vector_store %arg21[%c0_51, %c0_52], %81 {strides = array<i32>} : memref<16x768xf32, #tpu.memory_space<vmem>>, vector<16x768xf32>,
    } else {
    }
    %c0_i32_48 = arith.constant 0 : i32
    %85 = arith.cmpi sgt, %arg0, %c0_i32_48 : i32
    %86 = arith.extui %85 : i1 to i32
    %c0_i32_49 = arith.constant 0 : i32
    %87 = arith.cmpi ne, %86, %c0_i32_49 : i32
    scf.if %87 {
      %c0_51 = arith.constant 0 : index
      %c0_52 = arith.constant 0 : index
      %91 = vector.load %arg21[%c0_51, %c0_52] : memref<16x768xf32, #tpu.memory_space<vmem>>, vector<16x768xf32>
      %92 = arith.addf %91, %81 : vector<16x768xf32>
      %c0_53 = arith.constant 0 : index
      %c0_54 = arith.constant 0 : index
      %93 = vector.load %arg21[%c0_53, %c0_54] : memref<16x768xf32, #tpu.memory_space<vmem>>, vector<16x768xf32>
      tpu.vector_store %arg21[%c0_53, %c0_54], %92 {strides = array<i32>} : memref<16x768xf32, #tpu.memory_space<vmem>>, vector<16x768xf32>,
    } else {
    }
    %c3_i32 = arith.constant 3 : i32
    %88 = arith.cmpi eq, %arg0, %c3_i32 : i32
    %89 = arith.extui %88 : i1 to i32
    %c0_i32_50 = arith.constant 0 : i32
    %90 = arith.cmpi ne, %89, %c0_i32_50 : i32
    scf.if %90 {
      %c0_51 = arith.constant 0 : index
      %c0_52 = arith.constant 0 : index
      %91 = vector.load %arg21[%c0_51, %c0_52] : memref<16x768xf32, #tpu.memory_space<vmem>>, vector<16x768xf32>
      %c0_53 = arith.constant 0 : index
      %c0_54 = arith.constant 0 : index
      %92 = vector.load %arg11[%c0_53, %c0_54] : memref<1x768xf32, #tpu.memory_space<vmem>>, vector<1x768xf32>
      %93 = vector.broadcast %92 : vector<1x768xf32> to vector<16x768xf32>
      %94 = arith.addf %91, %93 : vector<16x768xf32>
      %c0_i32_55 = arith.constant 0 : i32
      %95 = tpu.memref_slice %arg25[%c0_i32_55] : memref<3x!tpu.dma_semaphore, #tpu.memory_space<semaphore_mem>> -> memref<1x!tpu.dma_semaphore, #tpu.memory_space<semaphore_mem>>
      %96 = tpu.memref_squeeze %95 : memref<1x!tpu.dma_semaphore, #tpu.memory_space<semaphore_mem>> -> memref<!tpu.dma_semaphore, #tpu.memory_space<semaphore_mem>>
      tpu.wait_dma2 semaphore(%96 : memref<!tpu.dma_semaphore, #tpu.memory_space<semaphore_mem>>) src(%arg17 : memref<768x512xbf16, #tpu.memory_space<any>>) dst(%arg22 : memref<768x512xbf16, #tpu.memory_space<vmem>>)
      %97 = arith.truncf %94 : vector<16x768xf32> to vector<16x768xbf16>
      %c0_56 = arith.constant 0 : index
      %c0_57 = arith.constant 0 : index
      %98 = vector.load %arg22[%c0_56, %c0_57] : memref<768x512xbf16, #tpu.memory_space<vmem>>, vector<768x512xbf16>
      %cst_58 = arith.constant dense<0.000000e+00> : vector<16x512xf32>
      %99 = tpu.matmul %97, %98, %cst_58 {dimension_numbers = #tpu.dot_dimension_numbers<[1], [0], [0], [1], [0, 0, 1, 1], [], []>} : vector<16x768xbf16>, vector<768x512xbf16>, vector<16x512xf32> -> vector<16x512xf32>
      %c0_59 = arith.constant 0 : index
      %c0_60 = arith.constant 0 : index
      %100 = vector.load %arg12[%c0_59, %c0_60] : memref<1x512xf32, #tpu.memory_space<vmem>>, vector<1x512xf32>
      %101 = vector.broadcast %100 : vector<1x512xf32> to vector<16x512xf32>
      %102 = arith.addf %99, %101 : vector<16x512xf32>
      %cst_61 = arith.constant 0.000000e+00 : f32
      %103 = vector.broadcast %cst_61 : f32 to vector<16x512xf32>
      %104 = arith.maximumf %102, %103 : vector<16x512xf32>
      %c1_i32_62 = arith.constant 1 : i32
      %105 = tpu.memref_slice %arg25[%c1_i32_62] : memref<3x!tpu.dma_semaphore, #tpu.memory_space<semaphore_mem>> -> memref<1x!tpu.dma_semaphore, #tpu.memory_space<semaphore_mem>>
      %106 = tpu.memref_squeeze %105 : memref<1x!tpu.dma_semaphore, #tpu.memory_space<semaphore_mem>> -> memref<!tpu.dma_semaphore, #tpu.memory_space<semaphore_mem>>
      tpu.wait_dma2 semaphore(%106 : memref<!tpu.dma_semaphore, #tpu.memory_space<semaphore_mem>>) src(%arg18 : memref<512x768xbf16, #tpu.memory_space<any>>) dst(%arg23 : memref<512x768xbf16, #tpu.memory_space<vmem>>)
      %107 = arith.truncf %104 : vector<16x512xf32> to vector<16x512xbf16>
      %c0_63 = arith.constant 0 : index
      %c0_64 = arith.constant 0 : index
      %108 = vector.load %arg23[%c0_63, %c0_64] : memref<512x768xbf16, #tpu.memory_space<vmem>>, vector<512x768xbf16>
      %cst_65 = arith.constant dense<0.000000e+00> : vector<16x768xf32>
      %109 = tpu.matmul %107, %108, %cst_65 {dimension_numbers = #tpu.dot_dimension_numbers<[1], [0], [0], [1], [0, 0, 1, 1], [], []>} : vector<16x512xbf16>, vector<512x768xbf16>, vector<16x768xf32> -> vector<16x768xf32>
      %c0_66 = arith.constant 0 : index
      %c0_67 = arith.constant 0 : index
      %110 = vector.load %arg13[%c0_66, %c0_67] : memref<1x768xf32, #tpu.memory_space<vmem>>, vector<1x768xf32>
      %111 = vector.broadcast %110 : vector<1x768xf32> to vector<16x768xf32>
      %112 = arith.addf %109, %111 : vector<16x768xf32>
      %cst_68 = arith.constant dense<0.000000e+00> : vector<16xf32>
      %113 = vector.multi_reduction <add>, %112, %cst_68 [1] : vector<16x768xf32> to vector<16xf32>
      %114 = vector.shape_cast %113 : vector<16xf32> to vector<16x1xf32>
      %cst_69 = arith.constant 7.680000e+02 : f32
      %115 = vector.broadcast %cst_69 : f32 to vector<16x1xf32>
      %116 = arith.divf %114, %115 : vector<16x1xf32>
      %117 = vector.broadcast %116 : vector<16x1xf32> to vector<16x768xf32>
      %118 = arith.subf %112, %117 : vector<16x768xf32>
      %119 = arith.mulf %118, %118 : vector<16x768xf32>
      %cst_70 = arith.constant dense<0.000000e+00> : vector<16xf32>
      %120 = vector.multi_reduction <add>, %119, %cst_70 [1] : vector<16x768xf32> to vector<16xf32>
      %121 = vector.shape_cast %120 : vector<16xf32> to vector<16x1xf32>
      %cst_71 = arith.constant 7.680000e+02 : f32
      %122 = vector.broadcast %cst_71 : f32 to vector<16x1xf32>
      %123 = arith.divf %121, %122 : vector<16x1xf32>
      %124 = vector.broadcast %116 : vector<16x1xf32> to vector<16x768xf32>
      %125 = arith.subf %112, %124 : vector<16x768xf32>
      %cst_72 = arith.constant 9.99999974E-6 : f32
      %126 = vector.broadcast %cst_72 : f32 to vector<16x1xf32>
      %127 = arith.addf %123, %126 : vector<16x1xf32>
      %128 = math.rsqrt %127 : vector<16x1xf32>
      %129 = vector.broadcast %128 : vector<16x1xf32> to vector<16x768xf32>
      %130 = arith.mulf %125, %129 : vector<16x768xf32>
      %c0_73 = arith.constant 0 : index
      %c0_74 = arith.constant 0 : index
      %131 = vector.load %arg14[%c0_73, %c0_74] : memref<1x768xf32, #tpu.memory_space<vmem>>, vector<1x768xf32>
      %132 = vector.broadcast %131 : vector<1x768xf32> to vector<16x768xf32>
      %133 = arith.mulf %130, %132 : vector<16x768xf32>
      %c0_75 = arith.constant 0 : index
      %c0_76 = arith.constant 0 : index
      %134 = vector.load %arg15[%c0_75, %c0_76] : memref<1x768xf32, #tpu.memory_space<vmem>>, vector<1x768xf32>
      %135 = vector.broadcast %134 : vector<1x768xf32> to vector<16x768xf32>
      %136 = arith.addf %133, %135 : vector<16x768xf32>
      %c2_i32_77 = arith.constant 2 : i32
      %137 = tpu.memref_slice %arg25[%c2_i32_77] : memref<3x!tpu.dma_semaphore, #tpu.memory_space<semaphore_mem>> -> memref<1x!tpu.dma_semaphore, #tpu.memory_space<semaphore_mem>>
      %138 = tpu.memref_squeeze %137 : memref<1x!tpu.dma_semaphore, #tpu.memory_space<semaphore_mem>> -> memref<!tpu.dma_semaphore, #tpu.memory_space<semaphore_mem>>
      tpu.wait_dma2 semaphore(%138 : memref<!tpu.dma_semaphore, #tpu.memory_space<semaphore_mem>>) src(%arg19 : memref<768x128xbf16, #tpu.memory_space<any>>) dst(%arg24 : memref<768x128xbf16, #tpu.memory_space<vmem>>)
      %139 = arith.truncf %136 : vector<16x768xf32> to vector<16x768xbf16>
      %c0_78 = arith.constant 0 : index
      %c0_79 = arith.constant 0 : index
      %140 = vector.load %arg24[%c0_78, %c0_79] : memref<768x128xbf16, #tpu.memory_space<vmem>>, vector<768x128xbf16>
      %cst_80 = arith.constant dense<0.000000e+00> : vector<16x128xf32>
      %141 = tpu.matmul %139, %140, %cst_80 {dimension_numbers = #tpu.dot_dimension_numbers<[1], [0], [0], [1], [0, 0, 1, 1], [], []>} : vector<16x768xbf16>, vector<768x128xbf16>, vector<16x128xf32> -> vector<16x128xf32>
      %c0_81 = arith.constant 0 : index
      %c0_82 = arith.constant 0 : index
      %142 = vector.load %arg16[%c0_81, %c0_82] : memref<1x128xf32, #tpu.memory_space<vmem>>, vector<1x128xf32>
      %143 = vector.broadcast %142 : vector<1x128xf32> to vector<16x128xf32>
      %144 = arith.addf %141, %143 : vector<16x128xf32>
      %c0_83 = arith.constant 0 : index
      %c0_84 = arith.constant 0 : index
      %145 = vector.load %arg20[%c0_83, %c0_84] : memref<16x128xf32, #tpu.memory_space<vmem>>, vector<16x128xf32>
      tpu.vector_store %arg20[%c0_83, %c0_84], %144 {strides = array<i32>} : memref<16x128xf32, #tpu.memory_space<vmem>>, vector<16x128xf32>,
    } else {
    }
    return
  }
  func.func @transform_0(%arg0: i32) -> (i32, i32) {
    %c0_i32 = arith.constant 0 : i32
    %c0_i32_0 = arith.constant 0 : i32
    %c0_i32_1 = arith.constant 0 : i32
    return %c0_i32, %c0_i32_0 : i32, i32
  }
  func.func @transform_1(%arg0: i32) -> (i32, i32) {
    %c0_i32 = arith.constant 0 : i32
    %c0_i32_0 = arith.constant 0 : i32
    %c0_i32_1 = arith.constant 0 : i32
    return %c0_i32, %c0_i32_0 : i32, i32
  }
  func.func @transform_2(%arg0: i32) -> (i32, i32) {
    %c0_i32 = arith.constant 0 : i32
    %c0_i32_0 = arith.constant 0 : i32
    %c0_i32_1 = arith.constant 0 : i32
    return %c0_i32, %c0_i32_0 : i32, i32
  }
  func.func @transform_3(%arg0: i32) -> (i32, i32, i32) {
    %c0_i32 = arith.constant 0 : i32
    %c0_i32_0 = arith.constant 0 : i32
    %c0_i32_1 = arith.constant 0 : i32
    return %arg0, %c0_i32, %c0_i32_0 : i32, i32, i32
  }
  func.func @transform_4(%arg0: i32) -> (i32, i32, i32) {
    %c0_i32 = arith.constant 0 : i32
    %c0_i32_0 = arith.constant 0 : i32
    %c0_i32_1 = arith.constant 0 : i32
    return %arg0, %c0_i32, %c0_i32_0 : i32, i32, i32
  }
  func.func @transform_5(%arg0: i32) -> (i32, i32, i32) {
    %c0_i32 = arith.constant 0 : i32
    %c0_i32_0 = arith.constant 0 : i32
    %c0_i32_1 = arith.constant 0 : i32
    return %arg0, %c0_i32, %c0_i32_0 : i32, i32, i32
  }
  func.func @transform_6(%arg0: i32) -> (i32, i32, i32) {
    %c0_i32 = arith.constant 0 : i32
    %c0_i32_0 = arith.constant 0 : i32
    %c0_i32_1 = arith.constant 0 : i32
    return %arg0, %c0_i32, %c0_i32_0 : i32, i32, i32
  }
  func.func @transform_7(%arg0: i32) -> (i32, i32, i32) {
    %c0_i32 = arith.constant 0 : i32
    %c0_i32_0 = arith.constant 0 : i32
    %c0_i32_1 = arith.constant 0 : i32
    return %arg0, %c0_i32, %c0_i32_0 : i32, i32, i32
  }
  func.func @transform_8(%arg0: i32) -> (i32, i32, i32) {
    %c0_i32 = arith.constant 0 : i32
    %c0_i32_0 = arith.constant 0 : i32
    %c0_i32_1 = arith.constant 0 : i32
    return %arg0, %c0_i32, %c0_i32_0 : i32, i32, i32
  }
  func.func @transform_9(%arg0: i32) -> (i32, i32, i32) {
    %c0_i32 = arith.constant 0 : i32
    %c0_i32_0 = arith.constant 0 : i32
    %c0_i32_1 = arith.constant 0 : i32
    return %arg0, %c0_i32, %c0_i32_0 : i32, i32, i32
  }
  func.func @transform_10(%arg0: i32) -> (i32, i32) {
    %c0_i32 = arith.constant 0 : i32
    %c0_i32_0 = arith.constant 0 : i32
    %c0_i32_1 = arith.constant 0 : i32
    return %c0_i32, %c0_i32_0 : i32, i32
  }
  func.func @transform_11(%arg0: i32) -> (i32, i32) {
    %c0_i32 = arith.constant 0 : i32
    %c0_i32_0 = arith.constant 0 : i32
    %c0_i32_1 = arith.constant 0 : i32
    return %c0_i32, %c0_i32_0 : i32, i32
  }
  func.func @transform_12(%arg0: i32) -> (i32, i32) {
    %c0_i32 = arith.constant 0 : i32
    %c0_i32_0 = arith.constant 0 : i32
    %c0_i32_1 = arith.constant 0 : i32
    return %c0_i32, %c0_i32_0 : i32, i32
  }
  func.func @transform_13(%arg0: i32) -> (i32, i32) {
    %c0_i32 = arith.constant 0 : i32
    %c0_i32_0 = arith.constant 0 : i32
    %c0_i32_1 = arith.constant 0 : i32
    return %c0_i32, %c0_i32_0 : i32, i32
  }
  func.func @transform_14(%arg0: i32) -> (i32, i32) {
    %c0_i32 = arith.constant 0 : i32
    %c0_i32_0 = arith.constant 0 : i32
    %c0_i32_1 = arith.constant 0 : i32
    return %c0_i32, %c0_i32_0 : i32, i32
  }
  func.func @transform_15(%arg0: i32) -> (i32, i32) {
    %c0_i32 = arith.constant 0 : i32
    %c0_i32_0 = arith.constant 0 : i32
    %c0_i32_1 = arith.constant 0 : i32
    return %c0_i32, %c0_i32_0 : i32, i32
  }
  func.func @transform_19(%arg0: i32) -> (i32, i32) {
    %c0_i32 = arith.constant 0 : i32
    %c0_i32_0 = arith.constant 0 : i32
    %c0_i32_1 = arith.constant 0 : i32
    return %c0_i32, %c0_i32_0 : i32, i32
  }
}

</mosaic_0001>

<bundles_post_ra>
// kernel: model_forward.1
= control target key start
LH: loop header
LB: loop body
LE: loop exit
PB: predicated region body
PF: predicated region fallthrough
CT: control target
= control target key end

     0   :  { %s12627_s0 = inlined_call_operand.vmem [shape: bf16[16,768], index: 0, kind: input, shape index: {}]   ;;  %s12628_s1 = inlined_call_operand.vmem [shape: bf16[16,768], index: 1, kind: input, shape index: {}]   ;;  %s12629_s2 = inlined_call_operand.vmem [shape: bf16[16,768], index: 2, kind: input, shape index: {}]   ;;  %s12630_s3 = inlined_call_operand.vmem [shape: bf16[4,768,192], index: 3, kind: input, shape index: {}]   ;;  %s12631_s4 = inlined_call_operand.vmem [shape: bf16[4,768,192], index: 4, kind: input, shape index: {}]   ;;  %s12632_s5 = inlined_call_operand.vmem [shape: bf16[4,768,192], index: 5, kind: input, shape index: {}]   ;;  %s12633_s6 = inlined_call_operand.vmem [shape: f32[4,1,192], index: 6, kind: input, shape index: {}]   ;;  %s12634_s7 = inlined_call_operand.vmem [shape: f32[4,1,192], index: 7, kind: input, shape index: {}]   ;;  %s12635_s8 = inlined_call_operand.vmem [shape: f32[4,1,192], index: 8, kind: input, shape index: {}]   ;;  %s12636_s9 = inlined_call_operand.vmem [shape: bf16[4,192,768], index: 9, kind: input, shape index: {}]   ;;  %s12637_s10 = inlined_call_operand.vmem [shape: f32[1,768], index: 10, kind: input, shape index: {}]   ;;  %s12638_s11 = inlined_call_operand.vmem [shape: f32[1,512], index: 11, kind: input, shape index: {}]   ;;  %s12639_s12 = inlined_call_operand.vmem [shape: f32[1,768], index: 12, kind: input, shape index: {}]   ;;  %s12640_s13 = inlined_call_operand.vmem [shape: f32[1,768], index: 13, kind: input, shape index: {}]   ;;  %s12641_s14 = inlined_call_operand.vmem [shape: f32[1,768], index: 14, kind: input, shape index: {}]   ;;  %s12642_s15 = inlined_call_operand.vmem [shape: f32[1,128], index: 15, kind: input, shape index: {}]   ;;  %s12643_s16 = inlined_call_operand.vmem [shape: bf16[768,512], index: 16, kind: input, shape index: {}]   ;;  %s12644_s17 = inlined_call_operand.vmem [shape: bf16[512,768], index: 17, kind: input, shape index: {}]   ;;  %s12645_s18 = inlined_call_operand.vmem [shape: bf16[768,128], index: 18, kind: input, shape index: {}]   ;;  %s12646_s19 = inlined_call_operand.vmem [shape: f32[16,128], index: 19, kind: output, shape index: {}]  }
   0x1   :  { %12652 = sst [smem:[#allocation14_spill]] %s12627_s0  ;;  %s10607_s0 = smov 0  }
   0x2   :  { %12653 = sst [smem:[#allocation15_spill]] %s12628_s1 }
   0x3   :  { %12654 = sst [smem:[#allocation16_spill]] %s12629_s2 }
   0x4   :  { %12655 = sst [smem:[#allocation17_spill]] %s12630_s3 }
   0x5   :  { %12656 = sst [smem:[#allocation18_spill]] %s12639_s12 }
   0x6   :  { %12657 = sst [smem:[#allocation19_spill]] %s12640_s13 }
   0x7   :  { %12658 = sst [smem:[#allocation20_spill]] %s12641_s14 }
   0x8   :  { %12659 = sst [smem:[#allocation21_spill]] %s12642_s15 }
   0x9   :  { %12660 = sst [smem:[#allocation22_spill]] %s12646_s19 }
   0xa LB: > { %12661 = sst [smem:[#allocation13_spill]] %s10504_s0  ;;  %s10613_s30 = sadd.s32 4294967295, %s10504_s0   ;;  %s10504_s0 = sphi %s10607_s0, %s29_s0  }
   0xb   : > { %p8531_p0 = scmp.ge.s32.totalorder %s10504_s0, 1  ;;  %p517_p1 = scmp.lt.s32.totalorder %s10504_s0, 5 }
   0xd   : > { %p518_p2 = pnand %p8531_p0, %p517_p1 }
   0xe   : > { %p589_p3 = scmp.lt.s32.totalorder (!%p518_p2), %s10613_s30, 3  ;;  %s12662_s28 = sld [smem:[#allocation17_spill]] (!%p518_p2) }
   0xf   : > { %521 = sbr.rel (%p518_p2) target bundleno = 3034 (0xbda), region = 84  ;;  %p8539_p4 = scmp.ne.s32.totalorder (!%p518_p2), %s10613_s30, 0 }
  0x14   : > { %s590_s20 = scalar_select %p589_p3, %s10613_s30, 3 }
  0x15   : > { %625 = sbr.rel (%p8539_p4) target bundleno = 246 (0xf6), region = 88 }
  0x16   : > { %s9434_s21 = smul.u32 768, %s590_s20  ;;  %s10619_s1 = sshll.u32 %s590_s20, 1 }
  0x17   : > { %s615_s24 = scalar_lea.vmem %s12635_s8, %s10619_s1  ;;  %s9435_s25 = smul.u32 576, %s590_s20 }
  0x18   : > { %s10632_s29 = scalar_lea.vmem %s12662_s28, %s9434_s21  ;;  %s10637_s15 = scalar_lea.vmem %s12631_s4, %s9434_s21 }
  0x19   : > { %s10642_s22 = scalar_lea.vmem %s12632_s5, %s9434_s21  ;;  %s10651_s26 = scalar_lea.vmem %s12636_s9, %s9435_s25 }
  0x1a   : > { %v659_v0 = vld [vmem:[%s12643_s16] sm:$0xff]  ;;  %v661_v1 = vld [vmem:[%s12643_s16 + $0x8] sm:$0xff]  ;;  %v663_v2 = vld [vmem:[%s12643_s16 + $0x10] sm:$0xff] }
  0x1b   : > { %660 = vst [vmem:[#allocation3 + $0x4c8] sm:$0xff] %v659_v0  ;;  %662 = vst [vmem:[#allocation3 + $0x448] sm:$0xff] %v661_v1  ;;  %v665_v3 = vld [vmem:[%s12643_s16 + $0x18] sm:$0xff]  ;;  %v667_v4 = vld [vmem:[%s12643_s16 + $0x20] sm:$0xff] }
  0x1c   : > { %664 = vst [vmem:[#allocation3 + $0x2d0] sm:$0xff] %v663_v2  ;;  %v669_v5 = vld [vmem:[%s12643_s16 + $0x28] sm:$0xff]  ;;  %666 = vst [vmem:[#allocation3 + $0x500] sm:$0xff] %v665_v3  ;;  %v671_v6 = vld [vmem:[%s12643_s16 + $0x30] sm:$0xff] }
  0x1d   : > { %668 = vst [vmem:[#allocation3 + $0x4b8] sm:$0xff] %v667_v4  ;;  %670 = vst [vmem:[#allocation3 + $0x10] sm:$0xff] %v669_v5  ;;  %v673_v7 = vld [vmem:[%s12643_s16 + $0x38] sm:$0xff]  ;;  %v675_v8 = vld [vmem:[%s12643_s16 + $0x40] sm:$0xff] }
  0x1e   : > { %672 = vst [vmem:[#allocation3 + $0x270] sm:$0xff] %v671_v6  ;;  %674 = vst [vmem:[#allocation3 + $0x538] sm:$0xff] %v673_v7  ;;  %v677_v9 = vld [vmem:[%s12643_s16 + $0x48] sm:$0xff]  ;;  %v679_v10 = vld [vmem:[%s12643_s16 + $0x50] sm:$0xff] }
  0x1f   : > { %676 = vst [vmem:[#allocation3 + $0x548] sm:$0xff] %v675_v8  ;;  %v681_v11 = vld [vmem:[%s12643_s16 + $0x58] sm:$0xff]  ;;  %678 = vst [vmem:[#allocation3 + $0x4f8] sm:$0xff] %v677_v9  ;;  %v683_v12 = vld [vmem:[%s12643_s16 + $0x60] sm:$0xff] }
  0x20   : > { %680 = vst [vmem:[#allocation3 + $0x378] sm:$0xff] %v679_v10  ;;  %682 = vst [vmem:[#allocation3 + $0x2e8] sm:$0xff] %v681_v11  ;;  %v685_v13 = vld [vmem:[%s12643_s16 + $0x68] sm:$0xff]  ;;  %v687_v14 = vld [vmem:[%s12643_s16 + $0x70] sm:$0xff] }
  0x21   : > { %684 = vst [vmem:[#allocation3 + $0xb8] sm:$0xff] %v683_v12  ;;  %686 = vst [vmem:[#allocation3 + $0x368] sm:$0xff] %v685_v13  ;;  %v689_v15 = vld [vmem:[%s12643_s16 + $0x78] sm:$0xff]  ;;  %v691_v16 = vld [vmem:[%s12643_s16 + $0x80] sm:$0xff] }
  0x22   : > { %688 = vst [vmem:[#allocation3 + $0x140] sm:$0xff] %v687_v14  ;;  %v693_v17 = vld [vmem:[%s12643_s16 + $0x88] sm:$0xff]  ;;  %690 = vst [vmem:[#allocation3 + $0x200] sm:$0xff] %v689_v15  ;;  %v695_v18 = vld [vmem:[%s12643_s16 + $0x90] sm:$0xff] }
  0x23   : > { %692 = vst [vmem:[#allocation3 + $0x80] sm:$0xff] %v691_v16  ;;  %694 = vst [vmem:[#allocation3 + $0x340] sm:$0xff] %v693_v17  ;;  %v697_v19 = vld [vmem:[%s12643_s16 + $0x98] sm:$0xff]  ;;  %v699_v20 = vld [vmem:[%s12643_s16 + $0xa0] sm:$0xff] }
  0x24   : > { %696 = vst [vmem:[#allocation3 + $0x4d8] sm:$0xff] %v695_v18  ;;  %698 = vst [vmem:[#allocation3 + $0x360] sm:$0xff] %v697_v19  ;;  %v701_v21 = vld [vmem:[%s12643_s16 + $0xa8] sm:$0xff]  ;;  %v703_v22 = vld [vmem:[%s12643_s16 + $0xb0] sm:$0xff] }
  0x25   : > { %700 = vst [vmem:[#allocation3 + $0x598] sm:$0xff] %v699_v20  ;;  %v705_v23 = vld [vmem:[%s12643_s16 + $0xb8] sm:$0xff]  ;;  %702 = vst [vmem:[#allocation3 + $0x440] sm:$0xff] %v701_v21  ;;  %v707_v24 = vld [vmem:[%s12643_s16 + $0xc0] sm:$0xff] }
  0x26   : > { %704 = vst [vmem:[#allocation3 + $0x488] sm:$0xff] %v703_v22  ;;  %706 = vst [vmem:[#allocation3 + $0x50] sm:$0xff] %v705_v23  ;;  %v709_v25 = vld [vmem:[%s12643_s16 + $0xc8] sm:$0xff]  ;;  %v711_v26 = vld [vmem:[%s12643_s16 + $0xd0] sm:$0xff] }
  0x27   : > { %708 = vst [vmem:[#allocation3 + $0x68] sm:$0xff] %v707_v24  ;;  %710 = vst [vmem:[#allocation3 + $0x258] sm:$0xff] %v709_v25  ;;  %v713_v27 = vld [vmem:[%s12643_s16 + $0xd8] sm:$0xff]  ;;  %v715_v28 = vld [vmem:[%s12643_s16 + $0xe0] sm:$0xff] }
  0x28   : > { %712 = vst [vmem:[#allocation3 + $0x528] sm:$0xff] %v711_v26  ;;  %v717_v29 = vld [vmem:[%s12643_s16 + $0xe8] sm:$0xff]  ;;  %714 = vst [vmem:[#allocation3 + $0x550] sm:$0xff] %v713_v27  ;;  %v719_v30 = vld [vmem:[%s12643_s16 + $0xf0] sm:$0xff] }
  0x29   : > { %716 = vst [vmem:[#allocation3 + $0x560] sm:$0xff] %v715_v28  ;;  %718 = vst [vmem:[#allocation3 + $0x480] sm:$0xff] %v717_v29  ;;  %v721_v31 = vld [vmem:[%s12643_s16 + $0xf8] sm:$0xff]  ;;  %v723_v32 = vld [vmem:[%s12643_s16 + $0x100] sm:$0xff] }
  0x2a   : > { %720 = vst [vmem:[#allocation3 + $0x5a0] sm:$0xff] %v719_v30  ;;  %722 = vst [vmem:[#allocation3 + $0x1b0] sm:$0xff] %v721_v31  ;;  %v725_v33 = vld [vmem:[%s12643_s16 + $0x108] sm:$0xff]  ;;  %v727_v34 = vld [vmem:[%s12643_s16 + $0x110] sm:$0xff] }
  0x2b   : > { %724 = vst [vmem:[#allocation3 + $0x2a8] sm:$0xff] %v723_v32  ;;  %v729_v35 = vld [vmem:[%s12643_s16 + $0x118] sm:$0xff]  ;;  %726 = vst [vmem:[#allocation3 + $0x380] sm:$0xff] %v725_v33  ;;  %v731_v36 = vld [vmem:[%s12643_s16 + $0x120] sm:$0xff] }
  0x2c   : > { %728 = vst [vmem:[#allocation3 + $0x578] sm:$0xff] %v727_v34  ;;  %730 = vst [vmem:[#allocation3 + $0x2f0] sm:$0xff] %v729_v35  ;;  %v733_v37 = vld [vmem:[%s12643_s16 + $0x128] sm:$0xff]  ;;  %v735_v38 = vld [vmem:[%s12643_s16 + $0x130] sm:$0xff] }
  0x2d   : > { %732 = vst [vmem:[#allocation3 + $0x438] sm:$0xff] %v731_v36  ;;  %734 = vst [vmem:[#allocation3 + $0x260] sm:$0xff] %v733_v37  ;;  %v737_v39 = vld [vmem:[%s12643_s16 + $0x138] sm:$0xff]  ;;  %v739_v40 = vld [vmem:[%s12643_s16 + $0x140] sm:$0xff] }
  0x2e   : > { %736 = vst [vmem:[#allocation3 + $0x398] sm:$0xff] %v735_v38  ;;  %v741_v41 = vld [vmem:[%s12643_s16 + $0x148] sm:$0xff]  ;;  %738 = vst [vmem:[#allocation3 + $0x390] sm:$0xff] %v737_v39  ;;  %v743_v42 = vld [vmem:[%s12643_s16 + $0x150] sm:$0xff] }
  0x2f   : > { %740 = vst [vmem:[#allocation3 + $0x468] sm:$0xff] %v739_v40  ;;  %742 = vst [vmem:[#allocation3 + $0x2e0] sm:$0xff] %v741_v41  ;;  %v745_v43 = vld [vmem:[%s12643_s16 + $0x158] sm:$0xff]  ;;  %v747_v44 = vld [vmem:[%s12643_s16 + $0x160] sm:$0xff] }
  0x30   : > { %744 = vst [vmem:[#allocation3 + $0xb0] sm:$0xff] %v743_v42  ;;  %746 = vst [vmem:[#allocation3 + $0x5f8] sm:$0xff] %v745_v43  ;;  %v749_v45 = vld [vmem:[%s12643_s16 + $0x168] sm:$0xff]  ;;  %v751_v46 = vld [vmem:[%s12643_s16 + $0x170] sm:$0xff] }
  0x31   : > { %748 = vst [vmem:[#allocation3 + $0x5c8] sm:$0xff] %v747_v44  ;;  %v753_v47 = vld [vmem:[%s12643_s16 + $0x178] sm:$0xff]  ;;  %750 = vst [vmem:[#allocation3 + $0x4b0] sm:$0xff] %v749_v45  ;;  %v755_v48 = vld [vmem:[%s12643_s16 + $0x180] sm:$0xff] }
  0x32   : > { %752 = vst [vmem:[#allocation3 + $0xe0] sm:$0xff] %v751_v46  ;;  %754 = vst [vmem:[#allocation3 + $0x5d8] sm:$0xff] %v753_v47  ;;  %v757_v49 = vld [vmem:[%s12643_s16 + $0x188] sm:$0xff]  ;;  %v759_v50 = vld [vmem:[%s12643_s16 + $0x190] sm:$0xff] }
  0x33   : > { %756 = vst [vmem:[#allocation3 + $0x2c8] sm:$0xff] %v755_v48  ;;  %758 = vst [vmem:[#allocation3 + $0x238] sm:$0xff] %v757_v49  ;;  %v761_v51 = vld [vmem:[%s12643_s16 + $0x198] sm:$0xff]  ;;  %v763_v52 = vld [vmem:[%s12643_s16 + $0x1a0] sm:$0xff] }
  0x34   : > { %760 = vst [vmem:[#allocation3 + $0x530] sm:$0xff] %v759_v50  ;;  %v765_v53 = vld [vmem:[%s12643_s16 + $0x1a8] sm:$0xff]  ;;  %762 = vst [vmem:[#allocation3] sm:$0xff] %v761_v51  ;;  %v767_v54 = vld [vmem:[%s12643_s16 + $0x1b0] sm:$0xff] }
  0x35   : > { %764 = vst [vmem:[#allocation3 + $0x2b8] sm:$0xff] %v763_v52  ;;  %766 = vst [vmem:[#allocation3 + $0x88] sm:$0xff] %v765_v53  ;;  %v769_v55 = vld [vmem:[%s12643_s16 + $0x1b8] sm:$0xff]  ;;  %v771_v56 = vld [vmem:[%s12643_s16 + $0x1c0] sm:$0xff] }
  0x36   : > { %768 = vst [vmem:[#allocation3 + $0x5b8] sm:$0xff] %v767_v54  ;;  %770 = vst [vmem:[#allocation3 + $0x2d8] sm:$0xff] %v769_v55  ;;  %v773_v57 = vld [vmem:[%s12643_s16 + $0x1c8] sm:$0xff]  ;;  %v775_v58 = vld [vmem:[%s12643_s16 + $0x1d0] sm:$0xff] }
  0x37   : > { %772 = vst [vmem:[#allocation3 + $0x48] sm:$0xff] %v771_v56  ;;  %v777_v59 = vld [vmem:[%s12643_s16 + $0x1d8] sm:$0xff]  ;;  %774 = vst [vmem:[#allocation3 + $0x190] sm:$0xff] %v773_v57  ;;  %v779_v60 = vld [vmem:[%s12643_s16 + $0x1e0] sm:$0xff] }
  0x38   : > { %776 = vst [vmem:[#allocation3 + $0xf0] sm:$0xff] %v775_v58  ;;  %778 = vst [vmem:[#allocation3 + $0x230] sm:$0xff] %v777_v59  ;;  %v781_v61 = vld [vmem:[%s12643_s16 + $0x1e8] sm:$0xff]  ;;  %v783_v62 = vld [vmem:[%s12643_s16 + $0x1f0] sm:$0xff] }
  0x39   : > { %780 = vst [vmem:[#allocation3 + $0x40] sm:$0xff] %v779_v60  ;;  %782 = vst [vmem:[#allocation3 + $0x2b0] sm:$0xff] %v781_v61  ;;  %v785_v63 = vld [vmem:[%s12643_s16 + $0x1f8] sm:$0xff]  ;;  %v787_v0 = vld [vmem:[%s12643_s16 + $0x200] sm:$0xff] }
  0x3a   : > { %784 = vst [vmem:[#allocation3 + $0x100] sm:$0xff] %v783_v62  ;;  %v789_v1 = vld [vmem:[%s12643_s16 + $0x208] sm:$0xff]  ;;  %786 = vst [vmem:[#allocation3 + $0x158] sm:$0xff] %v785_v63  ;;  %v791_v2 = vld [vmem:[%s12643_s16 + $0x210] sm:$0xff] }
  0x3b   : > { %788 = vst [vmem:[#allocation3 + $0x350] sm:$0xff] %v787_v0  ;;  %790 = vst [vmem:[#allocation3 + $0xe8] sm:$0xff] %v789_v1  ;;  %v793_v3 = vld [vmem:[%s12643_s16 + $0x218] sm:$0xff]  ;;  %v795_v4 = vld [vmem:[%s12643_s16 + $0x220] sm:$0xff] }
  0x3c   : > { %792 = vst [vmem:[#allocation3 + $0x470] sm:$0xff] %v791_v2  ;;  %794 = vst [vmem:[#allocation3 + $0x4f0] sm:$0xff] %v793_v3  ;;  %v797_v5 = vld [vmem:[%s12643_s16 + $0x228] sm:$0xff]  ;;  %v799_v6 = vld [vmem:[%s12643_s16 + $0x230] sm:$0xff] }
  0x3d   : > { %796 = vst [vmem:[#allocation3 + $0x3b8] sm:$0xff] %v795_v4  ;;  %v801_v7 = vld [vmem:[%s12643_s16 + $0x238] sm:$0xff]  ;;  %798 = vst [vmem:[#allocation3 + $0x568] sm:$0xff] %v797_v5  ;;  %v803_v8 = vld [vmem:[%s12643_s16 + $0x240] sm:$0xff] }
  0x3e   : > { %800 = vst [vmem:[#allocation3 + $0x148] sm:$0xff] %v799_v6  ;;  %802 = vst [vmem:[#allocation3 + $0x300] sm:$0xff] %v801_v7  ;;  %v805_v9 = vld [vmem:[%s12643_s16 + $0x248] sm:$0xff]  ;;  %v807_v10 = vld [vmem:[%s12643_s16 + $0x250] sm:$0xff] }
  0x3f   : > { %804 = vst [vmem:[#allocation3 + $0x358] sm:$0xff] %v803_v8  ;;  %806 = vst [vmem:[#allocation3 + $0x5a8] sm:$0xff] %v805_v9  ;;  %v809_v11 = vld [vmem:[%s12643_s16 + $0x258] sm:$0xff]  ;;  %v811_v12 = vld [vmem:[%s12643_s16 + $0x260] sm:$0xff] }
  0x40   : > { %808 = vst [vmem:[#allocation3 + $0x90] sm:$0xff] %v807_v10  ;;  %v813_v13 = vld [vmem:[%s12643_s16 + $0x268] sm:$0xff]  ;;  %810 = vst [vmem:[#allocation3 + $0x4d0] sm:$0xff] %v809_v11  ;;  %v815_v14 = vld [vmem:[%s12643_s16 + $0x270] sm:$0xff] }
  0x41   : > { %812 = vst [vmem:[#allocation3 + $0x348] sm:$0xff] %v811_v12  ;;  %814 = vst [vmem:[#allocation3 + $0x1f8] sm:$0xff] %v813_v13  ;;  %v817_v15 = vld [vmem:[%s12643_s16 + $0x278] sm:$0xff]  ;;  %v819_v16 = vld [vmem:[%s12643_s16 + $0x280] sm:$0xff] }
  0x42   : > { %816 = vst [vmem:[#allocation3 + $0x410] sm:$0xff] %v815_v14  ;;  %818 = vst [vmem:[#allocation3 + $0x278] sm:$0xff] %v817_v15  ;;  %v821_v17 = vld [vmem:[%s12643_s16 + $0x288] sm:$0xff]  ;;  %v823_v18 = vld [vmem:[%s12643_s16 + $0x290] sm:$0xff] }
  0x43   : > { %820 = vst [vmem:[#allocation3 + $0x298] sm:$0xff] %v819_v16  ;;  %v825_v19 = vld [vmem:[%s12643_s16 + $0x298] sm:$0xff]  ;;  %822 = vst [vmem:[#allocation3 + $0x4a0] sm:$0xff] %v821_v17  ;;  %v827_v20 = vld [vmem:[%s12643_s16 + $0x2a0] sm:$0xff] }
  0x44   : > { %824 = vst [vmem:[#allocation3 + $0xa8] sm:$0xff] %v823_v18  ;;  %826 = vst [vmem:[#allocation3 + $0x450] sm:$0xff] %v825_v19  ;;  %v829_v21 = vld [vmem:[%s12643_s16 + $0x2a8] sm:$0xff]  ;;  %v831_v22 = vld [vmem:[%s12643_s16 + $0x2b0] sm:$0xff] }
  0x45   : > { %828 = vst [vmem:[#allocation3 + $0x5d0] sm:$0xff] %v827_v20  ;;  %830 = vst [vmem:[#allocation3 + $0x420] sm:$0xff] %v829_v21  ;;  %v833_v23 = vld [vmem:[%s12643_s16 + $0x2b8] sm:$0xff]  ;;  %v835_v24 = vld [vmem:[%s12643_s16 + $0x2c0] sm:$0xff] }
  0x46   : > { %832 = vst [vmem:[#allocation3 + $0x508] sm:$0xff] %v831_v22  ;;  %v837_v25 = vld [vmem:[%s12643_s16 + $0x2c8] sm:$0xff]  ;;  %834 = vst [vmem:[#allocation3 + $0x160] sm:$0xff] %v833_v23  ;;  %v839_v26 = vld [vmem:[%s12643_s16 + $0x2d0] sm:$0xff] }
  0x47   : > { %836 = vst [vmem:[#allocation3 + $0x418] sm:$0xff] %v835_v24  ;;  %838 = vst [vmem:[#allocation3 + $0x458] sm:$0xff] %v837_v25  ;;  %v841_v27 = vld [vmem:[%s12643_s16 + $0x2d8] sm:$0xff]  ;;  %v843_v28 = vld [vmem:[%s12643_s16 + $0x2e0] sm:$0xff] }
  0x48   : > { %840 = vst [vmem:[#allocation3 + $0x3c0] sm:$0xff] %v839_v26  ;;  %842 = vst [vmem:[#allocation3 + $0xa0] sm:$0xff] %v841_v27  ;;  %v845_v29 = vld [vmem:[%s12643_s16 + $0x2e8] sm:$0xff]  ;;  %v847_v30 = vld [vmem:[%s12643_s16 + $0x2f0] sm:$0xff] }
  0x49   : > { %844 = vst [vmem:[#allocation3 + $0x1d0] sm:$0xff] %v843_v28  ;;  %v849_v31 = vld [vmem:[%s12643_s16 + $0x2f8] sm:$0xff]  ;;  %846 = vst [vmem:[#allocation3 + $0x2f8] sm:$0xff] %v845_v29  ;;  %v851_v32 = vld [vmem:[%s12643_s16 + $0x300] sm:$0xff] }
  0x4a   : > { %848 = vst [vmem:[#allocation3 + $0x3a0] sm:$0xff] %v847_v30  ;;  %850 = vst [vmem:[#allocation3 + $0x1c0] sm:$0xff] %v849_v31  ;;  %v853_v33 = vld [vmem:[%s12643_s16 + $0x308] sm:$0xff]  ;;  %v855_v34 = vld [vmem:[%s12643_s16 + $0x310] sm:$0xff] }
  0x4b   : > { %852 = vst [vmem:[#allocation3 + $0x248] sm:$0xff] %v851_v32  ;;  %854 = vst [vmem:[#allocation3 + $0x78] sm:$0xff] %v853_v33  ;;  %v857_v35 = vld [vmem:[%s12643_s16 + $0x318] sm:$0xff]  ;;  %v859_v36 = vld [vmem:[%s12643_s16 + $0x320] sm:$0xff] }
  0x4c   : > { %856 = vst [vmem:[#allocation3 + $0x1f0] sm:$0xff] %v855_v34  ;;  %v861_v37 = vld [vmem:[%s12643_s16 + $0x328] sm:$0xff]  ;;  %858 = vst [vmem:[#allocation3 + $0x590] sm:$0xff] %v857_v35  ;;  %v863_v38 = vld [vmem:[%s12643_s16 + $0x330] sm:$0xff] }
  0x4d   : > { %860 = vst [vmem:[#allocation3 + $0x570] sm:$0xff] %v859_v36  ;;  %862 = vst [vmem:[#allocation3 + $0x28] sm:$0xff] %v861_v37  ;;  %v865_v39 = vld [vmem:[%s12643_s16 + $0x338] sm:$0xff]  ;;  %v867_v40 = vld [vmem:[%s12643_s16 + $0x340] sm:$0xff] }
  0x4e   : > { %864 = vst [vmem:[#allocation3 + $0x5f0] sm:$0xff] %v863_v38  ;;  %866 = vst [vmem:[#allocation3 + $0x5e8] sm:$0xff] %v865_v39  ;;  %v869_v41 = vld [vmem:[%s12643_s16 + $0x348] sm:$0xff]  ;;  %v871_v42 = vld [vmem:[%s12643_s16 + $0x350] sm:$0xff] }
  0x4f   : > { %868 = vst [vmem:[#allocation3 + $0x330] sm:$0xff] %v867_v40  ;;  %v873_v43 = vld [vmem:[%s12643_s16 + $0x358] sm:$0xff]  ;;  %870 = vst [vmem:[#allocation3 + $0x58] sm:$0xff] %v869_v41  ;;  %v875_v44 = vld [vmem:[%s12643_s16 + $0x360] sm:$0xff] }
  0x50   : > { %872 = vst [vmem:[#allocation3 + $0x400] sm:$0xff] %v871_v42  ;;  %874 = vst [vmem:[#allocation3 + $0x2c0] sm:$0xff] %v873_v43  ;;  %v877_v45 = vld [vmem:[%s12643_s16 + $0x368] sm:$0xff]  ;;  %v879_v46 = vld [vmem:[%s12643_s16 + $0x370] sm:$0xff] }
  0x51   : > { %876 = vst [vmem:[#allocation3 + $0x3e8] sm:$0xff] %v875_v44  ;;  %878 = vst [vmem:[#allocation3 + $0x388] sm:$0xff] %v877_v45  ;;  %v881_v47 = vld [vmem:[%s12643_s16 + $0x378] sm:$0xff]  ;;  %v883_v48 = vld [vmem:[%s12643_s16 + $0x380] sm:$0xff] }
  0x52   : > { %880 = vst [vmem:[#allocation3 + $0x208] sm:$0xff] %v879_v46  ;;  %v885_v49 = vld [vmem:[%s12643_s16 + $0x388] sm:$0xff]  ;;  %882 = vst [vmem:[#allocation3 + $0x318] sm:$0xff] %v881_v47  ;;  %v887_v50 = vld [vmem:[%s12643_s16 + $0x390] sm:$0xff] }
  0x53   : > { %884 = vst [vmem:[#allocation3 + $0x460] sm:$0xff] %v883_v48  ;;  %886 = vst [vmem:[#allocation3 + $0x3d8] sm:$0xff] %v885_v49  ;;  %v889_v51 = vld [vmem:[%s12643_s16 + $0x398] sm:$0xff]  ;;  %v891_v52 = vld [vmem:[%s12643_s16 + $0x3a0] sm:$0xff] }
  0x54   : > { %888 = vst [vmem:[#allocation3 + $0x588] sm:$0xff] %v887_v50  ;;  %890 = vst [vmem:[#allocation3 + $0x3f8] sm:$0xff] %v889_v51  ;;  %v893_v53 = vld [vmem:[%s12643_s16 + $0x3a8] sm:$0xff]  ;;  %v895_v54 = vld [vmem:[%s12643_s16 + $0x3b0] sm:$0xff] }
  0x55   : > { %892 = vst [vmem:[#allocation3 + $0x228] sm:$0xff] %v891_v52  ;;  %v897_v55 = vld [vmem:[%s12643_s16 + $0x3b8] sm:$0xff]  ;;  %894 = vst [vmem:[#allocation3 + $0x288] sm:$0xff] %v893_v53  ;;  %v899_v56 = vld [vmem:[%s12643_s16 + $0x3c0] sm:$0xff] }
  0x56   : > { %896 = vst [vmem:[#allocation3 + $0x1a0] sm:$0xff] %v895_v54  ;;  %898 = vst [vmem:[#allocation3 + $0x558] sm:$0xff] %v897_v55  ;;  %v901_v57 = vld [vmem:[%s12643_s16 + $0x3c8] sm:$0xff]  ;;  %v903_v58 = vld [vmem:[%s12643_s16 + $0x3d0] sm:$0xff] }
  0x57   : > { %900 = vst [vmem:[#allocation3 + $0x70] sm:$0xff] %v899_v56  ;;  %902 = vst [vmem:[#allocation3 + $0x138] sm:$0xff] %v901_v57  ;;  %v905_v59 = vld [vmem:[%s12643_s16 + $0x3d8] sm:$0xff]  ;;  %v907_v60 = vld [vmem:[%s12643_s16 + $0x3e0] sm:$0xff] }
  0x58   : > { %904 = vst [vmem:[#allocation3 + $0x130] sm:$0xff] %v903_v58  ;;  %v909_v61 = vld [vmem:[%s12643_s16 + $0x3e8] sm:$0xff]  ;;  %906 = vst [vmem:[#allocation3 + $0x510] sm:$0xff] %v905_v59  ;;  %v911_v62 = vld [vmem:[%s12643_s16 + $0x3f0] sm:$0xff] }
  0x59   : > { %908 = vst [vmem:[#allocation3 + $0x120] sm:$0xff] %v907_v60  ;;  %910 = vst [vmem:[#allocation3 + $0x328] sm:$0xff] %v909_v61  ;;  %v913_v63 = vld [vmem:[%s12643_s16 + $0x3f8] sm:$0xff]  ;;  %v915_v0 = vld [vmem:[%s12643_s16 + $0x400] sm:$0xff] }
  0x5a   : > { %912 = vst [vmem:[#allocation3 + $0x98] sm:$0xff] %v911_v62  ;;  %914 = vst [vmem:[#allocation3 + $0x338] sm:$0xff] %v913_v63  ;;  %v917_v1 = vld [vmem:[%s12643_s16 + $0x408] sm:$0xff]  ;;  %v919_v2 = vld [vmem:[%s12643_s16 + $0x410] sm:$0xff] }
  0x5b   : > { %916 = vst [vmem:[#allocation3 + $0x240] sm:$0xff] %v915_v0  ;;  %v921_v3 = vld [vmem:[%s12643_s16 + $0x418] sm:$0xff]  ;;  %918 = vst [vmem:[#allocation3 + $0x5b0] sm:$0xff] %v917_v1  ;;  %v923_v4 = vld [vmem:[%s12643_s16 + $0x420] sm:$0xff] }
  0x5c   : > { %920 = vst [vmem:[#allocation3 + $0x4c0] sm:$0xff] %v919_v2  ;;  %922 = vst [vmem:[#allocation3 + $0x370] sm:$0xff] %v921_v3  ;;  %v925_v5 = vld [vmem:[%s12643_s16 + $0x428] sm:$0xff]  ;;  %v927_v6 = vld [vmem:[%s12643_s16 + $0x430] sm:$0xff] }
  0x5d   : > { %924 = vst [vmem:[#allocation3 + $0x20] sm:$0xff] %v923_v4  ;;  %926 = vst [vmem:[#allocation3 + $0x3c8] sm:$0xff] %v925_v5  ;;  %v929_v7 = vld [vmem:[%s12643_s16 + $0x438] sm:$0xff]  ;;  %v931_v8 = vld [vmem:[%s12643_s16 + $0x440] sm:$0xff] }
  0x5e   : > { %928 = vst [vmem:[#allocation3 + $0x60] sm:$0xff] %v927_v6  ;;  %v933_v9 = vld [vmem:[%s12643_s16 + $0x448] sm:$0xff]  ;;  %930 = vst [vmem:[#allocation3 + $0x3f0] sm:$0xff] %v929_v7  ;;  %v935_v10 = vld [vmem:[%s12643_s16 + $0x450] sm:$0xff] }
  0x5f   : > { %932 = vst [vmem:[#allocation3 + $0x490] sm:$0xff] %v931_v8  ;;  %934 = vst [vmem:[#allocation3 + $0x310] sm:$0xff] %v933_v9  ;;  %v937_v11 = vld [vmem:[%s12643_s16 + $0x458] sm:$0xff]  ;;  %v939_v12 = vld [vmem:[%s12643_s16 + $0x460] sm:$0xff] }
  0x60   : > { %936 = vst [vmem:[#allocation3 + $0x320] sm:$0xff] %v935_v10  ;;  %938 = vst [vmem:[#allocation3 + $0x210] sm:$0xff] %v937_v11  ;;  %v941_v13 = vld [vmem:[%s12643_s16 + $0x468] sm:$0xff]  ;;  %v943_v14 = vld [vmem:[%s12643_s16 + $0x470] sm:$0xff] }
  0x61   : > { %940 = vst [vmem:[#allocation3 + $0xc0] sm:$0xff] %v939_v12  ;;  %v945_v15 = vld [vmem:[%s12643_s16 + $0x478] sm:$0xff]  ;;  %942 = vst [vmem:[#allocation3 + $0x540] sm:$0xff] %v941_v13  ;;  %v947_v16 = vld [vmem:[%s12643_s16 + $0x480] sm:$0xff] }
  0x62   : > { %944 = vst [vmem:[#allocation3 + $0x198] sm:$0xff] %v943_v14  ;;  %946 = vst [vmem:[#allocation3 + $0xd0] sm:$0xff] %v945_v15  ;;  %v949_v17 = vld [vmem:[%s12643_s16 + $0x488] sm:$0xff]  ;;  %v951_v18 = vld [vmem:[%s12643_s16 + $0x490] sm:$0xff] }
  0x63   : > { %948 = vst [vmem:[#allocation3 + $0x268] sm:$0xff] %v947_v16  ;;  %950 = vst [vmem:[#allocation3 + $0x3b0] sm:$0xff] %v949_v17  ;;  %v953_v19 = vld [vmem:[%s12643_s16 + $0x498] sm:$0xff]  ;;  %v955_v20 = vld [vmem:[%s12643_s16 + $0x4a0] sm:$0xff] }
  0x64   : > { %952 = vst [vmem:[#allocation3 + $0x1d8] sm:$0xff] %v951_v18  ;;  %v957_v21 = vld [vmem:[%s12643_s16 + $0x4a8] sm:$0xff]  ;;  %954 = vst [vmem:[#allocation3 + $0x3a8] sm:$0xff] %v953_v19  ;;  %v959_v22 = vld [vmem:[%s12643_s16 + $0x4b0] sm:$0xff] }
  0x65   : > { %956 = vst [vmem:[#allocation3 + $0x1b8] sm:$0xff] %v955_v20  ;;  %958 = vst [vmem:[#allocation3 + $0x3e0] sm:$0xff] %v957_v21  ;;  %v961_v23 = vld [vmem:[%s12643_s16 + $0x4b8] sm:$0xff]  ;;  %v963_v24 = vld [vmem:[%s12643_s16 + $0x4c0] sm:$0xff] }
  0x66   : > { %960 = vst [vmem:[#allocation3 + $0x128] sm:$0xff] %v959_v22  ;;  %962 = vst [vmem:[#allocation3 + $0x168] sm:$0xff] %v961_v23  ;;  %v965_v25 = vld [vmem:[%s12643_s16 + $0x4c8] sm:$0xff]  ;;  %v967_v26 = vld [vmem:[%s12643_s16 + $0x4d0] sm:$0xff] }
  0x67   : > { %964 = vst [vmem:[#allocation3 + $0x430] sm:$0xff] %v963_v24  ;;  %v969_v27 = vld [vmem:[%s12643_s16 + $0x4d8] sm:$0xff]  ;;  %966 = vst [vmem:[#allocation3 + $0x478] sm:$0xff] %v965_v25  ;;  %v971_v28 = vld [vmem:[%s12643_s16 + $0x4e0] sm:$0xff] }
  0x68   : > { %968 = vst [vmem:[#allocation3 + $0xc8] sm:$0xff] %v967_v26  ;;  %970 = vst [vmem:[#allocation3 + $0x1a8] sm:$0xff] %v969_v27  ;;  %v973_v29 = vld [vmem:[%s12643_s16 + $0x4e8] sm:$0xff]  ;;  %v975_v30 = vld [vmem:[%s12643_s16 + $0x4f0] sm:$0xff] }
  0x69   : > { %972 = vst [vmem:[#allocation3 + $0x188] sm:$0xff] %v971_v28  ;;  %974 = vst [vmem:[#allocation3 + $0x178] sm:$0xff] %v973_v29  ;;  %v977_v31 = vld [vmem:[%s12643_s16 + $0x4f8] sm:$0xff]  ;;  %v979_v32 = vld [vmem:[%s12643_s16 + $0x500] sm:$0xff] }
  0x6a   : > { %976 = vst [vmem:[#allocation3 + $0x218] sm:$0xff] %v975_v30  ;;  %v981_v33 = vld [vmem:[%s12643_s16 + $0x508] sm:$0xff]  ;;  %978 = vst [vmem:[#allocation3 + $0x1c8] sm:$0xff] %v977_v31  ;;  %v983_v34 = vld [vmem:[%s12643_s16 + $0x510] sm:$0xff] }
  0x6b   : > { %980 = vst [vmem:[#allocation3 + $0x308] sm:$0xff] %v979_v32  ;;  %982 = vst [vmem:[#allocation3 + $0xd8] sm:$0xff] %v981_v33  ;;  %v985_v35 = vld [vmem:[%s12643_s16 + $0x518] sm:$0xff]  ;;  %v987_v36 = vld [vmem:[%s12643_s16 + $0x520] sm:$0xff] }
  0x6c   : > { %984 = vst [vmem:[#allocation3 + $0x18] sm:$0xff] %v983_v34  ;;  %986 = vst [vmem:[#allocation3 + $0xf8] sm:$0xff] %v985_v35  ;;  %v989_v37 = vld [vmem:[%s12643_s16 + $0x528] sm:$0xff]  ;;  %v991_v38 = vld [vmem:[%s12643_s16 + $0x530] sm:$0xff] }
  0x6d   : > { %988 = vst [vmem:[#allocation3 + $0x30] sm:$0xff] %v987_v36  ;;  %v993_v39 = vld [vmem:[%s12643_s16 + $0x538] sm:$0xff]  ;;  %990 = vst [vmem:[#allocation3 + $0x110] sm:$0xff] %v989_v37  ;;  %v995_v40 = vld [vmem:[%s12643_s16 + $0x540] sm:$0xff] }
  0x6e   : > { %992 = vst [vmem:[#allocation3 + $0x5c0] sm:$0xff] %v991_v38  ;;  %994 = vst [vmem:[#allocation3 + $0x108] sm:$0xff] %v993_v39  ;;  %v997_v41 = vld [vmem:[%s12643_s16 + $0x548] sm:$0xff]  ;;  %v999_v42 = vld [vmem:[%s12643_s16 + $0x550] sm:$0xff] }
  0x6f   : > { %996 = vst [vmem:[#allocation3 + $0x220] sm:$0xff] %v995_v40  ;;  %998 = vst [vmem:[#allocation3 + $0x1e0] sm:$0xff] %v997_v41  ;;  %v1001_v43 = vld [vmem:[%s12643_s16 + $0x558] sm:$0xff]  ;;  %v1003_v44 = vld [vmem:[%s12643_s16 + $0x560] sm:$0xff] }
  0x70   : > { %1000 = vst [vmem:[#allocation3 + $0x5e0] sm:$0xff] %v999_v42  ;;  %v1005_v45 = vld [vmem:[%s12643_s16 + $0x568] sm:$0xff]  ;;  %1002 = vst [vmem:[#allocation3 + $0x3d0] sm:$0xff] %v1001_v43  ;;  %v1007_v46 = vld [vmem:[%s12643_s16 + $0x570] sm:$0xff] }
  0x71   : > { %1004 = vst [vmem:[#allocation3 + $0x170] sm:$0xff] %v1003_v44  ;;  %1006 = vst [vmem:[#allocation3 + $0x290] sm:$0xff] %v1005_v45  ;;  %v1009_v47 = vld [vmem:[%s12643_s16 + $0x578] sm:$0xff]  ;;  %v1011_v48 = vld [vmem:[%s12643_s16 + $0x580] sm:$0xff] }
  0x72   : > { %1008 = vst [vmem:[#allocation3 + $0x2a0] sm:$0xff] %v1007_v46  ;;  %1010 = vst [vmem:[#allocation3 + $0x4e8] sm:$0xff] %v1009_v47  ;;  %v1013_v49 = vld [vmem:[%s12643_s16 + $0x588] sm:$0xff]  ;;  %v1015_v50 = vld [vmem:[%s12643_s16 + $0x590] sm:$0xff] }
  0x73   : > { %1012 = vst [vmem:[#allocation3 + $0x150] sm:$0xff] %v1011_v48  ;;  %v1017_v51 = vld [vmem:[%s12643_s16 + $0x598] sm:$0xff]  ;;  %1014 = vst [vmem:[#allocation3 + $0x280] sm:$0xff] %v1013_v49  ;;  %v1019_v52 = vld [vmem:[%s12643_s16 + $0x5a0] sm:$0xff] }
  0x74   : > { %1016 = vst [vmem:[#allocation3 + $0x580] sm:$0xff] %v1015_v50  ;;  %1018 = vst [vmem:[#allocation3 + $0x38] sm:$0xff] %v1017_v51  ;;  %v1021_v53 = vld [vmem:[%s12643_s16 + $0x5a8] sm:$0xff]  ;;  %v1023_v54 = vld [vmem:[%s12643_s16 + $0x5b0] sm:$0xff] }
  0x75   : > { %1020 = vst [vmem:[#allocation3 + $0x428] sm:$0xff] %v1019_v52  ;;  %1022 = vst [vmem:[#allocation3 + $0x1e8] sm:$0xff] %v1021_v53  ;;  %v1025_v55 = vld [vmem:[%s12643_s16 + $0x5b8] sm:$0xff]  ;;  %v1027_v56 = vld [vmem:[%s12643_s16 + $0x5c0] sm:$0xff] }
  0x76   : > { %1024 = vst [vmem:[#allocation3 + $0x518] sm:$0xff] %v1023_v54  ;;  %v1029_v57 = vld [vmem:[%s12643_s16 + $0x5c8] sm:$0xff]  ;;  %1026 = vst [vmem:[#allocation3 + $0x180] sm:$0xff] %v1025_v55  ;;  %v1031_v58 = vld [vmem:[%s12643_s16 + $0x5d0] sm:$0xff] }
  0x77   : > { %1028 = vst [vmem:[#allocation3 + $0x4e0] sm:$0xff] %v1027_v56  ;;  %1030 = vst [vmem:[#allocation3 + $0x498] sm:$0xff] %v1029_v57  ;;  %v1033_v59 = vld [vmem:[%s12643_s16 + $0x5d8] sm:$0xff]  ;;  %v1035_v60 = vld [vmem:[%s12643_s16 + $0x5e0] sm:$0xff] }
  0x78   : > { %1032 = vst [vmem:[#allocation3 + $0x408] sm:$0xff] %v1031_v58  ;;  %1034 = vst [vmem:[#allocation3 + $0x8] sm:$0xff] %v1033_v59  ;;  %v1037_v61 = vld [vmem:[%s12643_s16 + $0x5e8] sm:$0xff]  ;;  %v1039_v62 = vld [vmem:[%s12643_s16 + $0x5f0] sm:$0xff] }
  0x79   : > { %1036 = vst [vmem:[#allocation3 + $0x520] sm:$0xff] %v1035_v60  ;;  %v1041_v63 = vld [vmem:[%s12643_s16 + $0x5f8] sm:$0xff]  ;;  %1038 = vst [vmem:[#allocation3 + $0x118] sm:$0xff] %v1037_v61 }
  0x7a   : > { %1040 = vst [vmem:[#allocation3 + $0x4a8] sm:$0xff] %v1039_v62  ;;  %1042 = vst [vmem:[#allocation3 + $0x250] sm:$0xff] %v1041_v63 }
  0x7b   : > { %1050 = vsyncadd [#allocation6], 24576  ;;  %v1085_v0 = vld [vmem:[%s12644_s17] sm:$0xff]  ;;  %v1087_v1 = vld [vmem:[%s12644_s17 + $0x8] sm:$0xff] }
  0x7c   : > { %1086 = vst [vmem:[#allocation4 + $0x380] sm:$0xff] %v1085_v0  ;;  %1088 = vst [vmem:[#allocation4 + $0x470] sm:$0xff] %v1087_v1  ;;  %v1089_v2 = vld [vmem:[%s12644_s17 + $0x10] sm:$0xff]  ;;  %v1091_v3 = vld [vmem:[%s12644_s17 + $0x18] sm:$0xff] }
  0x7d   : > { %v1093_v4 = vld [vmem:[%s12644_s17 + $0x20] sm:$0xff]  ;;  %1090 = vst [vmem:[#allocation4 + $0x190] sm:$0xff] %v1089_v2  ;;  %1092 = vst [vmem:[#allocation4 + $0x1c8] sm:$0xff] %v1091_v3  ;;  %v1095_v5 = vld [vmem:[%s12644_s17 + $0x28] sm:$0xff] }
  0x7e   : > { %1094 = vst [vmem:[#allocation4 + $0x5e8] sm:$0xff] %v1093_v4  ;;  %v1097_v6 = vld [vmem:[%s12644_s17 + $0x30] sm:$0xff]  ;;  %v1099_v7 = vld [vmem:[%s12644_s17 + $0x38] sm:$0xff]  ;;  %1096 = vst [vmem:[#allocation4 + $0x538] sm:$0xff] %v1095_v5 }
  0x7f   : > { %1098 = vst [vmem:[#allocation4 + $0x3f8] sm:$0xff] %v1097_v6  ;;  %1100 = vst [vmem:[#allocation4 + $0x260] sm:$0xff] %v1099_v7  ;;  %v1101_v8 = vld [vmem:[%s12644_s17 + $0x40] sm:$0xff]  ;;  %v1103_v9 = vld [vmem:[%s12644_s17 + $0x48] sm:$0xff] }
  0x80   : > { %v1105_v10 = vld [vmem:[%s12644_s17 + $0x50] sm:$0xff]  ;;  %1102 = vst [vmem:[#allocation4 + $0x10] sm:$0xff] %v1101_v8  ;;  %1104 = vst [vmem:[#allocation4 + $0x50] sm:$0xff] %v1103_v9  ;;  %v1107_v11 = vld [vmem:[%s12644_s17 + $0x58] sm:$0xff] }
  0x81   : > { %1106 = vst [vmem:[#allocation4 + $0x3e0] sm:$0xff] %v1105_v10  ;;  %v1109_v12 = vld [vmem:[%s12644_s17 + $0x60] sm:$0xff]  ;;  %v1111_v13 = vld [vmem:[%s12644_s17 + $0x68] sm:$0xff]  ;;  %1108 = vst [vmem:[#allocation4 + $0x5d0] sm:$0xff] %v1107_v11 }
  0x82   : > { %1110 = vst [vmem:[#allocation4 + $0x130] sm:$0xff] %v1109_v12  ;;  %1112 = vst [vmem:[#allocation4 + $0x430] sm:$0xff] %v1111_v13  ;;  %v1113_v14 = vld [vmem:[%s12644_s17 + $0x70] sm:$0xff]  ;;  %v1115_v15 = vld [vmem:[%s12644_s17 + $0x78] sm:$0xff] }
  0x83   : > { %v1117_v16 = vld [vmem:[%s12644_s17 + $0x80] sm:$0xff]  ;;  %1114 = vst [vmem:[#allocation4 + $0x128] sm:$0xff] %v1113_v14  ;;  %1116 = vst [vmem:[#allocation4 + $0x70] sm:$0xff] %v1115_v15  ;;  %v1119_v17 = vld [vmem:[%s12644_s17 + $0x88] sm:$0xff] }
  0x84   : > { %1118 = vst [vmem:[#allocation4 + $0x4b0] sm:$0xff] %v1117_v16  ;;  %v1121_v18 = vld [vmem:[%s12644_s17 + $0x90] sm:$0xff]  ;;  %v1123_v19 = vld [vmem:[%s12644_s17 + $0x98] sm:$0xff]  ;;  %1120 = vst [vmem:[#allocation4 + $0x5b0] sm:$0xff] %v1119_v17 }
  0x85   : > { %1122 = vst [vmem:[#allocation4 + $0x80] sm:$0xff] %v1121_v18  ;;  %1124 = vst [vmem:[#allocation4 + $0x540] sm:$0xff] %v1123_v19  ;;  %v1125_v20 = vld [vmem:[%s12644_s17 + $0xa0] sm:$0xff]  ;;  %v1127_v21 = vld [vmem:[%s12644_s17 + $0xa8] sm:$0xff] }
  0x86   : > { %v1129_v22 = vld [vmem:[%s12644_s17 + $0xb0] sm:$0xff]  ;;  %1126 = vst [vmem:[#allocation4 + $0x490] sm:$0xff] %v1125_v20  ;;  %1128 = vst [vmem:[#allocation4 + $0x270] sm:$0xff] %v1127_v21  ;;  %v1131_v23 = vld [vmem:[%s12644_s17 + $0xb8] sm:$0xff] }
  0x87   : > { %1130 = vst [vmem:[#allocation4 + $0x1c0] sm:$0xff] %v1129_v22  ;;  %v1133_v24 = vld [vmem:[%s12644_s17 + $0xc0] sm:$0xff]  ;;  %v1135_v25 = vld [vmem:[%s12644_s17 + $0xc8] sm:$0xff]  ;;  %1132 = vst [vmem:[#allocation4 + $0x450] sm:$0xff] %v1131_v23 }
  0x88   : > { %1134 = vst [vmem:[#allocation4 + $0x4a0] sm:$0xff] %v1133_v24  ;;  %1136 = vst [vmem:[#allocation4 + $0x5b8] sm:$0xff] %v1135_v25  ;;  %v1137_v26 = vld [vmem:[%s12644_s17 + $0xd0] sm:$0xff]  ;;  %v1139_v27 = vld [vmem:[%s12644_s17 + $0xd8] sm:$0xff] }
  0x89   : > { %v1141_v28 = vld [vmem:[%s12644_s17 + $0xe0] sm:$0xff]  ;;  %1138 = vst [vmem:[#allocation4 + $0x320] sm:$0xff] %v1137_v26  ;;  %1140 = vst [vmem:[#allocation4 + $0x200] sm:$0xff] %v1139_v27  ;;  %v1143_v29 = vld [vmem:[%s12644_s17 + $0xe8] sm:$0xff] }
  0x8a   : > { %1142 = vst [vmem:[#allocation4 + $0x258] sm:$0xff] %v1141_v28  ;;  %v1145_v30 = vld [vmem:[%s12644_s17 + $0xf0] sm:$0xff]  ;;  %v1147_v31 = vld [vmem:[%s12644_s17 + $0xf8] sm:$0xff]  ;;  %1144 = vst [vmem:[#allocation4 + $0x5e0] sm:$0xff] %v1143_v29 }
  0x8b   : > { %1146 = vst [vmem:[#allocation4 + $0x278] sm:$0xff] %v1145_v30  ;;  %1148 = vst [vmem:[#allocation4 + $0x28] sm:$0xff] %v1147_v31  ;;  %v1149_v32 = vld [vmem:[%s12644_s17 + $0x100] sm:$0xff]  ;;  %v1151_v33 = vld [vmem:[%s12644_s17 + $0x108] sm:$0xff] }
  0x8c   : > { %v1153_v34 = vld [vmem:[%s12644_s17 + $0x110] sm:$0xff]  ;;  %1150 = vst [vmem:[#allocation4 + $0x90] sm:$0xff] %v1149_v32  ;;  %1152 = vst [vmem:[#allocation4 + $0x228] sm:$0xff] %v1151_v33  ;;  %v1155_v35 = vld [vmem:[%s12644_s17 + $0x118] sm:$0xff] }
  0x8d   : > { %1154 = vst [vmem:[#allocation4 + $0x558] sm:$0xff] %v1153_v34  ;;  %v1157_v36 = vld [vmem:[%s12644_s17 + $0x120] sm:$0xff]  ;;  %v1159_v37 = vld [vmem:[%s12644_s17 + $0x128] sm:$0xff]  ;;  %1156 = vst [vmem:[#allocation4 + $0x3f0] sm:$0xff] %v1155_v35 }
  0x8e   : > { %1158 = vst [vmem:[#allocation4 + $0x4c0] sm:$0xff] %v1157_v36  ;;  %1160 = vst [vmem:[#allocation4 + $0x68] sm:$0xff] %v1159_v37  ;;  %v1161_v38 = vld [vmem:[%s12644_s17 + $0x130] sm:$0xff]  ;;  %v1163_v39 = vld [vmem:[%s12644_s17 + $0x138] sm:$0xff] }
  0x8f   : > { %v1165_v40 = vld [vmem:[%s12644_s17 + $0x140] sm:$0xff]  ;;  %1162 = vst [vmem:[#allocation4 + $0x140] sm:$0xff] %v1161_v38  ;;  %1164 = vst [vmem:[#allocation4 + $0x5a8] sm:$0xff] %v1163_v39  ;;  %v1167_v41 = vld [vmem:[%s12644_s17 + $0x148] sm:$0xff] }
  0x90   : > { %1166 = vst [vmem:[#allocation4 + $0x2c8] sm:$0xff] %v1165_v40  ;;  %v1169_v42 = vld [vmem:[%s12644_s17 + $0x150] sm:$0xff]  ;;  %v1171_v43 = vld [vmem:[%s12644_s17 + $0x158] sm:$0xff]  ;;  %1168 = vst [vmem:[#allocation4 + $0x3d0] sm:$0xff] %v1167_v41 }
  0x91   : > { %1170 = vst [vmem:[#allocation4 + $0x428] sm:$0xff] %v1169_v42  ;;  %1172 = vst [vmem:[#allocation4 + $0x3c0] sm:$0xff] %v1171_v43  ;;  %v1173_v44 = vld [vmem:[%s12644_s17 + $0x160] sm:$0xff]  ;;  %v1175_v45 = vld [vmem:[%s12644_s17 + $0x168] sm:$0xff] }
  0x92   : > { %v1177_v46 = vld [vmem:[%s12644_s17 + $0x170] sm:$0xff]  ;;  %1174 = vst [vmem:[#allocation4 + $0x4e0] sm:$0xff] %v1173_v44  ;;  %1176 = vst [vmem:[#allocation4 + $0x2f0] sm:$0xff] %v1175_v45  ;;  %v1179_v47 = vld [vmem:[%s12644_s17 + $0x178] sm:$0xff] }
  0x93   : > { %1178 = vst [vmem:[#allocation4 + $0x1f8] sm:$0xff] %v1177_v46  ;;  %v1181_v48 = vld [vmem:[%s12644_s17 + $0x180] sm:$0xff]  ;;  %v1183_v49 = vld [vmem:[%s12644_s17 + $0x188] sm:$0xff]  ;;  %1180 = vst [vmem:[#allocation4 + $0x78] sm:$0xff] %v1179_v47 }
  0x94   : > { %1182 = vst [vmem:[#allocation4 + $0x170] sm:$0xff] %v1181_v48  ;;  %1184 = vst [vmem:[#allocation4 + $0x100] sm:$0xff] %v1183_v49  ;;  %v1185_v50 = vld [vmem:[%s12644_s17 + $0x190] sm:$0xff]  ;;  %v1187_v51 = vld [vmem:[%s12644_s17 + $0x198] sm:$0xff] }
  0x95   : > { %v1189_v52 = vld [vmem:[%s12644_s17 + $0x1a0] sm:$0xff]  ;;  %1186 = vst [vmem:[#allocation4 + $0x340] sm:$0xff] %v1185_v50  ;;  %1188 = vst [vmem:[#allocation4 + $0x408] sm:$0xff] %v1187_v51  ;;  %v1191_v53 = vld [vmem:[%s12644_s17 + $0x1a8] sm:$0xff] }
  0x96   : > { %1190 = vst [vmem:[#allocation4 + $0x358] sm:$0xff] %v1189_v52  ;;  %v1193_v54 = vld [vmem:[%s12644_s17 + $0x1b0] sm:$0xff]  ;;  %v1195_v55 = vld [vmem:[%s12644_s17 + $0x1b8] sm:$0xff]  ;;  %1192 = vst [vmem:[#allocation4] sm:$0xff] %v1191_v53 }
  0x97   : > { %1194 = vst [vmem:[#allocation4 + $0x218] sm:$0xff] %v1193_v54  ;;  %1196 = vst [vmem:[#allocation4 + $0x4d0] sm:$0xff] %v1195_v55  ;;  %v1197_v56 = vld [vmem:[%s12644_s17 + $0x1c0] sm:$0xff]  ;;  %v1199_v57 = vld [vmem:[%s12644_s17 + $0x1c8] sm:$0xff] }
  0x98   : > { %v1201_v58 = vld [vmem:[%s12644_s17 + $0x1d0] sm:$0xff]  ;;  %1198 = vst [vmem:[#allocation4 + $0x4b8] sm:$0xff] %v1197_v56  ;;  %1200 = vst [vmem:[#allocation4 + $0xc0] sm:$0xff] %v1199_v57  ;;  %v1203_v59 = vld [vmem:[%s12644_s17 + $0x1d8] sm:$0xff] }
  0x99   : > { %1202 = vst [vmem:[#allocation4 + $0x330] sm:$0xff] %v1201_v58  ;;  %v1205_v60 = vld [vmem:[%s12644_s17 + $0x1e0] sm:$0xff]  ;;  %v1207_v61 = vld [vmem:[%s12644_s17 + $0x1e8] sm:$0xff]  ;;  %1204 = vst [vmem:[#allocation4 + $0x480] sm:$0xff] %v1203_v59 }
  0x9a   : > { %1206 = vst [vmem:[#allocation4 + $0x548] sm:$0xff] %v1205_v60  ;;  %1208 = vst [vmem:[#allocation4 + $0x280] sm:$0xff] %v1207_v61  ;;  %v1209_v62 = vld [vmem:[%s12644_s17 + $0x1f0] sm:$0xff]  ;;  %v1211_v63 = vld [vmem:[%s12644_s17 + $0x1f8] sm:$0xff] }
  0x9b   : > { %v1213_v0 = vld [vmem:[%s12644_s17 + $0x200] sm:$0xff]  ;;  %1210 = vst [vmem:[#allocation4 + $0x378] sm:$0xff] %v1209_v62  ;;  %1212 = vst [vmem:[#allocation4 + $0x5c8] sm:$0xff] %v1211_v63  ;;  %v1215_v1 = vld [vmem:[%s12644_s17 + $0x208] sm:$0xff] }
  0x9c   : > { %1214 = vst [vmem:[#allocation4 + $0x5f8] sm:$0xff] %v1213_v0  ;;  %v1217_v2 = vld [vmem:[%s12644_s17 + $0x210] sm:$0xff]  ;;  %v1219_v3 = vld [vmem:[%s12644_s17 + $0x218] sm:$0xff]  ;;  %1216 = vst [vmem:[#allocation4 + $0x590] sm:$0xff] %v1215_v1 }
  0x9d   : > { %1218 = vst [vmem:[#allocation4 + $0x48] sm:$0xff] %v1217_v2  ;;  %1220 = vst [vmem:[#allocation4 + $0xc8] sm:$0xff] %v1219_v3  ;;  %v1221_v4 = vld [vmem:[%s12644_s17 + $0x220] sm:$0xff]  ;;  %v1223_v5 = vld [vmem:[%s12644_s17 + $0x228] sm:$0xff] }
  0x9e   : > { %v1225_v6 = vld [vmem:[%s12644_s17 + $0x230] sm:$0xff]  ;;  %1222 = vst [vmem:[#allocation4 + $0x528] sm:$0xff] %v1221_v4  ;;  %1224 = vst [vmem:[#allocation4 + $0x138] sm:$0xff] %v1223_v5  ;;  %v1227_v7 = vld [vmem:[%s12644_s17 + $0x238] sm:$0xff] }
  0x9f   : > { %1226 = vst [vmem:[#allocation4 + $0x500] sm:$0xff] %v1225_v6  ;;  %v1229_v8 = vld [vmem:[%s12644_s17 + $0x240] sm:$0xff]  ;;  %v1231_v9 = vld [vmem:[%s12644_s17 + $0x248] sm:$0xff]  ;;  %1228 = vst [vmem:[#allocation4 + $0x420] sm:$0xff] %v1227_v7 }
  0xa0   : > { %1230 = vst [vmem:[#allocation4 + $0x3a0] sm:$0xff] %v1229_v8  ;;  %1232 = vst [vmem:[#allocation4 + $0x290] sm:$0xff] %v1231_v9  ;;  %v1233_v10 = vld [vmem:[%s12644_s17 + $0x250] sm:$0xff]  ;;  %v1235_v11 = vld [vmem:[%s12644_s17 + $0x258] sm:$0xff] }
  0xa1   : > { %v1237_v12 = vld [vmem:[%s12644_s17 + $0x260] sm:$0xff]  ;;  %1234 = vst [vmem:[#allocation4 + $0x2d0] sm:$0xff] %v1233_v10  ;;  %1236 = vst [vmem:[#allocation4 + $0x4f0] sm:$0xff] %v1235_v11  ;;  %v1239_v13 = vld [vmem:[%s12644_s17 + $0x268] sm:$0xff] }
  0xa2   : > { %1238 = vst [vmem:[#allocation4 + $0x368] sm:$0xff] %v1237_v12  ;;  %v1241_v14 = vld [vmem:[%s12644_s17 + $0x270] sm:$0xff]  ;;  %v1243_v15 = vld [vmem:[%s12644_s17 + $0x278] sm:$0xff]  ;;  %1240 = vst [vmem:[#allocation4 + $0x3d8] sm:$0xff] %v1239_v13 }
  0xa3   : > { %1242 = vst [vmem:[#allocation4 + $0x3a8] sm:$0xff] %v1241_v14  ;;  %1244 = vst [vmem:[#allocation4 + $0x120] sm:$0xff] %v1243_v15  ;;  %v1245_v16 = vld [vmem:[%s12644_s17 + $0x280] sm:$0xff]  ;;  %v1247_v17 = vld [vmem:[%s12644_s17 + $0x288] sm:$0xff] }
  0xa4   : > { %v1249_v18 = vld [vmem:[%s12644_s17 + $0x290] sm:$0xff]  ;;  %1246 = vst [vmem:[#allocation4 + $0x578] sm:$0xff] %v1245_v16  ;;  %1248 = vst [vmem:[#allocation4 + $0x298] sm:$0xff] %v1247_v17  ;;  %v1251_v19 = vld [vmem:[%s12644_s17 + $0x298] sm:$0xff] }
  0xa5   : > { %1250 = vst [vmem:[#allocation4 + $0x468] sm:$0xff] %v1249_v18  ;;  %v1253_v20 = vld [vmem:[%s12644_s17 + $0x2a0] sm:$0xff]  ;;  %v1255_v21 = vld [vmem:[%s12644_s17 + $0x2a8] sm:$0xff]  ;;  %1252 = vst [vmem:[#allocation4 + $0x5f0] sm:$0xff] %v1251_v19 }
  0xa6   : > { %1254 = vst [vmem:[#allocation4 + $0x238] sm:$0xff] %v1253_v20  ;;  %1256 = vst [vmem:[#allocation4 + $0x58] sm:$0xff] %v1255_v21  ;;  %v1257_v22 = vld [vmem:[%s12644_s17 + $0x2b0] sm:$0xff]  ;;  %v1259_v23 = vld [vmem:[%s12644_s17 + $0x2b8] sm:$0xff] }
  0xa7   : > { %v1261_v24 = vld [vmem:[%s12644_s17 + $0x2c0] sm:$0xff]  ;;  %1258 = vst [vmem:[#allocation4 + $0x4e8] sm:$0xff] %v1257_v22  ;;  %1260 = vst [vmem:[#allocation4 + $0x2e0] sm:$0xff] %v1259_v23  ;;  %v1263_v25 = vld [vmem:[%s12644_s17 + $0x2c8] sm:$0xff] }
  0xa8   : > { %1262 = vst [vmem:[#allocation4 + $0x220] sm:$0xff] %v1261_v24  ;;  %v1265_v26 = vld [vmem:[%s12644_s17 + $0x2d0] sm:$0xff]  ;;  %v1267_v27 = vld [vmem:[%s12644_s17 + $0x2d8] sm:$0xff]  ;;  %1264 = vst [vmem:[#allocation4 + $0xa8] sm:$0xff] %v1263_v25 }
  0xa9   : > { %1266 = vst [vmem:[#allocation4 + $0xb0] sm:$0xff] %v1265_v26  ;;  %1268 = vst [vmem:[#allocation4 + $0x3e8] sm:$0xff] %v1267_v27  ;;  %v1269_v28 = vld [vmem:[%s12644_s17 + $0x2e0] sm:$0xff]  ;;  %v1271_v29 = vld [vmem:[%s12644_s17 + $0x2e8] sm:$0xff] }
  0xaa   : > { %v1273_v30 = vld [vmem:[%s12644_s17 + $0x2f0] sm:$0xff]  ;;  %1270 = vst [vmem:[#allocation4 + $0x1d8] sm:$0xff] %v1269_v28  ;;  %1272 = vst [vmem:[#allocation4 + $0x8] sm:$0xff] %v1271_v29  ;;  %v1275_v31 = vld [vmem:[%s12644_s17 + $0x2f8] sm:$0xff] }
  0xab   : > { %1274 = vst [vmem:[#allocation4 + $0x560] sm:$0xff] %v1273_v30  ;;  %v1277_v32 = vld [vmem:[%s12644_s17 + $0x300] sm:$0xff]  ;;  %v1279_v33 = vld [vmem:[%s12644_s17 + $0x308] sm:$0xff]  ;;  %1276 = vst [vmem:[#allocation4 + $0x98] sm:$0xff] %v1275_v31 }
  0xac   : > { %1278 = vst [vmem:[#allocation4 + $0x418] sm:$0xff] %v1277_v32  ;;  %1280 = vst [vmem:[#allocation4 + $0x2c0] sm:$0xff] %v1279_v33  ;;  %v1281_v34 = vld [vmem:[%s12644_s17 + $0x310] sm:$0xff]  ;;  %v1283_v35 = vld [vmem:[%s12644_s17 + $0x318] sm:$0xff] }
  0xad   : > { %v1285_v36 = vld [vmem:[%s12644_s17 + $0x320] sm:$0xff]  ;;  %1282 = vst [vmem:[#allocation4 + $0x1b8] sm:$0xff] %v1281_v34  ;;  %1284 = vst [vmem:[#allocation4 + $0x240] sm:$0xff] %v1283_v35  ;;  %v1287_v37 = vld [vmem:[%s12644_s17 + $0x328] sm:$0xff] }
  0xae   : > { %1286 = vst [vmem:[#allocation4 + $0x400] sm:$0xff] %v1285_v36  ;;  %v1289_v38 = vld [vmem:[%s12644_s17 + $0x330] sm:$0xff]  ;;  %v1291_v39 = vld [vmem:[%s12644_s17 + $0x338] sm:$0xff]  ;;  %1288 = vst [vmem:[#allocation4 + $0x580] sm:$0xff] %v1287_v37 }
  0xaf   : > { %1290 = vst [vmem:[#allocation4 + $0x568] sm:$0xff] %v1289_v38  ;;  %1292 = vst [vmem:[#allocation4 + $0x460] sm:$0xff] %v1291_v39  ;;  %v1293_v40 = vld [vmem:[%s12644_s17 + $0x340] sm:$0xff]  ;;  %v1295_v41 = vld [vmem:[%s12644_s17 + $0x348] sm:$0xff] }
  0xb0   : > { %v1297_v42 = vld [vmem:[%s12644_s17 + $0x350] sm:$0xff]  ;;  %1294 = vst [vmem:[#allocation4 + $0x1d0] sm:$0xff] %v1293_v40  ;;  %1296 = vst [vmem:[#allocation4 + $0x370] sm:$0xff] %v1295_v41  ;;  %v1299_v43 = vld [vmem:[%s12644_s17 + $0x358] sm:$0xff] }
  0xb1   : > { %1298 = vst [vmem:[#allocation4 + $0x2e8] sm:$0xff] %v1297_v42  ;;  %v1301_v44 = vld [vmem:[%s12644_s17 + $0x360] sm:$0xff]  ;;  %v1303_v45 = vld [vmem:[%s12644_s17 + $0x368] sm:$0xff]  ;;  %1300 = vst [vmem:[#allocation4 + $0x350] sm:$0xff] %v1299_v43 }
  0xb2   : > { %1302 = vst [vmem:[#allocation4 + $0xf8] sm:$0xff] %v1301_v44  ;;  %1304 = vst [vmem:[#allocation4 + $0x390] sm:$0xff] %v1303_v45  ;;  %v1305_v46 = vld [vmem:[%s12644_s17 + $0x370] sm:$0xff]  ;;  %v1307_v47 = vld [vmem:[%s12644_s17 + $0x378] sm:$0xff] }
  0xb3   : > { %v1309_v48 = vld [vmem:[%s12644_s17 + $0x380] sm:$0xff]  ;;  %1306 = vst [vmem:[#allocation4 + $0x570] sm:$0xff] %v1305_v46  ;;  %1308 = vst [vmem:[#allocation4 + $0xb8] sm:$0xff] %v1307_v47  ;;  %v1311_v49 = vld [vmem:[%s12644_s17 + $0x388] sm:$0xff] }
  0xb4   : > { %1310 = vst [vmem:[#allocation4 + $0x5d8] sm:$0xff] %v1309_v48  ;;  %v1313_v50 = vld [vmem:[%s12644_s17 + $0x390] sm:$0xff]  ;;  %v1315_v51 = vld [vmem:[%s12644_s17 + $0x398] sm:$0xff]  ;;  %1312 = vst [vmem:[#allocation4 + $0x198] sm:$0xff] %v1311_v49 }
  0xb5   : > { %1314 = vst [vmem:[#allocation4 + $0x530] sm:$0xff] %v1313_v50  ;;  %1316 = vst [vmem:[#allocation4 + $0x588] sm:$0xff] %v1315_v51  ;;  %v1317_v52 = vld [vmem:[%s12644_s17 + $0x3a0] sm:$0xff]  ;;  %v1319_v53 = vld [vmem:[%s12644_s17 + $0x3a8] sm:$0xff] }
  0xb6   : > { %v1321_v54 = vld [vmem:[%s12644_s17 + $0x3b0] sm:$0xff]  ;;  %1318 = vst [vmem:[#allocation4 + $0x180] sm:$0xff] %v1317_v52  ;;  %1320 = vst [vmem:[#allocation4 + $0x3b0] sm:$0xff] %v1319_v53  ;;  %v1323_v55 = vld [vmem:[%s12644_s17 + $0x3b8] sm:$0xff] }
  0xb7   : > { %1322 = vst [vmem:[#allocation4 + $0x4d8] sm:$0xff] %v1321_v54  ;;  %v1325_v56 = vld [vmem:[%s12644_s17 + $0x3c0] sm:$0xff]  ;;  %v1327_v57 = vld [vmem:[%s12644_s17 + $0x3c8] sm:$0xff]  ;;  %1324 = vst [vmem:[#allocation4 + $0x310] sm:$0xff] %v1323_v55 }
  0xb8   : > { %1326 = vst [vmem:[#allocation4 + $0xe0] sm:$0xff] %v1325_v56  ;;  %1328 = vst [vmem:[#allocation4 + $0x158] sm:$0xff] %v1327_v57  ;;  %v1329_v58 = vld [vmem:[%s12644_s17 + $0x3d0] sm:$0xff]  ;;  %v1331_v59 = vld [vmem:[%s12644_s17 + $0x3d8] sm:$0xff] }
  0xb9   : > { %v1333_v60 = vld [vmem:[%s12644_s17 + $0x3e0] sm:$0xff]  ;;  %1330 = vst [vmem:[#allocation4 + $0x2b8] sm:$0xff] %v1329_v58  ;;  %1332 = vst [vmem:[#allocation4 + $0xa0] sm:$0xff] %v1331_v59  ;;  %v1335_v61 = vld [vmem:[%s12644_s17 + $0x3e8] sm:$0xff] }
  0xba   : > { %1334 = vst [vmem:[#allocation4 + $0x20] sm:$0xff] %v1333_v60  ;;  %v1337_v62 = vld [vmem:[%s12644_s17 + $0x3f0] sm:$0xff]  ;;  %v1339_v63 = vld [vmem:[%s12644_s17 + $0x3f8] sm:$0xff]  ;;  %1336 = vst [vmem:[#allocation4 + $0x30] sm:$0xff] %v1335_v61 }
  0xbb   : > { %1338 = vst [vmem:[#allocation4 + $0x168] sm:$0xff] %v1337_v62  ;;  %1340 = vst [vmem:[#allocation4 + $0x510] sm:$0xff] %v1339_v63  ;;  %v1341_v0 = vld [vmem:[%s12644_s17 + $0x400] sm:$0xff]  ;;  %v1343_v1 = vld [vmem:[%s12644_s17 + $0x408] sm:$0xff] }
  0xbc   : > { %v1345_v2 = vld [vmem:[%s12644_s17 + $0x410] sm:$0xff]  ;;  %1342 = vst [vmem:[#allocation4 + $0x438] sm:$0xff] %v1341_v0  ;;  %1344 = vst [vmem:[#allocation4 + $0xd0] sm:$0xff] %v1343_v1  ;;  %v1347_v3 = vld [vmem:[%s12644_s17 + $0x418] sm:$0xff] }
  0xbd   : > { %1346 = vst [vmem:[#allocation4 + $0x550] sm:$0xff] %v1345_v2  ;;  %v1349_v4 = vld [vmem:[%s12644_s17 + $0x420] sm:$0xff]  ;;  %v1351_v5 = vld [vmem:[%s12644_s17 + $0x428] sm:$0xff]  ;;  %1348 = vst [vmem:[#allocation4 + $0x210] sm:$0xff] %v1347_v3 }
  0xbe   : > { %1350 = vst [vmem:[#allocation4 + $0x110] sm:$0xff] %v1349_v4  ;;  %1352 = vst [vmem:[#allocation4 + $0x3b8] sm:$0xff] %v1351_v5  ;;  %v1353_v6 = vld [vmem:[%s12644_s17 + $0x430] sm:$0xff]  ;;  %v1355_v7 = vld [vmem:[%s12644_s17 + $0x438] sm:$0xff] }
  0xbf   : > { %v1357_v8 = vld [vmem:[%s12644_s17 + $0x440] sm:$0xff]  ;;  %1354 = vst [vmem:[#allocation4 + $0x2d8] sm:$0xff] %v1353_v6  ;;  %1356 = vst [vmem:[#allocation4 + $0x4a8] sm:$0xff] %v1355_v7  ;;  %v1359_v9 = vld [vmem:[%s12644_s17 + $0x448] sm:$0xff] }
  0xc0   : > { %1358 = vst [vmem:[#allocation4 + $0x60] sm:$0xff] %v1357_v8  ;;  %v1361_v10 = vld [vmem:[%s12644_s17 + $0x450] sm:$0xff]  ;;  %v1363_v11 = vld [vmem:[%s12644_s17 + $0x458] sm:$0xff]  ;;  %1360 = vst [vmem:[#allocation4 + $0x328] sm:$0xff] %v1359_v9 }
  0xc1   : > { %1362 = vst [vmem:[#allocation4 + $0x2a8] sm:$0xff] %v1361_v10  ;;  %1364 = vst [vmem:[#allocation4 + $0x248] sm:$0xff] %v1363_v11  ;;  %v1365_v12 = vld [vmem:[%s12644_s17 + $0x460] sm:$0xff]  ;;  %v1367_v13 = vld [vmem:[%s12644_s17 + $0x468] sm:$0xff] }
  0xc2   : > { %v1369_v14 = vld [vmem:[%s12644_s17 + $0x470] sm:$0xff]  ;;  %1366 = vst [vmem:[#allocation4 + $0x410] sm:$0xff] %v1365_v12  ;;  %1368 = vst [vmem:[#allocation4 + $0x508] sm:$0xff] %v1367_v13  ;;  %v1371_v15 = vld [vmem:[%s12644_s17 + $0x478] sm:$0xff] }
  0xc3   : > { %1370 = vst [vmem:[#allocation4 + $0x250] sm:$0xff] %v1369_v14  ;;  %v1373_v16 = vld [vmem:[%s12644_s17 + $0x480] sm:$0xff]  ;;  %v1375_v17 = vld [vmem:[%s12644_s17 + $0x488] sm:$0xff]  ;;  %1372 = vst [vmem:[#allocation4 + $0x598] sm:$0xff] %v1371_v15 }
  0xc4   : > { %1374 = vst [vmem:[#allocation4 + $0x18] sm:$0xff] %v1373_v16  ;;  %1376 = vst [vmem:[#allocation4 + $0x3c8] sm:$0xff] %v1375_v17  ;;  %v1377_v18 = vld [vmem:[%s12644_s17 + $0x490] sm:$0xff]  ;;  %v1379_v19 = vld [vmem:[%s12644_s17 + $0x498] sm:$0xff] }
  0xc5   : > { %v1381_v20 = vld [vmem:[%s12644_s17 + $0x4a0] sm:$0xff]  ;;  %1378 = vst [vmem:[#allocation4 + $0x498] sm:$0xff] %v1377_v18  ;;  %1380 = vst [vmem:[#allocation4 + $0x308] sm:$0xff] %v1379_v19  ;;  %v1383_v21 = vld [vmem:[%s12644_s17 + $0x4a8] sm:$0xff] }
  0xc6   : > { %1382 = vst [vmem:[#allocation4 + $0x230] sm:$0xff] %v1381_v20  ;;  %v1385_v22 = vld [vmem:[%s12644_s17 + $0x4b0] sm:$0xff]  ;;  %v1387_v23 = vld [vmem:[%s12644_s17 + $0x4b8] sm:$0xff]  ;;  %1384 = vst [vmem:[#allocation4 + $0x1e8] sm:$0xff] %v1383_v21 }
  0xc7   : > { %1386 = vst [vmem:[#allocation4 + $0x1a0] sm:$0xff] %v1385_v22  ;;  %1388 = vst [vmem:[#allocation4 + $0x448] sm:$0xff] %v1387_v23  ;;  %v1389_v24 = vld [vmem:[%s12644_s17 + $0x4c0] sm:$0xff]  ;;  %v1391_v25 = vld [vmem:[%s12644_s17 + $0x4c8] sm:$0xff] }
  0xc8   : > { %v1393_v26 = vld [vmem:[%s12644_s17 + $0x4d0] sm:$0xff]  ;;  %1390 = vst [vmem:[#allocation4 + $0x38] sm:$0xff] %v1389_v24  ;;  %1392 = vst [vmem:[#allocation4 + $0xf0] sm:$0xff] %v1391_v25  ;;  %v1395_v27 = vld [vmem:[%s12644_s17 + $0x4d8] sm:$0xff] }
  0xc9   : > { %1394 = vst [vmem:[#allocation4 + $0x148] sm:$0xff] %v1393_v26  ;;  %v1397_v28 = vld [vmem:[%s12644_s17 + $0x4e0] sm:$0xff]  ;;  %v1399_v29 = vld [vmem:[%s12644_s17 + $0x4e8] sm:$0xff]  ;;  %1396 = vst [vmem:[#allocation4 + $0x4c8] sm:$0xff] %v1395_v27 }
  0xca   : > { %1398 = vst [vmem:[#allocation4 + $0x150] sm:$0xff] %v1397_v28  ;;  %1400 = vst [vmem:[#allocation4 + $0x4f8] sm:$0xff] %v1399_v29  ;;  %v1401_v30 = vld [vmem:[%s12644_s17 + $0x4f0] sm:$0xff]  ;;  %v1403_v31 = vld [vmem:[%s12644_s17 + $0x4f8] sm:$0xff] }
  0xcb   : > { %v1405_v32 = vld [vmem:[%s12644_s17 + $0x500] sm:$0xff]  ;;  %1402 = vst [vmem:[#allocation4 + $0x1e0] sm:$0xff] %v1401_v30  ;;  %1404 = vst [vmem:[#allocation4 + $0x440] sm:$0xff] %v1403_v31  ;;  %v1407_v33 = vld [vmem:[%s12644_s17 + $0x508] sm:$0xff] }
  0xcc   : > { %1406 = vst [vmem:[#allocation4 + $0x348] sm:$0xff] %v1405_v32  ;;  %v1409_v34 = vld [vmem:[%s12644_s17 + $0x510] sm:$0xff]  ;;  %v1411_v35 = vld [vmem:[%s12644_s17 + $0x518] sm:$0xff]  ;;  %1408 = vst [vmem:[#allocation4 + $0x518] sm:$0xff] %v1407_v33 }
  0xcd   : > { %1410 = vst [vmem:[#allocation4 + $0x360] sm:$0xff] %v1409_v34  ;;  %1412 = vst [vmem:[#allocation4 + $0xe8] sm:$0xff] %v1411_v35  ;;  %v1413_v36 = vld [vmem:[%s12644_s17 + $0x520] sm:$0xff]  ;;  %v1415_v37 = vld [vmem:[%s12644_s17 + $0x528] sm:$0xff] }
  0xce   : > { %v1417_v38 = vld [vmem:[%s12644_s17 + $0x530] sm:$0xff]  ;;  %1414 = vst [vmem:[#allocation4 + $0x2b0] sm:$0xff] %v1413_v36  ;;  %1416 = vst [vmem:[#allocation4 + $0x208] sm:$0xff] %v1415_v37  ;;  %v1419_v39 = vld [vmem:[%s12644_s17 + $0x538] sm:$0xff] }
  0xcf   : > { %1418 = vst [vmem:[#allocation4 + $0x318] sm:$0xff] %v1417_v38  ;;  %v1421_v40 = vld [vmem:[%s12644_s17 + $0x540] sm:$0xff]  ;;  %v1423_v41 = vld [vmem:[%s12644_s17 + $0x548] sm:$0xff]  ;;  %1420 = vst [vmem:[#allocation4 + $0x118] sm:$0xff] %v1419_v39 }
  0xd0   : > { %1422 = vst [vmem:[#allocation4 + $0x5c0] sm:$0xff] %v1421_v40  ;;  %1424 = vst [vmem:[#allocation4 + $0x488] sm:$0xff] %v1423_v41  ;;  %v1425_v42 = vld [vmem:[%s12644_s17 + $0x550] sm:$0xff]  ;;  %v1427_v43 = vld [vmem:[%s12644_s17 + $0x558] sm:$0xff] }
  0xd1   : > { %v1429_v44 = vld [vmem:[%s12644_s17 + $0x560] sm:$0xff]  ;;  %1426 = vst [vmem:[#allocation4 + $0x1b0] sm:$0xff] %v1425_v42  ;;  %1428 = vst [vmem:[#allocation4 + $0x5a0] sm:$0xff] %v1427_v43  ;;  %v1431_v45 = vld [vmem:[%s12644_s17 + $0x568] sm:$0xff] }
  0xd2   : > { %1430 = vst [vmem:[#allocation4 + $0x1a8] sm:$0xff] %v1429_v44  ;;  %v1433_v46 = vld [vmem:[%s12644_s17 + $0x570] sm:$0xff]  ;;  %v1435_v47 = vld [vmem:[%s12644_s17 + $0x578] sm:$0xff]  ;;  %1432 = vst [vmem:[#allocation4 + $0x338] sm:$0xff] %v1431_v45 }
  0xd3   : > { %1434 = vst [vmem:[#allocation4 + $0x288] sm:$0xff] %v1433_v46  ;;  %1436 = vst [vmem:[#allocation4 + $0xd8] sm:$0xff] %v1435_v47  ;;  %v1437_v48 = vld [vmem:[%s12644_s17 + $0x580] sm:$0xff]  ;;  %v1439_v49 = vld [vmem:[%s12644_s17 + $0x588] sm:$0xff] }
  0xd4   : > { %v1441_v50 = vld [vmem:[%s12644_s17 + $0x590] sm:$0xff]  ;;  %1438 = vst [vmem:[#allocation4 + $0x520] sm:$0xff] %v1437_v48  ;;  %1440 = vst [vmem:[#allocation4 + $0x108] sm:$0xff] %v1439_v49  ;;  %v1443_v51 = vld [vmem:[%s12644_s17 + $0x598] sm:$0xff] }
  0xd5   : > { %1442 = vst [vmem:[#allocation4 + $0x478] sm:$0xff] %v1441_v50  ;;  %v1445_v52 = vld [vmem:[%s12644_s17 + $0x5a0] sm:$0xff]  ;;  %v1447_v53 = vld [vmem:[%s12644_s17 + $0x5a8] sm:$0xff]  ;;  %1444 = vst [vmem:[#allocation4 + $0x300] sm:$0xff] %v1443_v51 }
  0xd6   : > { %1446 = vst [vmem:[#allocation4 + $0x1f0] sm:$0xff] %v1445_v52  ;;  %1448 = vst [vmem:[#allocation4 + $0x88] sm:$0xff] %v1447_v53  ;;  %v1449_v54 = vld [vmem:[%s12644_s17 + $0x5b0] sm:$0xff]  ;;  %v1451_v55 = vld [vmem:[%s12644_s17 + $0x5b8] sm:$0xff] }
  0xd7   : > { %v1453_v56 = vld [vmem:[%s12644_s17 + $0x5c0] sm:$0xff]  ;;  %1450 = vst [vmem:[#allocation4 + $0x160] sm:$0xff] %v1449_v54  ;;  %1452 = vst [vmem:[#allocation4 + $0x398] sm:$0xff] %v1451_v55  ;;  %v1455_v57 = vld [vmem:[%s12644_s17 + $0x5c8] sm:$0xff] }
  0xd8   : > { %1454 = vst [vmem:[#allocation4 + $0x388] sm:$0xff] %v1453_v56  ;;  %v1457_v58 = vld [vmem:[%s12644_s17 + $0x5d0] sm:$0xff]  ;;  %v1459_v59 = vld [vmem:[%s12644_s17 + $0x5d8] sm:$0xff]  ;;  %1456 = vst [vmem:[#allocation4 + $0x178] sm:$0xff] %v1455_v57 }
  0xd9   : > { %1458 = vst [vmem:[#allocation4 + $0x40] sm:$0xff] %v1457_v58  ;;  %1460 = vst [vmem:[#allocation4 + $0x458] sm:$0xff] %v1459_v59  ;;  %v1461_v60 = vld [vmem:[%s12644_s17 + $0x5e0] sm:$0xff]  ;;  %v1463_v61 = vld [vmem:[%s12644_s17 + $0x5e8] sm:$0xff] }
  0xda   : > { %v1465_v62 = vld [vmem:[%s12644_s17 + $0x5f0] sm:$0xff]  ;;  %1462 = vst [vmem:[#allocation4 + $0x188] sm:$0xff] %v1461_v60  ;;  %1464 = vst [vmem:[#allocation4 + $0x268] sm:$0xff] %v1463_v61  ;;  %v1467_v63 = vld [vmem:[%s12644_s17 + $0x5f8] sm:$0xff] }
  0xdb   : > { %1466 = vst [vmem:[#allocation4 + $0x2f8] sm:$0xff] %v1465_v62  ;;  %1468 = vst [vmem:[#allocation4 + $0x2a0] sm:$0xff] %v1467_v63 }
  0xdc   : > { %1476 = vsyncadd [#allocation6 + $0x1], 24576  ;;  %v1511_v0 = vld [vmem:[%s12645_s18] sm:$0xff]  ;;  %v1513_v1 = vld [vmem:[%s12645_s18 + $0x8] sm:$0xff] }
  0xdd   : > { %1512 = vst [vmem:[#allocation5] sm:$0xff] %v1511_v0  ;;  %1514 = vst [vmem:[#allocation5 + $0x8] sm:$0xff] %v1513_v1  ;;  %v1515_v2 = vld [vmem:[%s12645_s18 + $0x10] sm:$0xff]  ;;  %v1517_v3 = vld [vmem:[%s12645_s18 + $0x18] sm:$0xff] }
  0xde   : > { %v1519_v4 = vld [vmem:[%s12645_s18 + $0x20] sm:$0xff]  ;;  %1516 = vst [vmem:[#allocation5 + $0x10] sm:$0xff] %v1515_v2  ;;  %1518 = vst [vmem:[#allocation5 + $0x18] sm:$0xff] %v1517_v3  ;;  %v1521_v5 = vld [vmem:[%s12645_s18 + $0x28] sm:$0xff] }
  0xdf   : > { %1520 = vst [vmem:[#allocation5 + $0x20] sm:$0xff] %v1519_v4  ;;  %v1523_v6 = vld [vmem:[%s12645_s18 + $0x30] sm:$0xff]  ;;  %v1525_v7 = vld [vmem:[%s12645_s18 + $0x38] sm:$0xff]  ;;  %1522 = vst [vmem:[#allocation5 + $0x28] sm:$0xff] %v1521_v5 }
  0xe0   : > { %1524 = vst [vmem:[#allocation5 + $0x30] sm:$0xff] %v1523_v6  ;;  %1526 = vst [vmem:[#allocation5 + $0x38] sm:$0xff] %v1525_v7  ;;  %v1527_v8 = vld [vmem:[%s12645_s18 + $0x40] sm:$0xff]  ;;  %v1529_v9 = vld [vmem:[%s12645_s18 + $0x48] sm:$0xff] }
  0xe1   : > { %v1531_v10 = vld [vmem:[%s12645_s18 + $0x50] sm:$0xff]  ;;  %1528 = vst [vmem:[#allocation5 + $0x40] sm:$0xff] %v1527_v8  ;;  %1530 = vst [vmem:[#allocation5 + $0x48] sm:$0xff] %v1529_v9  ;;  %v1533_v11 = vld [vmem:[%s12645_s18 + $0x58] sm:$0xff] }
  0xe2   : > { %1532 = vst [vmem:[#allocation5 + $0x50] sm:$0xff] %v1531_v10  ;;  %v1535_v12 = vld [vmem:[%s12645_s18 + $0x60] sm:$0xff]  ;;  %v1537_v13 = vld [vmem:[%s12645_s18 + $0x68] sm:$0xff]  ;;  %1534 = vst [vmem:[#allocation5 + $0x58] sm:$0xff] %v1533_v11 }
  0xe3   : > { %1536 = vst [vmem:[#allocation5 + $0x60] sm:$0xff] %v1535_v12  ;;  %1538 = vst [vmem:[#allocation5 + $0x68] sm:$0xff] %v1537_v13  ;;  %v1539_v14 = vld [vmem:[%s12645_s18 + $0x70] sm:$0xff]  ;;  %v1541_v15 = vld [vmem:[%s12645_s18 + $0x78] sm:$0xff] }
  0xe4   : > { %v1543_v16 = vld [vmem:[%s12645_s18 + $0x80] sm:$0xff]  ;;  %1540 = vst [vmem:[#allocation5 + $0x70] sm:$0xff] %v1539_v14  ;;  %1542 = vst [vmem:[#allocation5 + $0x78] sm:$0xff] %v1541_v15  ;;  %v1545_v17 = vld [vmem:[%s12645_s18 + $0x88] sm:$0xff] }
  0xe5   : > { %1544 = vst [vmem:[#allocation5 + $0x80] sm:$0xff] %v1543_v16  ;;  %v1547_v18 = vld [vmem:[%s12645_s18 + $0x90] sm:$0xff]  ;;  %v1549_v19 = vld [vmem:[%s12645_s18 + $0x98] sm:$0xff]  ;;  %1546 = vst [vmem:[#allocation5 + $0x88] sm:$0xff] %v1545_v17 }
  0xe6   : > { %1548 = vst [vmem:[#allocation5 + $0x90] sm:$0xff] %v1547_v18  ;;  %1550 = vst [vmem:[#allocation5 + $0x98] sm:$0xff] %v1549_v19  ;;  %v1551_v20 = vld [vmem:[%s12645_s18 + $0xa0] sm:$0xff]  ;;  %v1553_v21 = vld [vmem:[%s12645_s18 + $0xa8] sm:$0xff] }
  0xe7   : > { %v1555_v22 = vld [vmem:[%s12645_s18 + $0xb0] sm:$0xff]  ;;  %1552 = vst [vmem:[#allocation5 + $0xa0] sm:$0xff] %v1551_v20  ;;  %1554 = vst [vmem:[#allocation5 + $0xa8] sm:$0xff] %v1553_v21  ;;  %v1557_v23 = vld [vmem:[%s12645_s18 + $0xb8] sm:$0xff] }
  0xe8   : > { %1556 = vst [vmem:[#allocation5 + $0xb0] sm:$0xff] %v1555_v22  ;;  %v1559_v24 = vld [vmem:[%s12645_s18 + $0xc0] sm:$0xff]  ;;  %v1561_v25 = vld [vmem:[%s12645_s18 + $0xc8] sm:$0xff]  ;;  %1558 = vst [vmem:[#allocation5 + $0xb8] sm:$0xff] %v1557_v23 }
  0xe9   : > { %1560 = vst [vmem:[#allocation5 + $0xc0] sm:$0xff] %v1559_v24  ;;  %1562 = vst [vmem:[#allocation5 + $0xc8] sm:$0xff] %v1561_v25  ;;  %v1563_v26 = vld [vmem:[%s12645_s18 + $0xd0] sm:$0xff]  ;;  %v1565_v27 = vld [vmem:[%s12645_s18 + $0xd8] sm:$0xff] }
  0xea   : > { %v1567_v28 = vld [vmem:[%s12645_s18 + $0xe0] sm:$0xff]  ;;  %1564 = vst [vmem:[#allocation5 + $0xd0] sm:$0xff] %v1563_v26  ;;  %1566 = vst [vmem:[#allocation5 + $0xd8] sm:$0xff] %v1565_v27  ;;  %v1569_v29 = vld [vmem:[%s12645_s18 + $0xe8] sm:$0xff] }
  0xeb   : > { %1568 = vst [vmem:[#allocation5 + $0xe0] sm:$0xff] %v1567_v28  ;;  %v1571_v30 = vld [vmem:[%s12645_s18 + $0xf0] sm:$0xff]  ;;  %v1573_v31 = vld [vmem:[%s12645_s18 + $0xf8] sm:$0xff]  ;;  %1570 = vst [vmem:[#allocation5 + $0xe8] sm:$0xff] %v1569_v29 }
  0xec   : > { %1572 = vst [vmem:[#allocation5 + $0xf0] sm:$0xff] %v1571_v30  ;;  %1574 = vst [vmem:[#allocation5 + $0xf8] sm:$0xff] %v1573_v31  ;;  %v1575_v32 = vld [vmem:[%s12645_s18 + $0x100] sm:$0xff]  ;;  %v1577_v33 = vld [vmem:[%s12645_s18 + $0x108] sm:$0xff] }
  0xed   : > { %v1579_v34 = vld [vmem:[%s12645_s18 + $0x110] sm:$0xff]  ;;  %1576 = vst [vmem:[#allocation5 + $0x100] sm:$0xff] %v1575_v32  ;;  %1578 = vst [vmem:[#allocation5 + $0x108] sm:$0xff] %v1577_v33  ;;  %v1581_v35 = vld [vmem:[%s12645_s18 + $0x118] sm:$0xff] }
  0xee   : > { %1580 = vst [vmem:[#allocation5 + $0x110] sm:$0xff] %v1579_v34  ;;  %v1583_v36 = vld [vmem:[%s12645_s18 + $0x120] sm:$0xff]  ;;  %v1585_v37 = vld [vmem:[%s12645_s18 + $0x128] sm:$0xff]  ;;  %1582 = vst [vmem:[#allocation5 + $0x118] sm:$0xff] %v1581_v35 }
  0xef   : > { %1584 = vst [vmem:[#allocation5 + $0x120] sm:$0xff] %v1583_v36  ;;  %1586 = vst [vmem:[#allocation5 + $0x128] sm:$0xff] %v1585_v37  ;;  %v1587_v38 = vld [vmem:[%s12645_s18 + $0x130] sm:$0xff]  ;;  %v1589_v39 = vld [vmem:[%s12645_s18 + $0x138] sm:$0xff] }
  0xf0   : > { %v1591_v40 = vld [vmem:[%s12645_s18 + $0x140] sm:$0xff]  ;;  %1588 = vst [vmem:[#allocation5 + $0x130] sm:$0xff] %v1587_v38  ;;  %1590 = vst [vmem:[#allocation5 + $0x138] sm:$0xff] %v1589_v39  ;;  %v1593_v41 = vld [vmem:[%s12645_s18 + $0x148] sm:$0xff] }
  0xf1   : > { %1592 = vst [vmem:[#allocation5 + $0x140] sm:$0xff] %v1591_v40  ;;  %v1595_v42 = vld [vmem:[%s12645_s18 + $0x150] sm:$0xff]  ;;  %v1597_v43 = vld [vmem:[%s12645_s18 + $0x158] sm:$0xff]  ;;  %1594 = vst [vmem:[#allocation5 + $0x148] sm:$0xff] %v1593_v41 }
  0xf2   : > { %1596 = vst [vmem:[#allocation5 + $0x150] sm:$0xff] %v1595_v42  ;;  %1598 = vst [vmem:[#allocation5 + $0x158] sm:$0xff] %v1597_v43  ;;  %v1599_v44 = vld [vmem:[%s12645_s18 + $0x160] sm:$0xff]  ;;  %v1601_v45 = vld [vmem:[%s12645_s18 + $0x168] sm:$0xff] }
  0xf3   : > { %v1603_v46 = vld [vmem:[%s12645_s18 + $0x170] sm:$0xff]  ;;  %1600 = vst [vmem:[#allocation5 + $0x160] sm:$0xff] %v1599_v44  ;;  %1602 = vst [vmem:[#allocation5 + $0x168] sm:$0xff] %v1601_v45  ;;  %v1605_v47 = vld [vmem:[%s12645_s18 + $0x178] sm:$0xff] }
  0xf4   : > { %1604 = vst [vmem:[#allocation5 + $0x170] sm:$0xff] %v1603_v46  ;;  %1606 = vst [vmem:[#allocation5 + $0x178] sm:$0xff] %v1605_v47 }
  0xf5   : > { %1614 = vsyncadd [#allocation6 + $0x2], 6144 }
  0xf6 PF: > { %v9445_v48 = vld [vmem:[%s10632_s29 + $0x74] ss:$8 sps:$4 sm:$0xff]   ;;  %v9449_v50 = vld [vmem:[%s10632_s29 + $0x70] ss:$8 sps:$4 sm:$0xff]   ;;  %v9451_v52 = vld [vmem:[%s10632_s29 + $0x64] ss:$8 sps:$4 sm:$0xff]   ;;  %s12666_s19 = scalar_lea.vmem %s12633_s6, %s10619_s1 }
  0xf7   : > { %v9447_v49 = vld [vmem:[%s10632_s29 + $0x174] ss:$8 sps:$4 sm:$0xff]   ;;  %2294 = vmatprep.subr.bf16.mxu0 %v9445_v48  ;;  %v9450_v51 = vld [vmem:[%s10632_s29 + $0x170] ss:$8 sps:$4 sm:$0xff]   ;;  %v9453_v53 = vld [vmem:[%s10632_s29 + $0x164] ss:$8 sps:$4 sm:$0xff]  }
  0xf8   : > { %2337 = vmatprep.subr.bf16.mxu1 %v9447_v49  ;;  %2295 = vmatpush1.bf16.msra.mxu0 %v9449_v50  ;;  %v9455_v54 = vld [vmem:[%s10632_s29 + $0x60] ss:$8 sps:$4 sm:$0xff]   ;;  %v9457_v56 = vld [vmem:[%s10632_s29 + $0x54] ss:$8 sps:$4 sm:$0xff]   ;;  %v9461_v58 = vld [vmem:[%s10632_s29 + $0x50] ss:$8 sps:$4 sm:$0xff]  }
  0xf9   : > { %2338 = vmatpush1.bf16.msra.mxu1 %v9450_v51  ;;  %2296 = vmatprep.subr.bf16.mxu0 %v9451_v52  ;;  %v9456_v55 = vld [vmem:[%s10632_s29 + $0x160] ss:$8 sps:$4 sm:$0xff]   ;;  %v9459_v57 = vld [vmem:[%s10632_s29 + $0x154] ss:$8 sps:$4 sm:$0xff]   ;;  %v9462_v59 = vld [vmem:[%s10632_s29 + $0x150] ss:$8 sps:$4 sm:$0xff]  }
  0xfa   : > { %2339 = vmatprep.subr.bf16.mxu1 %v9453_v53  ;;  %v9463_v60 = vld [vmem:[%s10632_s29 + $0x44] ss:$8 sps:$4 sm:$0xff]   ;;  %v9467_v62 = vld [vmem:[%s10632_s29 + $0x40] ss:$8 sps:$4 sm:$0xff]   ;;  %v9469_v0 = vld [vmem:[%s10632_s29 + $0x34] ss:$8 sps:$4 sm:$0xff]  }
  0xfb   : > { %v9465_v61 = vld [vmem:[%s10632_s29 + $0x144] ss:$8 sps:$4 sm:$0xff]   ;;  %v9468_v63 = vld [vmem:[%s10632_s29 + $0x140] ss:$8 sps:$4 sm:$0xff]   ;;  %v9471_v1 = vld [vmem:[%s10632_s29 + $0x134] ss:$8 sps:$4 sm:$0xff]  }
  0xfc   : > { %2297 = vmatpush1.bf16.msra.mxu0 %v9455_v54  ;;  %v9473_v2 = vld [vmem:[%s10632_s29 + $0x30] ss:$8 sps:$4 sm:$0xff]   ;;  %v9475_v4 = vld [vmem:[%s10632_s29 + $0x24] ss:$8 sps:$4 sm:$0xff]   ;;  %v9479_v6 = vld [vmem:[%s10632_s29 + $0x20] ss:$8 sps:$4 sm:$0xff]  }
  0xfd   : > { %2340 = vmatpush1.bf16.msra.mxu1 %v9456_v55  ;;  %2298 = vmatprep.subr.bf16.mxu0 %v9457_v56  ;;  %v9474_v3 = vld [vmem:[%s10632_s29 + $0x130] ss:$8 sps:$4 sm:$0xff]   ;;  %v9477_v5 = vld [vmem:[%s10632_s29 + $0x124] ss:$8 sps:$4 sm:$0xff]   ;;  %v9480_v7 = vld [vmem:[%s10632_s29 + $0x120] ss:$8 sps:$4 sm:$0xff]  }
  0xfe   : > { %2341 = vmatprep.subr.bf16.mxu1 %v9459_v57  ;;  %v9481_v8 = vld [vmem:[%s10632_s29 + $0x14] ss:$8 sps:$4 sm:$0xff]   ;;  %v9485_v10 = vld [vmem:[%s10632_s29 + $0x10] ss:$8 sps:$4 sm:$0xff]   ;;  %v9487_v12 = vld [vmem:[%s10632_s29 + $0x4] ss:$8 sps:$4 sm:$0xff]  }
  0xff   : > { %v9483_v9 = vld [vmem:[%s10632_s29 + $0x114] ss:$8 sps:$4 sm:$0xff]   ;;  %v9486_v11 = vld [vmem:[%s10632_s29 + $0x110] ss:$8 sps:$4 sm:$0xff]   ;;  %v9489_v13 = vld [vmem:[%s10632_s29 + $0x104] ss:$8 sps:$4 sm:$0xff]  }
 0x100   : > { %2299 = vmatpush1.bf16.msra.mxu0 %v9461_v58  ;;  %v9491_v14 = vld [vmem:[%s10632_s29] ss:$8 sps:$4 sm:$0xff]   ;;  %v9493_v16 = vld [vmem:[%s10632_s29 + $0xf4] ss:$8 sps:$4 sm:$0xff]   ;;  %v9497_v18 = vld [vmem:[%s10632_s29 + $0xf0] ss:$8 sps:$4 sm:$0xff]  }
 0x101   : > { %2342 = vmatpush1.bf16.msra.mxu1 %v9462_v59  ;;  %2300 = vmatprep.subr.bf16.mxu0 %v9463_v60  ;;  %v9492_v15 = vld [vmem:[%s10632_s29 + $0x100] ss:$8 sps:$4 sm:$0xff]   ;;  %v9495_v17 = vld [vmem:[%s10632_s29 + $0x1f4] ss:$8 sps:$4 sm:$0xff]   ;;  %v9498_v19 = vld [vmem:[%s10632_s29 + $0x1f0] ss:$8 sps:$4 sm:$0xff]  }
 0x102   : > { %2343 = vmatprep.subr.bf16.mxu1 %v9465_v61  ;;  %v9499_v20 = vld [vmem:[%s10632_s29 + $0xe4] ss:$8 sps:$4 sm:$0xff]   ;;  %v9503_v22 = vld [vmem:[%s10632_s29 + $0xe0] ss:$8 sps:$4 sm:$0xff]   ;;  %v9505_v24 = vld [vmem:[%s10632_s29 + $0xd4] ss:$8 sps:$4 sm:$0xff]  }
 0x103   : > { %v9501_v21 = vld [vmem:[%s10632_s29 + $0x1e4] ss:$8 sps:$4 sm:$0xff]   ;;  %v9504_v23 = vld [vmem:[%s10632_s29 + $0x1e0] ss:$8 sps:$4 sm:$0xff]   ;;  %v9507_v25 = vld [vmem:[%s10632_s29 + $0x1d4] ss:$8 sps:$4 sm:$0xff]  }
 0x104   : > { %2301 = vmatpush1.bf16.msra.mxu0 %v9467_v62  ;;  %v9509_v26 = vld [vmem:[%s10632_s29 + $0xd0] ss:$8 sps:$4 sm:$0xff]   ;;  %v9511_v28 = vld [vmem:[%s10632_s29 + $0xc4] ss:$8 sps:$4 sm:$0xff]   ;;  %v9515_v30 = vld [vmem:[%s10632_s29 + $0xc0] ss:$8 sps:$4 sm:$0xff]  }
 0x105   : > { %2344 = vmatpush1.bf16.msra.mxu1 %v9468_v63  ;;  %2302 = vmatprep.subr.bf16.mxu0 %v9469_v0  ;;  %v9510_v27 = vld [vmem:[%s10632_s29 + $0x1d0] ss:$8 sps:$4 sm:$0xff]   ;;  %v9513_v29 = vld [vmem:[%s10632_s29 + $0x1c4] ss:$8 sps:$4 sm:$0xff]   ;;  %v9516_v31 = vld [vmem:[%s10632_s29 + $0x1c0] ss:$8 sps:$4 sm:$0xff]  }
 0x106   : > { %2345 = vmatprep.subr.bf16.mxu1 %v9471_v1  ;;  %v9517_v32 = vld [vmem:[%s10632_s29 + $0xb4] ss:$8 sps:$4 sm:$0xff]   ;;  %s12663_s3 = sld [smem:[#allocation14_spill]]  ;;  %v9521_v36 = vld [vmem:[%s10632_s29 + $0xb0] ss:$8 sps:$4 sm:$0xff]   ;;  %vm3917_vm0 = vcmask 523264  }
 0x107   : > { %v9519_v34 = vld [vmem:[%s10632_s29 + $0x1b4] ss:$8 sps:$4 sm:$0xff]   ;;  %v9522_v37 = vld [vmem:[%s10632_s29 + $0x1b0] ss:$8 sps:$4 sm:$0xff]   ;;  %v9523_v38 = vld [vmem:[%s10632_s29 + $0xa4] ss:$8 sps:$4 sm:$0xff]  }
 0x108   : > { %2303 = vmatpush1.bf16.msra.mxu0 %v9473_v2  ;;  %v9525_v39 = vld [vmem:[%s10632_s29 + $0x1a4] ss:$8 sps:$4 sm:$0xff]   ;;  %v9527_v40 = vld [vmem:[%s10632_s29 + $0xa0] ss:$8 sps:$4 sm:$0xff]   ;;  %v9529_v42 = vld [vmem:[%s10632_s29 + $0x94] ss:$8 sps:$4 sm:$0xff]  }
 0x109   : > { %2346 = vmatpush1.bf16.msra.mxu1 %v9474_v3  ;;  %2304 = vmatprep.subr.bf16.mxu0 %v9475_v4  ;;  %v9528_v41 = vld [vmem:[%s10632_s29 + $0x1a0] ss:$8 sps:$4 sm:$0xff]   ;;  %v9531_v43 = vld [vmem:[%s10632_s29 + $0x194] ss:$8 sps:$4 sm:$0xff]   ;;  %v9533_v44 = vld [vmem:[%s10632_s29 + $0x90] ss:$8 sps:$4 sm:$0xff]  }
 0x10a   : > { %2347 = vmatprep.subr.bf16.mxu1 %v9477_v5  ;;  %v9534_v45 = vld [vmem:[%s10632_s29 + $0x190] ss:$8 sps:$4 sm:$0xff]   ;;  %v9535_v46 = vld [vmem:[%s10632_s29 + $0x84] ss:$8 sps:$4 sm:$0xff]   ;;  %v9539_v48 = vld [vmem:[%s10632_s29 + $0x80] ss:$8 sps:$4 sm:$0xff]  }
 0x10b   : > { %v9537_v47 = vld [vmem:[%s10632_s29 + $0x184] ss:$8 sps:$4 sm:$0xff]   ;;  %v9540_v49 = vld [vmem:[%s10632_s29 + $0x180] ss:$8 sps:$4 sm:$0xff]   ;;  %v9549_v50 = vld [vmem:[%s10632_s29 + $0x274] ss:$8 sps:$4 sm:$0xff]  }
 0x10c   : > { %2305 = vmatpush1.bf16.msra.mxu0 %v9479_v6  ;;  %v9543_v33 = vld [vmem:[%s12663_s3 + $0x4] ss:$24 sps:$4 sm:$0xff]   ;;  %v9541_v52 = vld [vmem:[%s12663_s3] ss:$24 sps:$4 sm:$0xff]   ;;  %s12664_s12 = sld [smem:[#allocation15_spill]]  ;;  %vm4009_vm2 = vcmask 130048  }
 0x10d   : > { %2348 = vmatpush1.bf16.msra.mxu1 %v9480_v7  ;;  %2306 = vmatprep.subr.bf16.mxu0 %v9481_v8  ;;  %v9546_v35 = vld [vmem:[%s12663_s3 + $0xc] ss:$24 sps:$4 sm:$0xff]   ;;  %v9552_v51 = vld [vmem:[%s10637_s15 + $0x74] ss:$8 sps:$4 sm:$0xff]   ;;  %v9544_v53 = vld [vmem:[%s12663_s3 + $0x8] ss:$24 sps:$4 sm:$0xff]  }
 0x10e   : > { %2349 = vmatprep.subr.bf16.mxu1 %v9483_v9  ;;  %2326 = vmatprep.mubr.bf16.mxu0 %v9543_v33  ;;  %v9547_v54 = vld [vmem:[%s10632_s29 + $0x270] ss:$8 sps:$4 sm:$0xff]   ;;  %v9555_v56 = vld [vmem:[%s10632_s29 + $0x264] ss:$8 sps:$4 sm:$0xff]   ;;  %v9553_v58 = vld [vmem:[%s10632_s29 + $0x260] ss:$8 sps:$4 sm:$0xff]  }
 0x10f   : > { %2369 = vmatprep.mubr.bf16.mxu1 %v9546_v35  ;;  %v9550_v55 = vld [vmem:[%s10637_s15 + $0x70] ss:$8 sps:$4 sm:$0xff]   ;;  %v9558_v57 = vld [vmem:[%s10637_s15 + $0x64] ss:$8 sps:$4 sm:$0xff]   ;;  %v9556_v59 = vld [vmem:[%s10637_s15 + $0x60] ss:$8 sps:$4 sm:$0xff]  }
 0x110   : > { %2307 = vmatpush1.bf16.msra.mxu0 %v9485_v10  ;;  %v9561_v60 = vld [vmem:[%s10632_s29 + $0x254] ss:$8 sps:$4 sm:$0xff]   ;;  %v9559_v62 = vld [vmem:[%s10632_s29 + $0x250] ss:$8 sps:$4 sm:$0xff]   ;;  %v9567_v0 = vld [vmem:[%s10632_s29 + $0x244] ss:$8 sps:$4 sm:$0xff]  }
 0x111   : > { %2350 = vmatpush1.bf16.msra.mxu1 %v9486_v11  ;;  %2308 = vmatprep.subr.bf16.mxu0 %v9487_v12  ;;  %v9564_v61 = vld [vmem:[%s10637_s15 + $0x54] ss:$8 sps:$4 sm:$0xff]   ;;  %v9562_v63 = vld [vmem:[%s10637_s15 + $0x50] ss:$8 sps:$4 sm:$0xff]   ;;  %v9570_v1 = vld [vmem:[%s10637_s15 + $0x44] ss:$8 sps:$4 sm:$0xff]  }
 0x112   : > { %2351 = vmatprep.subr.bf16.mxu1 %v9489_v13  ;;  %v9565_v2 = vld [vmem:[%s10632_s29 + $0x240] ss:$8 sps:$4 sm:$0xff]   ;;  %v9573_v4 = vld [vmem:[%s10632_s29 + $0x234] ss:$8 sps:$4 sm:$0xff]   ;;  %v9571_v6 = vld [vmem:[%s10632_s29 + $0x230] ss:$8 sps:$4 sm:$0xff]  }
 0x113   : > { %v9568_v3 = vld [vmem:[%s10637_s15 + $0x40] ss:$8 sps:$4 sm:$0xff]   ;;  %v9576_v5 = vld [vmem:[%s10637_s15 + $0x34] ss:$8 sps:$4 sm:$0xff]   ;;  %v9574_v7 = vld [vmem:[%s10637_s15 + $0x30] ss:$8 sps:$4 sm:$0xff]  }
 0x114   : > { %2309 = vmatpush1.bf16.msra.mxu0 %v9491_v14  ;;  %v9579_v8 = vld [vmem:[%s10632_s29 + $0x224] ss:$8 sps:$4 sm:$0xff]   ;;  %v9577_v10 = vld [vmem:[%s10632_s29 + $0x220] ss:$8 sps:$4 sm:$0xff]   ;;  %v9585_v12 = vld [vmem:[%s10632_s29 + $0x214] ss:$8 sps:$4 sm:$0xff]  }
 0x115   : > { %2352 = vmatpush1.bf16.msra.mxu1 %v9492_v15  ;;  %2310 = vmatprep.subr.bf16.mxu0 %v9493_v16  ;;  %v9582_v9 = vld [vmem:[%s10637_s15 + $0x24] ss:$8 sps:$4 sm:$0xff]   ;;  %v9580_v11 = vld [vmem:[%s10637_s15 + $0x20] ss:$8 sps:$4 sm:$0xff]   ;;  %v9588_v13 = vld [vmem:[%s10637_s15 + $0x14] ss:$8 sps:$4 sm:$0xff]  }
 0x116   : > { %2353 = vmatprep.subr.bf16.mxu1 %v9495_v17  ;;  %v9583_v14 = vld [vmem:[%s10632_s29 + $0x210] ss:$8 sps:$4 sm:$0xff]   ;;  %v9591_v16 = vld [vmem:[%s10632_s29 + $0x204] ss:$8 sps:$4 sm:$0xff]   ;;  %s12665_s27 = sld [smem:[#allocation16_spill]] }
 0x117   : > { %v9586_v15 = vld [vmem:[%s10637_s15 + $0x10] ss:$8 sps:$4 sm:$0xff]   ;;  %v9594_v17 = vld [vmem:[%s10637_s15 + $0x4] ss:$8 sps:$4 sm:$0xff]  }
 0x118   : > { %2311 = vmatpush2.bf16.msra.mxu0 %v9497_v18  ;;  %v9645_v18 = vld [vmem:[%s12663_s3 + $0x14] ss:$24 sps:$4 sm:$0xff]   ;;  %v9610_v33 = vld [vmem:[%s10637_s15 + $0xd0] ss:$8 sps:$4 sm:$0xff]  }
 0x119   : > { %2354 = vmatpush2.bf16.msra.mxu1 %v9498_v19  ;;  %2312 = vmatprep.subr.bf16.mxu0 %v9499_v20  ;;  %v9648_v19 = vld [vmem:[%s12664_s12 + $0x4] ss:$24 sps:$4 sm:$0xff]   ;;  %v9589_v20 = vld [vmem:[%s10632_s29 + $0x200] ss:$8 sps:$4 sm:$0xff]  }
 0x11a   : > { %2355 = vmatprep.subr.bf16.mxu1 %v9501_v21  ;;  %v9592_v21 = vld [vmem:[%s10637_s15] ss:$8 sps:$4 sm:$0xff]   ;;  %v9618_v35 = vld [vmem:[%s10637_s15 + $0xc4] ss:$8 sps:$4 sm:$0xff]  }
 0x11c   : > { %2313 = vmatpush2.bf16.msra.mxu0 %v9503_v22  ;;  %v9597_v22 = vld [vmem:[%s10632_s29 + $0x2f4] ss:$8 sps:$4 sm:$0xff]  }
 0x11d   : > { %2356 = vmatpush2.bf16.msra.mxu1 %v9504_v23  ;;  %2314 = vmatprep.subr.bf16.mxu0 %v9505_v24  ;;  %v9600_v23 = vld [vmem:[%s10637_s15 + $0xf4] ss:$8 sps:$4 sm:$0xff]   ;;  %v9595_v24 = vld [vmem:[%s10632_s29 + $0x2f0] ss:$8 sps:$4 sm:$0xff]  }
 0x11e   : > { %2357 = vmatprep.subr.bf16.mxu1 %v9507_v25  ;;  %v9598_v25 = vld [vmem:[%s10637_s15 + $0xf0] ss:$8 sps:$4 sm:$0xff]  }
 0x120   : > { %2315 = vmatpush2.bf16.msra.mxu0 %v9509_v26  ;;  %v9603_v26 = vld [vmem:[%s10632_s29 + $0x2e4] ss:$8 sps:$4 sm:$0xff]  }
 0x121   : > { %2358 = vmatpush2.bf16.msra.mxu1 %v9510_v27  ;;  %2316 = vmatprep.subr.bf16.mxu0 %v9511_v28  ;;  %v9606_v27 = vld [vmem:[%s10637_s15 + $0xe4] ss:$8 sps:$4 sm:$0xff]   ;;  %v9601_v28 = vld [vmem:[%s10632_s29 + $0x2e0] ss:$8 sps:$4 sm:$0xff]  }
 0x122   : > { %2359 = vmatprep.subr.bf16.mxu1 %v9513_v29  ;;  %v9604_v29 = vld [vmem:[%s10637_s15 + $0xe0] ss:$8 sps:$4 sm:$0xff]  }
 0x124   : > { %2317 = vmatpush2.bf16.msra.mxu0 %v9515_v30  ;;  %v9609_v30 = vld [vmem:[%s10632_s29 + $0x2d4] ss:$8 sps:$4 sm:$0xff]  }
 0x125   : > { %2360 = vmatpush2.bf16.msra.mxu1 %v9516_v31  ;;  %2318 = vmatprep.subr.bf16.mxu0 %v9517_v32  ;;  %v9612_v31 = vld [vmem:[%s10637_s15 + $0xd4] ss:$8 sps:$4 sm:$0xff]   ;;  %v9607_v32 = vld [vmem:[%s10632_s29 + $0x2d0] ss:$8 sps:$4 sm:$0xff]  }
 0x126   : > { %2361 = vmatprep.subr.bf16.mxu1 %v9519_v34  ;;  %v9615_v34 = vld [vmem:[%s10632_s29 + $0x2c4] ss:$8 sps:$4 sm:$0xff]  }
 0x128   : > { %2319 = vmatpush2.bf16.msra.mxu0 %v9521_v36  ;;  %v9613_v36 = vld [vmem:[%s10632_s29 + $0x2c0] ss:$8 sps:$4 sm:$0xff]  }
 0x129   : > { %2362 = vmatpush2.bf16.msra.mxu1 %v9522_v37  ;;  %2320 = vmatprep.subr.bf16.mxu0 %v9523_v38  ;;  %v9616_v37 = vld [vmem:[%s10637_s15 + $0xc0] ss:$8 sps:$4 sm:$0xff]   ;;  %v9621_v38 = vld [vmem:[%s10632_s29 + $0x2b4] ss:$8 sps:$4 sm:$0xff]  }
 0x12a   : > { %2363 = vmatprep.subr.bf16.mxu1 %v9525_v39  ;;  %v9624_v39 = vld [vmem:[%s10637_s15 + $0xb4] ss:$8 sps:$4 sm:$0xff]  }
 0x12c   : > { %2321 = vmatpush2.bf16.msra.mxu0 %v9527_v40  ;;  %v9619_v40 = vld [vmem:[%s10632_s29 + $0x2b0] ss:$8 sps:$4 sm:$0xff]  }
 0x12d   : > { %2364 = vmatpush2.bf16.msra.mxu1 %v9528_v41  ;;  %2322 = vmatprep.subr.bf16.mxu0 %v9529_v42  ;;  %v9622_v41 = vld [vmem:[%s10637_s15 + $0xb0] ss:$8 sps:$4 sm:$0xff]   ;;  %v9627_v42 = vld [vmem:[%s10632_s29 + $0x2a4] ss:$8 sps:$4 sm:$0xff]  }
 0x12e   : > { %2365 = vmatprep.subr.bf16.mxu1 %v9531_v43  ;;  %v9630_v43 = vld [vmem:[%s10637_s15 + $0xa4] ss:$8 sps:$4 sm:$0xff]  }
 0x130   : > { %2323 = vmatpush2.bf16.msra.mxu0 %v9533_v44  ;;  %v9625_v44 = vld [vmem:[%s10632_s29 + $0x2a0] ss:$8 sps:$4 sm:$0xff]  }
 0x131   : > { %2366 = vmatpush2.bf16.msra.mxu1 %v9534_v45  ;;  %2324 = vmatprep.subr.bf16.mxu0 %v9535_v46  ;;  %v9628_v45 = vld [vmem:[%s10637_s15 + $0xa0] ss:$8 sps:$4 sm:$0xff]   ;;  %v9633_v46 = vld [vmem:[%s10632_s29 + $0x294] ss:$8 sps:$4 sm:$0xff]  }
 0x132   : > { %2367 = vmatprep.subr.bf16.mxu1 %v9537_v47  ;;  %v9636_v47 = vld [vmem:[%s10637_s15 + $0x94] ss:$8 sps:$4 sm:$0xff]  }
 0x134   : > { %2325 = vmatpush2.bf16.msra.mxu0 %v9539_v48  ;;  %v9631_v48 = vld [vmem:[%s10632_s29 + $0x290] ss:$8 sps:$4 sm:$0xff]  }
 0x135   : > { %2368 = vmatpush2.bf16.msra.mxu1 %v9540_v49  ;;  %2380 = vmatprep.subr.bf16.mxu0 %v9549_v50  ;;  %v9634_v49 = vld [vmem:[%s10637_s15 + $0x90] ss:$8 sps:$4 sm:$0xff]   ;;  %v9639_v50 = vld [vmem:[%s10632_s29 + $0x284] ss:$8 sps:$4 sm:$0xff]  }
 0x136   : > { %3041 = vmatprep.subr.bf16.mxu1 %v9552_v51  ;;  %v9642_v51 = vld [vmem:[%s10637_s15 + $0x84] ss:$8 sps:$4 sm:$0xff]  }
 0x137   : > { %2327 = vmatmul.mubr.bf16.vlgmr.msra.gmra.mxu0 %v9541_v52  ;;  %v9637_v52 = vld [vmem:[%s10632_s29 + $0x280] ss:$8 sps:$4 sm:$0xff]   ;;  %s12667_s29 = scalar_lea.vmem %s12634_s7, %s10619_s1 }
 0x138   : > { %2370 = vmatmul.mubr.bf16.vlgmr.msra.gmra.mxu1 %v9544_v53  ;;  %2381 = vmatpush1.bf16.msra.mxu0 %v9547_v54  ;;  %v9640_v53 = vld [vmem:[%s10637_s15 + $0x80] ss:$8 sps:$4 sm:$0xff]   ;;  %v9651_v54 = vld [vmem:[%s10637_s15 + $0x174] ss:$8 sps:$4 sm:$0xff]  }
 0x139   : > { %3042 = vmatpush1.bf16.msra.mxu1 %v9550_v55  ;;  %2382 = vmatprep.subr.bf16.mxu0 %v9555_v56  ;;  %v9654_v55 = vld [vmem:[%s10637_s15 + $0x274] ss:$8 sps:$4 sm:$0xff]   ;;  %v9643_v56 = vld [vmem:[%s12663_s3 + $0x10] ss:$24 sps:$4 sm:$0xff]  }
 0x13a   : > { %3043 = vmatprep.subr.bf16.mxu1 %v9558_v57  ;;  %2412 = vmatprep.mubr.bf16.mxu0 %v9645_v18  ;;  %v9646_v57 = vld [vmem:[%s12664_s12] ss:$24 sps:$4 sm:$0xff]   ;;  %v9687_v18 = vld [vmem:[%s10637_s15 + $0x114] ss:$8 sps:$4 sm:$0xff]  }
 0x13b   : > { %3073 = vmatprep.mubr.bf16.mxu1 %v9648_v19  ;;  %v9690_v19 = vld [vmem:[%s10637_s15 + $0x214] ss:$8 sps:$4 sm:$0xff]  }
 0x13c   : > { %2383 = vmatpush1.bf16.msra.mxu0 %v9553_v58  ;;  %v9649_v58 = vld [vmem:[%s10637_s15 + $0x170] ss:$8 sps:$4 sm:$0xff]  }
 0x13d   : > { %3044 = vmatpush1.bf16.msra.mxu1 %v9556_v59  ;;  %2384 = vmatprep.subr.bf16.mxu0 %v9561_v60  ;;  %v9652_v59 = vld [vmem:[%s10637_s15 + $0x270] ss:$8 sps:$4 sm:$0xff]   ;;  %v9657_v60 = vld [vmem:[%s10637_s15 + $0x164] ss:$8 sps:$4 sm:$0xff]  }
 0x13e   : > { %3045 = vmatprep.subr.bf16.mxu1 %v9564_v61  ;;  %v9660_v61 = vld [vmem:[%s10637_s15 + $0x264] ss:$8 sps:$4 sm:$0xff]  }
 0x140   : > { %2385 = vmatpush1.bf16.msra.mxu0 %v9559_v62  ;;  %v9655_v62 = vld [vmem:[%s10637_s15 + $0x160] ss:$8 sps:$4 sm:$0xff]  }
 0x141   : > { %3046 = vmatpush1.bf16.msra.mxu1 %v9562_v63  ;;  %2386 = vmatprep.subr.bf16.mxu0 %v9567_v0  ;;  %v9658_v63 = vld [vmem:[%s10637_s15 + $0x260] ss:$8 sps:$4 sm:$0xff]   ;;  %v9663_v0 = vld [vmem:[%s10637_s15 + $0x154] ss:$8 sps:$4 sm:$0xff]  }
 0x142   : > { %3047 = vmatprep.subr.bf16.mxu1 %v9570_v1  ;;  %v9666_v1 = vld [vmem:[%s10637_s15 + $0x254] ss:$8 sps:$4 sm:$0xff]  }
 0x144   : > { %2387 = vmatpush1.bf16.msra.mxu0 %v9565_v2  ;;  %v9747_v2 = vld [vmem:[%s12664_s12 + $0xc] ss:$24 sps:$4 sm:$0xff]  }
 0x145   : > { %3048 = vmatpush1.bf16.msra.mxu1 %v9568_v3  ;;  %2388 = vmatprep.subr.bf16.mxu0 %v9573_v4  ;;  %v9661_v3 = vld [vmem:[%s10637_s15 + $0x150] ss:$8 sps:$4 sm:$0xff]   ;;  %v9750_v4 = vld [vmem:[%s12664_s12 + $0x14] ss:$24 sps:$4 sm:$0xff]  }
 0x146   : > { %3049 = vmatprep.subr.bf16.mxu1 %v9576_v5  ;;  %v9664_v5 = vld [vmem:[%s10637_s15 + $0x250] ss:$8 sps:$4 sm:$0xff]  }
 0x148   : > { %2389 = vmatpush1.bf16.msra.mxu0 %v9571_v6  ;;  %v9669_v6 = vld [vmem:[%s10637_s15 + $0x144] ss:$8 sps:$4 sm:$0xff]  }
 0x149   : > { %3050 = vmatpush1.bf16.msra.mxu1 %v9574_v7  ;;  %2390 = vmatprep.subr.bf16.mxu0 %v9579_v8  ;;  %v9672_v7 = vld [vmem:[%s10637_s15 + $0x244] ss:$8 sps:$4 sm:$0xff]   ;;  %v9667_v8 = vld [vmem:[%s10637_s15 + $0x140] ss:$8 sps:$4 sm:$0xff]  }
 0x14a   : > { %3051 = vmatprep.subr.bf16.mxu1 %v9582_v9  ;;  %v9670_v9 = vld [vmem:[%s10637_s15 + $0x240] ss:$8 sps:$4 sm:$0xff]  }
 0x14c   : > { %2391 = vmatpush1.bf16.msra.mxu0 %v9577_v10  ;;  %v9675_v10 = vld [vmem:[%s10637_s15 + $0x134] ss:$8 sps:$4 sm:$0xff]  }
 0x14d   : > { %3052 = vmatpush1.bf16.msra.mxu1 %v9580_v11  ;;  %2392 = vmatprep.subr.bf16.mxu0 %v9585_v12  ;;  %v9678_v11 = vld [vmem:[%s10637_s15 + $0x234] ss:$8 sps:$4 sm:$0xff]   ;;  %v9673_v12 = vld [vmem:[%s10637_s15 + $0x130] ss:$8 sps:$4 sm:$0xff]  }
 0x14e   : > { %3053 = vmatprep.subr.bf16.mxu1 %v9588_v13  ;;  %v9676_v13 = vld [vmem:[%s10637_s15 + $0x230] ss:$8 sps:$4 sm:$0xff]  }
 0x150   : > { %2393 = vmatpush1.bf16.msra.mxu0 %v9583_v14  ;;  %v9681_v14 = vld [vmem:[%s10637_s15 + $0x124] ss:$8 sps:$4 sm:$0xff]  }
 0x151   : > { %3054 = vmatpush1.bf16.msra.mxu1 %v9586_v15  ;;  %2394 = vmatprep.subr.bf16.mxu0 %v9591_v16  ;;  %v9684_v15 = vld [vmem:[%s10637_s15 + $0x224] ss:$8 sps:$4 sm:$0xff]   ;;  %v9679_v16 = vld [vmem:[%s10637_s15 + $0x120] ss:$8 sps:$4 sm:$0xff]  }
 0x152   : > { %3055 = vmatprep.subr.bf16.mxu1 %v9594_v17  ;;  %v9682_v17 = vld [vmem:[%s10637_s15 + $0x220] ss:$8 sps:$4 sm:$0xff]  }
 0x154   : > { %2395 = vmatpush1.bf16.msra.mxu0 %v9589_v20  ;;  %v9685_v20 = vld [vmem:[%s10637_s15 + $0x110] ss:$8 sps:$4 sm:$0xff]  }
 0x155   : > { %3056 = vmatpush1.bf16.msra.mxu1 %v9592_v21  ;;  %2396 = vmatprep.subr.bf16.mxu0 %v9597_v22  ;;  %v9688_v21 = vld [vmem:[%s10637_s15 + $0x210] ss:$8 sps:$4 sm:$0xff]   ;;  %v9693_v22 = vld [vmem:[%s10637_s15 + $0x104] ss:$8 sps:$4 sm:$0xff]  }
 0x156   : > { %3057 = vmatprep.subr.bf16.mxu1 %v9600_v23  ;;  %v9696_v23 = vld [vmem:[%s10637_s15 + $0x204] ss:$8 sps:$4 sm:$0xff]  }
 0x158   : > { %2397 = vmatpush2.bf16.msra.mxu0 %v9595_v24  ;;  %v9691_v24 = vld [vmem:[%s10637_s15 + $0x100] ss:$8 sps:$4 sm:$0xff]  }
 0x159   : > { %3058 = vmatpush2.bf16.msra.mxu1 %v9598_v25  ;;  %2398 = vmatprep.subr.bf16.mxu0 %v9603_v26  ;;  %v9694_v25 = vld [vmem:[%s10637_s15 + $0x200] ss:$8 sps:$4 sm:$0xff]   ;;  %v9699_v26 = vld [vmem:[%s10637_s15 + $0x1f4] ss:$8 sps:$4 sm:$0xff]  }
 0x15a   : > { %3059 = vmatprep.subr.bf16.mxu1 %v9606_v27  ;;  %v9702_v27 = vld [vmem:[%s10637_s15 + $0x2f4] ss:$8 sps:$4 sm:$0xff]  }
 0x15c   : > { %2399 = vmatpush2.bf16.msra.mxu0 %v9601_v28  ;;  %v9697_v28 = vld [vmem:[%s10637_s15 + $0x1f0] ss:$8 sps:$4 sm:$0xff]  }
 0x15d   : > { %3060 = vmatpush2.bf16.msra.mxu1 %v9604_v29  ;;  %2400 = vmatprep.subr.bf16.mxu0 %v9609_v30  ;;  %v9700_v29 = vld [vmem:[%s10637_s15 + $0x2f0] ss:$8 sps:$4 sm:$0xff]   ;;  %v9705_v30 = vld [vmem:[%s10637_s15 + $0x1e4] ss:$8 sps:$4 sm:$0xff]  }
 0x15e   : > { %3061 = vmatprep.subr.bf16.mxu1 %v9612_v31  ;;  %v9708_v31 = vld [vmem:[%s10637_s15 + $0x2e4] ss:$8 sps:$4 sm:$0xff]  }
 0x160   : > { %2401 = vmatpush2.bf16.msra.mxu0 %v9607_v32  ;;  %v9703_v32 = vld [vmem:[%s10637_s15 + $0x1e0] ss:$8 sps:$4 sm:$0xff]  }
 0x161   : > { %3062 = vmatpush2.bf16.msra.mxu1 %v9610_v33  ;;  %2402 = vmatprep.subr.bf16.mxu0 %v9615_v34  ;;  %v9706_v33 = vld [vmem:[%s10637_s15 + $0x2e0] ss:$8 sps:$4 sm:$0xff]   ;;  %v9711_v34 = vld [vmem:[%s10637_s15 + $0x1d4] ss:$8 sps:$4 sm:$0xff]  }
 0x162   : > { %3063 = vmatprep.subr.bf16.mxu1 %v9618_v35  ;;  %v9714_v35 = vld [vmem:[%s10637_s15 + $0x2d4] ss:$8 sps:$4 sm:$0xff]  }
 0x164   : > { %2403 = vmatpush2.bf16.msra.mxu0 %v9613_v36  ;;  %v9709_v36 = vld [vmem:[%s10637_s15 + $0x1d0] ss:$8 sps:$4 sm:$0xff]  }
 0x165   : > { %3064 = vmatpush2.bf16.msra.mxu1 %v9616_v37  ;;  %2404 = vmatprep.subr.bf16.mxu0 %v9621_v38  ;;  %v9712_v37 = vld [vmem:[%s10637_s15 + $0x2d0] ss:$8 sps:$4 sm:$0xff]   ;;  %v9717_v38 = vld [vmem:[%s10637_s15 + $0x1c4] ss:$8 sps:$4 sm:$0xff]  }
 0x166   : > { %3065 = vmatprep.subr.bf16.mxu1 %v9624_v39  ;;  %v9720_v39 = vld [vmem:[%s10637_s15 + $0x2c4] ss:$8 sps:$4 sm:$0xff]  }
 0x168   : > { %2405 = vmatpush2.bf16.msra.mxu0 %v9619_v40  ;;  %v9715_v40 = vld [vmem:[%s10637_s15 + $0x1c0] ss:$8 sps:$4 sm:$0xff]  }
 0x169   : > { %3066 = vmatpush2.bf16.msra.mxu1 %v9622_v41  ;;  %2406 = vmatprep.subr.bf16.mxu0 %v9627_v42  ;;  %v9718_v41 = vld [vmem:[%s10637_s15 + $0x2c0] ss:$8 sps:$4 sm:$0xff]   ;;  %v9723_v42 = vld [vmem:[%s10637_s15 + $0x1b4] ss:$8 sps:$4 sm:$0xff]  }
 0x16a   : > { %3067 = vmatprep.subr.bf16.mxu1 %v9630_v43  ;;  %v9726_v43 = vld [vmem:[%s10637_s15 + $0x2b4] ss:$8 sps:$4 sm:$0xff]  }
 0x16c   : > { %2407 = vmatpush2.bf16.msra.mxu0 %v9625_v44  ;;  %v9721_v44 = vld [vmem:[%s10637_s15 + $0x1b0] ss:$8 sps:$4 sm:$0xff]  }
 0x16d   : > { %3068 = vmatpush2.bf16.msra.mxu1 %v9628_v45  ;;  %2408 = vmatprep.subr.bf16.mxu0 %v9633_v46  ;;  %v9724_v45 = vld [vmem:[%s10637_s15 + $0x2b0] ss:$8 sps:$4 sm:$0xff]   ;;  %v9729_v46 = vld [vmem:[%s10637_s15 + $0x1a4] ss:$8 sps:$4 sm:$0xff]  }
 0x16e   : > { %3069 = vmatprep.subr.bf16.mxu1 %v9636_v47  ;;  %v9732_v47 = vld [vmem:[%s10637_s15 + $0x2a4] ss:$8 sps:$4 sm:$0xff]  }
 0x170   : > { %2409 = vmatpush2.bf16.msra.mxu0 %v9631_v48  ;;  %v9727_v48 = vld [vmem:[%s10637_s15 + $0x1a0] ss:$8 sps:$4 sm:$0xff]  }
 0x171   : > { %3070 = vmatpush2.bf16.msra.mxu1 %v9634_v49  ;;  %2410 = vmatprep.subr.bf16.mxu0 %v9639_v50  ;;  %v9730_v49 = vld [vmem:[%s10637_s15 + $0x2a0] ss:$8 sps:$4 sm:$0xff]   ;;  %v9735_v50 = vld [vmem:[%s10637_s15 + $0x194] ss:$8 sps:$4 sm:$0xff]  }
 0x172   : > { %3071 = vmatprep.subr.bf16.mxu1 %v9642_v51  ;;  %v9738_v51 = vld [vmem:[%s10637_s15 + $0x294] ss:$8 sps:$4 sm:$0xff]  }
 0x174   : > { %2411 = vmatpush2.bf16.msra.mxu0 %v9637_v52  ;;  %v9733_v52 = vld [vmem:[%s10637_s15 + $0x190] ss:$8 sps:$4 sm:$0xff]  }
 0x175   : > { %3072 = vmatpush2.bf16.msra.mxu1 %v9640_v53  ;;  %3084 = vmatprep.subr.bf16.mxu0 %v9651_v54  ;;  %v9736_v53 = vld [vmem:[%s10637_s15 + $0x290] ss:$8 sps:$4 sm:$0xff]   ;;  %v9741_v54 = vld [vmem:[%s10637_s15 + $0x184] ss:$8 sps:$4 sm:$0xff]  }
 0x176   : > { %3127 = vmatprep.subr.bf16.mxu1 %v9654_v55  ;;  %v9744_v55 = vld [vmem:[%s10637_s15 + $0x284] ss:$8 sps:$4 sm:$0xff]  }
 0x177   : > { %2413 = vmatmul.mubr.bf16.vlgmr.msra.gmra.mxu0 %v9643_v56  ;;  %v9739_v56 = vld [vmem:[%s10637_s15 + $0x180] ss:$8 sps:$4 sm:$0xff]  }
 0x178   : > { %3074 = vmatmul.mubr.bf16.vlgmr.msra.gmra.mxu1 %v9646_v57  ;;  %3085 = vmatpush1.bf16.msra.mxu0 %v9649_v58  ;;  %v9742_v57 = vld [vmem:[%s10637_s15 + $0x280] ss:$8 sps:$4 sm:$0xff]   ;;  %v9753_v58 = vld [vmem:[%s10642_s22 + $0x174] ss:$8 sps:$4 sm:$0xff]  }
 0x179   : > { %3128 = vmatpush1.bf16.msra.mxu1 %v9652_v59  ;;  %3086 = vmatprep.subr.bf16.mxu0 %v9657_v60  ;;  %v9756_v59 = vld [vmem:[%s10642_s22 + $0x74] ss:$8 sps:$4 sm:$0xff]   ;;  %v9745_v60 = vld [vmem:[%s12664_s12 + $0x8] ss:$24 sps:$4 sm:$0xff]  }
 0x17a   : > { %3129 = vmatprep.subr.bf16.mxu1 %v9660_v61  ;;  %3116 = vmatprep.mubr.bf16.mxu0 %v9747_v2  ;;  %v9748_v61 = vld [vmem:[%s12664_s12 + $0x10] ss:$24 sps:$4 sm:$0xff]  }
 0x17b   : > { %3159 = vmatprep.mubr.bf16.mxu1 %v9750_v4  ;;  %v9757_v2 = vld [vmem:[%s10642_s22 + $0x160] ss:$8 sps:$4 sm:$0xff]   ;;  %v9849_v4 = vld [vmem:[%s12665_s27 + $0xc] ss:$24 sps:$4 sm:$0xff]  }
 0x17c   : > { %3087 = vmatpush1.bf16.msra.mxu0 %v9655_v62  ;;  %v9751_v62 = vld [vmem:[%s10642_s22 + $0x170] ss:$8 sps:$4 sm:$0xff]  }
 0x17d   : > { %3130 = vmatpush1.bf16.msra.mxu1 %v9658_v63  ;;  %3088 = vmatprep.subr.bf16.mxu0 %v9663_v0  ;;  %v9754_v63 = vld [vmem:[%s10642_s22 + $0x70] ss:$8 sps:$4 sm:$0xff]   ;;  %v9759_v0 = vld [vmem:[%s10642_s22 + $0x164] ss:$8 sps:$4 sm:$0xff]  }
 0x17e   : > { %3131 = vmatprep.subr.bf16.mxu1 %v9666_v1  ;;  %v9762_v1 = vld [vmem:[%s10642_s22 + $0x64] ss:$8 sps:$4 sm:$0xff]  }
 0x180   : > { %3089 = vmatpush1.bf16.msra.mxu0 %v9661_v3  ;;  %v9760_v3 = vld [vmem:[%s10642_s22 + $0x60] ss:$8 sps:$4 sm:$0xff]  }
 0x181   : > { %3132 = vmatpush1.bf16.msra.mxu1 %v9664_v5  ;;  %3090 = vmatprep.subr.bf16.mxu0 %v9669_v6  ;;  %v9765_v5 = vld [vmem:[%s10642_s22 + $0x154] ss:$8 sps:$4 sm:$0xff]  }
 0x182   : > { %3133 = vmatprep.subr.bf16.mxu1 %v9672_v7  ;;  %v9768_v6 = vld [vmem:[%s10642_s22 + $0x54] ss:$8 sps:$4 sm:$0xff]  }
 0x183   : > { %v9852_v7 = vld [vmem:[%s12665_s27 + $0x4] ss:$24 sps:$4 sm:$0xff]  }
 0x184   : > { %3091 = vmatpush1.bf16.msra.mxu0 %v9667_v8  ;;  %v9763_v8 = vld [vmem:[%s10642_s22 + $0x150] ss:$8 sps:$4 sm:$0xff]  }
 0x185   : > { %3134 = vmatpush1.bf16.msra.mxu1 %v9670_v9  ;;  %3092 = vmatprep.subr.bf16.mxu0 %v9675_v10  ;;  %v9766_v9 = vld [vmem:[%s10642_s22 + $0x50] ss:$8 sps:$4 sm:$0xff]   ;;  %v9771_v10 = vld [vmem:[%s10642_s22 + $0x144] ss:$8 sps:$4 sm:$0xff]  }
 0x186   : > { %3135 = vmatprep.subr.bf16.mxu1 %v9678_v11  ;;  %v9774_v11 = vld [vmem:[%s10642_s22 + $0x44] ss:$8 sps:$4 sm:$0xff]  }
 0x188   : > { %3093 = vmatpush1.bf16.msra.mxu0 %v9673_v12  ;;  %v9769_v12 = vld [vmem:[%s10642_s22 + $0x140] ss:$8 sps:$4 sm:$0xff]  }
 0x189   : > { %3136 = vmatpush1.bf16.msra.mxu1 %v9676_v13  ;;  %3094 = vmatprep.subr.bf16.mxu0 %v9681_v14  ;;  %v9772_v13 = vld [vmem:[%s10642_s22 + $0x40] ss:$8 sps:$4 sm:$0xff]   ;;  %v9777_v14 = vld [vmem:[%s10642_s22 + $0x134] ss:$8 sps:$4 sm:$0xff]  }
 0x18a   : > { %3137 = vmatprep.subr.bf16.mxu1 %v9684_v15  ;;  %v9780_v15 = vld [vmem:[%s10642_s22 + $0x34] ss:$8 sps:$4 sm:$0xff]  }
 0x18c   : > { %3095 = vmatpush1.bf16.msra.mxu0 %v9679_v16  ;;  %v9775_v16 = vld [vmem:[%s10642_s22 + $0x130] ss:$8 sps:$4 sm:$0xff]  }
 0x18d   : > { %3138 = vmatpush1.bf16.msra.mxu1 %v9682_v17  ;;  %3096 = vmatprep.subr.bf16.mxu0 %v9687_v18  ;;  %v9778_v17 = vld [vmem:[%s10642_s22 + $0x30] ss:$8 sps:$4 sm:$0xff]   ;;  %v9783_v18 = vld [vmem:[%s10642_s22 + $0x124] ss:$8 sps:$4 sm:$0xff]  }
 0x18e   : > { %3139 = vmatprep.subr.bf16.mxu1 %v9690_v19  ;;  %v9786_v19 = vld [vmem:[%s10642_s22 + $0x24] ss:$8 sps:$4 sm:$0xff]  }
 0x190   : > { %3097 = vmatpush1.bf16.msra.mxu0 %v9685_v20  ;;  %v9781_v20 = vld [vmem:[%s10642_s22 + $0x120] ss:$8 sps:$4 sm:$0xff]  }
 0x191   : > { %3140 = vmatpush1.bf16.msra.mxu1 %v9688_v21  ;;  %3098 = vmatprep.subr.bf16.mxu0 %v9693_v22  ;;  %v9784_v21 = vld [vmem:[%s10642_s22 + $0x20] ss:$8 sps:$4 sm:$0xff]   ;;  %v9789_v22 = vld [vmem:[%s10642_s22 + $0x114] ss:$8 sps:$4 sm:$0xff]  }
 0x192   : > { %3141 = vmatprep.subr.bf16.mxu1 %v9696_v23  ;;  %v9792_v23 = vld [vmem:[%s10642_s22 + $0x14] ss:$8 sps:$4 sm:$0xff]  }
 0x194   : > { %3099 = vmatpush1.bf16.msra.mxu0 %v9691_v24  ;;  %v9787_v24 = vld [vmem:[%s10642_s22 + $0x110] ss:$8 sps:$4 sm:$0xff]  }
 0x195   : > { %3142 = vmatpush1.bf16.msra.mxu1 %v9694_v25  ;;  %3100 = vmatprep.subr.bf16.mxu0 %v9699_v26  ;;  %v9790_v25 = vld [vmem:[%s10642_s22 + $0x10] ss:$8 sps:$4 sm:$0xff]   ;;  %v9795_v26 = vld [vmem:[%s10642_s22 + $0x104] ss:$8 sps:$4 sm:$0xff]  }
 0x196   : > { %3143 = vmatprep.subr.bf16.mxu1 %v9702_v27  ;;  %v9798_v27 = vld [vmem:[%s10642_s22 + $0x4] ss:$8 sps:$4 sm:$0xff]  }
 0x198   : > { %3101 = vmatpush2.bf16.msra.mxu0 %v9697_v28  ;;  %v9793_v28 = vld [vmem:[%s10642_s22 + $0x100] ss:$8 sps:$4 sm:$0xff]  }
 0x199   : > { %3144 = vmatpush2.bf16.msra.mxu1 %v9700_v29  ;;  %3102 = vmatprep.subr.bf16.mxu0 %v9705_v30  ;;  %v9796_v29 = vld [vmem:[%s10642_s22] ss:$8 sps:$4 sm:$0xff]   ;;  %v9801_v30 = vld [vmem:[%s10642_s22 + $0x1f4] ss:$8 sps:$4 sm:$0xff]  }
 0x19a   : > { %3145 = vmatprep.subr.bf16.mxu1 %v9708_v31  ;;  %v9804_v31 = vld [vmem:[%s10642_s22 + $0xf4] ss:$8 sps:$4 sm:$0xff]  }
 0x19c   : > { %3103 = vmatpush2.bf16.msra.mxu0 %v9703_v32  ;;  %v9799_v32 = vld [vmem:[%s10642_s22 + $0x1f0] ss:$8 sps:$4 sm:$0xff]  }
 0x19d   : > { %3146 = vmatpush2.bf16.msra.mxu1 %v9706_v33  ;;  %3104 = vmatprep.subr.bf16.mxu0 %v9711_v34  ;;  %v9802_v33 = vld [vmem:[%s10642_s22 + $0xf0] ss:$8 sps:$4 sm:$0xff]   ;;  %v9807_v34 = vld [vmem:[%s10642_s22 + $0x1e4] ss:$8 sps:$4 sm:$0xff]  }
 0x19e   : > { %3147 = vmatprep.subr.bf16.mxu1 %v9714_v35  ;;  %v9810_v35 = vld [vmem:[%s10642_s22 + $0xe4] ss:$8 sps:$4 sm:$0xff]  }
 0x1a0   : > { %3105 = vmatpush2.bf16.msra.mxu0 %v9709_v36  ;;  %v9805_v36 = vld [vmem:[%s10642_s22 + $0x1e0] ss:$8 sps:$4 sm:$0xff]  }
 0x1a1   : > { %3148 = vmatpush2.bf16.msra.mxu1 %v9712_v37  ;;  %3106 = vmatprep.subr.bf16.mxu0 %v9717_v38  ;;  %v9808_v37 = vld [vmem:[%s10642_s22 + $0xe0] ss:$8 sps:$4 sm:$0xff]   ;;  %v9813_v38 = vld [vmem:[%s10642_s22 + $0x1d4] ss:$8 sps:$4 sm:$0xff]  }
 0x1a2   : > { %3149 = vmatprep.subr.bf16.mxu1 %v9720_v39  ;;  %v9816_v39 = vld [vmem:[%s10642_s22 + $0xd4] ss:$8 sps:$4 sm:$0xff]  }
 0x1a4   : > { %3107 = vmatpush2.bf16.msra.mxu0 %v9715_v40  ;;  %v9811_v40 = vld [vmem:[%s10642_s22 + $0x1d0] ss:$8 sps:$4 sm:$0xff]  }
 0x1a5   : > { %3150 = vmatpush2.bf16.msra.mxu1 %v9718_v41  ;;  %3108 = vmatprep.subr.bf16.mxu0 %v9723_v42  ;;  %v9814_v41 = vld [vmem:[%s10642_s22 + $0xd0] ss:$8 sps:$4 sm:$0xff]   ;;  %v9819_v42 = vld [vmem:[%s10642_s22 + $0x1c4] ss:$8 sps:$4 sm:$0xff]  }
 0x1a6   : > { %3151 = vmatprep.subr.bf16.mxu1 %v9726_v43  ;;  %v9822_v43 = vld [vmem:[%s10642_s22 + $0xc4] ss:$8 sps:$4 sm:$0xff]  }
 0x1a8   : > { %3109 = vmatpush2.bf16.msra.mxu0 %v9721_v44  ;;  %v9817_v44 = vld [vmem:[%s10642_s22 + $0x1c0] ss:$8 sps:$4 sm:$0xff]  }
 0x1a9   : > { %3152 = vmatpush2.bf16.msra.mxu1 %v9724_v45  ;;  %3110 = vmatprep.subr.bf16.mxu0 %v9729_v46  ;;  %v9820_v45 = vld [vmem:[%s10642_s22 + $0xc0] ss:$8 sps:$4 sm:$0xff]   ;;  %v9825_v46 = vld [vmem:[%s10642_s22 + $0x1b4] ss:$8 sps:$4 sm:$0xff]  }
 0x1aa   : > { %3153 = vmatprep.subr.bf16.mxu1 %v9732_v47  ;;  %v9828_v47 = vld [vmem:[%s10642_s22 + $0xb4] ss:$8 sps:$4 sm:$0xff]  }
 0x1ac   : > { %3111 = vmatpush2.bf16.msra.mxu0 %v9727_v48  ;;  %v9823_v48 = vld [vmem:[%s10642_s22 + $0x1b0] ss:$8 sps:$4 sm:$0xff]  }
 0x1ad   : > { %3154 = vmatpush2.bf16.msra.mxu1 %v9730_v49  ;;  %3112 = vmatprep.subr.bf16.mxu0 %v9735_v50  ;;  %v9826_v49 = vld [vmem:[%s10642_s22 + $0xb0] ss:$8 sps:$4 sm:$0xff]   ;;  %v9831_v50 = vld [vmem:[%s10642_s22 + $0x1a4] ss:$8 sps:$4 sm:$0xff]  }
 0x1ae   : > { %3155 = vmatprep.subr.bf16.mxu1 %v9738_v51  ;;  %v9834_v51 = vld [vmem:[%s10642_s22 + $0xa4] ss:$8 sps:$4 sm:$0xff]  }
 0x1b0   : > { %3113 = vmatpush2.bf16.msra.mxu0 %v9733_v52  ;;  %v1633_v52 = vlaneseq }
 0x1b1   : > { %3156 = vmatpush2.bf16.msra.mxu1 %v9736_v53  ;;  %3114 = vmatprep.subr.bf16.mxu0 %v9741_v54  ;;  %v9829_v53 = vld [vmem:[%s10642_s22 + $0x1a0] ss:$8 sps:$4 sm:$0xff]  }
 0x1b2   : > { %3157 = vmatprep.subr.bf16.mxu1 %v9744_v55  ;;  %v9832_v54 = vld [vmem:[%s10642_s22 + $0xa0] ss:$8 sps:$4 sm:$0xff]   ;;  %v9837_v55 = vld [vmem:[%s10642_s22 + $0x194] ss:$8 sps:$4 sm:$0xff]  }
 0x1b4   : > { %3115 = vmatpush2.bf16.msra.mxu0 %v9739_v56  ;;  %v9840_v56 = vld [vmem:[%s10642_s22 + $0x94] ss:$8 sps:$4 sm:$0xff]  }
 0x1b5   : > { %3158 = vmatpush2.bf16.msra.mxu1 %v9742_v57  ;;  %3788 = vmatprep.subr.bf16.mxu0 %v9756_v59  ;;  %v12245_v57 = vshrl.u32 %v1633_v52, 7  ;;  %v9838_v59 = vld [vmem:[%s10642_s22 + $0x90] ss:$8 sps:$4 sm:$0xff]  }
 0x1b6   : > { %3831 = vmatprep.subr.bf16.mxu1 %v9753_v58  ;;  %v9835_v58 = vld [vmem:[%s10642_s22 + $0x190] ss:$8 sps:$4 sm:$0xff]  }
 0x1b7   : > { %3117 = vmatmul.mubr.bf16.vlgmr.msra.gmra.mxu0 %v9745_v60  ;;  %v9843_v60 = vld [vmem:[%s10642_s22 + $0x184] ss:$8 sps:$4 sm:$0xff]  }
 0x1b8   : > { %3160 = vmatmul.mubr.bf16.vlgmr.msra.gmra.mxu1 %v9748_v61  ;;  %3789 = vmatpush1.bf16.msra.mxu0 %v9754_v63  ;;  %v9846_v61 = vld [vmem:[%s10642_s22 + $0x84] ss:$8 sps:$4 sm:$0xff]   ;;  %v9841_v63 = vld [vmem:[%s10642_s22 + $0x180] ss:$8 sps:$4 sm:$0xff]  }
 0x1b9   : > { %3832 = vmatpush1.bf16.msra.mxu1 %v9751_v62  ;;  %3790 = vmatprep.subr.bf16.mxu0 %v9762_v1  ;;  %v12252_v62 = vsub.s32 0, %v12245_v57  ;;  %v1772_v1 = vld [vmem:[%s12666_s19] sm:$0x3] }
 0x1ba   : > { %3833 = vmatprep.subr.bf16.mxu1 %v9759_v0  ;;  %3863 = vmatprep.mubr.bf16.mxu1 %v9849_v4  ;;  %v9844_v0 = vld [vmem:[%s10642_s22 + $0x80] ss:$8 sps:$4 sm:$0xff]  }
 0x1bb   : > { %3820 = vmatprep.mubr.bf16.mxu0 %v9852_v7  ;;  %v9850_v4 = vld [vmem:[%s12665_s27] ss:$24 sps:$4 sm:$0xff]   ;;  %v9858_v7 = vld [vmem:[%s10642_s22 + $0x264] ss:$8 sps:$4 sm:$0xff]  }
 0x1bc   : > { %3791 = vmatpush1.bf16.msra.mxu0 %v9760_v3  ;;  %v9847_v3 = vld [vmem:[%s12665_s27 + $0x8] ss:$24 sps:$4 sm:$0xff]  }
 0x1bd   : > { %3834 = vmatpush1.bf16.msra.mxu1 %v9757_v2  ;;  %3792 = vmatprep.subr.bf16.mxu0 %v9768_v6  ;;  %v9855_v2 = vld [vmem:[%s10642_s22 + $0x274] ss:$8 sps:$4 sm:$0xff]   ;;  %v9853_v6 = vld [vmem:[%s10642_s22 + $0x270] ss:$8 sps:$4 sm:$0xff]  }
 0x1be   : > { %3835 = vmatprep.subr.bf16.mxu1 %v9765_v5  ;;  %v1777_v5 = vrot.slane %v1772_v1, %v12252_v62 }
 0x1c0   : > { %3793 = vmatpush1.bf16.msra.mxu0 %v9766_v9 }
 0x1c1   : > { %3836 = vmatpush1.bf16.msra.mxu1 %v9763_v8  ;;  %3794 = vmatprep.subr.bf16.mxu0 %v9774_v11  ;;  %v9856_v11 = vld [vmem:[%s10642_s22 + $0x260] ss:$8 sps:$4 sm:$0xff]  }
 0x1c2   : > { %3837 = vmatprep.subr.bf16.mxu1 %v9771_v10  ;;  %v12272_v10 = vsub.s32 1, %v12245_v57 }
 0x1c4   : > { %3795 = vmatpush1.bf16.msra.mxu0 %v9772_v13 }
 0x1c5   : > { %3838 = vmatpush1.bf16.msra.mxu1 %v9769_v12  ;;  %3796 = vmatprep.subr.bf16.mxu0 %v9780_v15  ;;  %v9903_v12 = vld [vmem:[%s12665_s27 + $0x14] ss:$24 sps:$4 sm:$0xff]  }
 0x1c6   : > { %3839 = vmatprep.subr.bf16.mxu1 %v9777_v14  ;;  %v9861_v15 = vld [vmem:[%s10642_s22 + $0x254] ss:$8 sps:$4 sm:$0xff]  }
 0x1c8   : > { %3797 = vmatpush1.bf16.msra.mxu0 %v9778_v17 }
 0x1c9   : > { %3840 = vmatpush1.bf16.msra.mxu1 %v9775_v16  ;;  %3798 = vmatprep.subr.bf16.mxu0 %v9786_v19 }
 0x1ca   : > { %3841 = vmatprep.subr.bf16.mxu1 %v9783_v18  ;;  %v1781_v18 = vrot.slane %v1772_v1, %v12272_v10 }
 0x1cc   : > { %3799 = vmatpush1.bf16.msra.mxu0 %v9784_v21 }
 0x1cd   : > { %3842 = vmatpush1.bf16.msra.mxu1 %v9781_v20  ;;  %3800 = vmatprep.subr.bf16.mxu0 %v9792_v23  ;;  %v9859_v20 = vld [vmem:[%s10642_s22 + $0x250] ss:$8 sps:$4 sm:$0xff]  }
 0x1ce   : > { %3843 = vmatprep.subr.bf16.mxu1 %v9789_v22  ;;  %v9864_v22 = vld [vmem:[%s10642_s22 + $0x244] ss:$8 sps:$4 sm:$0xff]  }
 0x1d0   : > { %3801 = vmatpush1.bf16.msra.mxu0 %v9790_v25  ;;  %v9867_v25 = vld [vmem:[%s10642_s22 + $0x234] ss:$8 sps:$4 sm:$0xff]  }
 0x1d1   : > { %3844 = vmatpush1.bf16.msra.mxu1 %v9787_v24  ;;  %3802 = vmatprep.subr.bf16.mxu0 %v9798_v27  ;;  %v9862_v24 = vld [vmem:[%s10642_s22 + $0x240] ss:$8 sps:$4 sm:$0xff]   ;;  %v9870_v27 = vld [vmem:[%s10642_s22 + $0x224] ss:$8 sps:$4 sm:$0xff]  }
 0x1d2   : > { %3845 = vmatprep.subr.bf16.mxu1 %v9795_v26  ;;  %v9865_v26 = vld [vmem:[%s10642_s22 + $0x230] ss:$8 sps:$4 sm:$0xff]  }
 0x1d4   : > { %3803 = vmatpush1.bf16.msra.mxu0 %v9796_v29  ;;  %v9873_v29 = vld [vmem:[%s10642_s22 + $0x214] ss:$8 sps:$4 sm:$0xff]  }
 0x1d5   : > { %3846 = vmatpush1.bf16.msra.mxu1 %v9793_v28  ;;  %3804 = vmatprep.subr.bf16.mxu0 %v9804_v31  ;;  %v9868_v28 = vld [vmem:[%s10642_s22 + $0x220] ss:$8 sps:$4 sm:$0xff]   ;;  %v9876_v31 = vld [vmem:[%s10642_s22 + $0x204] ss:$8 sps:$4 sm:$0xff]  }
 0x1d6   : > { %3847 = vmatprep.subr.bf16.mxu1 %v9801_v30  ;;  %v9871_v30 = vld [vmem:[%s10642_s22 + $0x210] ss:$8 sps:$4 sm:$0xff]  }
 0x1d8   : > { %3805 = vmatpush2.bf16.msra.mxu0 %v9802_v33  ;;  %v9879_v33 = vld [vmem:[%s10642_s22 + $0x2f4] ss:$8 sps:$4 sm:$0xff]  }
 0x1d9   : > { %3848 = vmatpush2.bf16.msra.mxu1 %v9799_v32  ;;  %3806 = vmatprep.subr.bf16.mxu0 %v9810_v35  ;;  %v9874_v32 = vld [vmem:[%s10642_s22 + $0x200] ss:$8 sps:$4 sm:$0xff]   ;;  %v9882_v35 = vld [vmem:[%s10642_s22 + $0x2e4] ss:$8 sps:$4 sm:$0xff]  }
 0x1da   : > { %3849 = vmatprep.subr.bf16.mxu1 %v9807_v34  ;;  %v9877_v34 = vld [vmem:[%s10642_s22 + $0x2f0] ss:$8 sps:$4 sm:$0xff]  }
 0x1dc   : > { %3807 = vmatpush2.bf16.msra.mxu0 %v9808_v37  ;;  %v9885_v37 = vld [vmem:[%s10642_s22 + $0x2d4] ss:$8 sps:$4 sm:$0xff]  }
 0x1dd   : > { %3850 = vmatpush2.bf16.msra.mxu1 %v9805_v36  ;;  %3808 = vmatprep.subr.bf16.mxu0 %v9816_v39  ;;  %v9880_v36 = vld [vmem:[%s10642_s22 + $0x2e0] ss:$8 sps:$4 sm:$0xff]   ;;  %v9888_v39 = vld [vmem:[%s10642_s22 + $0x2c4] ss:$8 sps:$4 sm:$0xff]  }
 0x1de   : > { %3851 = vmatprep.subr.bf16.mxu1 %v9813_v38  ;;  %v9883_v38 = vld [vmem:[%s10642_s22 + $0x2d0] ss:$8 sps:$4 sm:$0xff]  }
 0x1e0   : > { %3809 = vmatpush2.bf16.msra.mxu0 %v9814_v41  ;;  %v9891_v41 = vld [vmem:[%s10642_s22 + $0x2b4] ss:$8 sps:$4 sm:$0xff]  }
 0x1e1   : > { %3852 = vmatpush2.bf16.msra.mxu1 %v9811_v40  ;;  %3810 = vmatprep.subr.bf16.mxu0 %v9822_v43  ;;  %v9886_v40 = vld [vmem:[%s10642_s22 + $0x2c0] ss:$8 sps:$4 sm:$0xff]   ;;  %v9894_v43 = vld [vmem:[%s10642_s22 + $0x2a4] ss:$8 sps:$4 sm:$0xff]  }
 0x1e2   : > { %3853 = vmatprep.subr.bf16.mxu1 %v9819_v42  ;;  %v9889_v42 = vld [vmem:[%s10642_s22 + $0x2b0] ss:$8 sps:$4 sm:$0xff]  }
 0x1e4   : > { %3811 = vmatpush2.bf16.msra.mxu0 %v9820_v45  ;;  %v9897_v45 = vld [vmem:[%s10642_s22 + $0x294] ss:$8 sps:$4 sm:$0xff]  }
 0x1e5   : > { %3854 = vmatpush2.bf16.msra.mxu1 %v9817_v44  ;;  %3812 = vmatprep.subr.bf16.mxu0 %v9828_v47  ;;  %v9892_v44 = vld [vmem:[%s10642_s22 + $0x2a0] ss:$8 sps:$4 sm:$0xff]   ;;  %v9900_v47 = vld [vmem:[%s10642_s22 + $0x284] ss:$8 sps:$4 sm:$0xff]  }
 0x1e6   : > { %3855 = vmatprep.subr.bf16.mxu1 %v9825_v46  ;;  %v9895_v46 = vld [vmem:[%s10642_s22 + $0x290] ss:$8 sps:$4 sm:$0xff]  }
 0x1e8   : > { %3813 = vmatpush2.bf16.msra.mxu0 %v9826_v49  ;;  %v9901_v49 = vld [vmem:[%s12665_s27 + $0x10] ss:$24 sps:$4 sm:$0xff]  }
 0x1e9   : > { %3856 = vmatpush2.bf16.msra.mxu1 %v9823_v48  ;;  %3814 = vmatprep.subr.bf16.mxu0 %v9834_v51  ;;  %v9898_v48 = vld [vmem:[%s10642_s22 + $0x280] ss:$8 sps:$4 sm:$0xff]  }
 0x1ea   : > { %3857 = vmatprep.subr.bf16.mxu1 %v9831_v50 }
 0x1ec   : > { %3815 = vmatpush2.bf16.msra.mxu0 %v9832_v54 }
 0x1ed   : > { %3858 = vmatpush2.bf16.msra.mxu1 %v9829_v53  ;;  %3816 = vmatprep.subr.bf16.mxu0 %v9840_v56 }
 0x1ee   : > { %3859 = vmatprep.subr.bf16.mxu1 %v9837_v55 }
 0x1f0   : > { %3817 = vmatpush2.bf16.msra.mxu0 %v9838_v59 }
 0x1f1   : > { %3860 = vmatpush2.bf16.msra.mxu1 %v9835_v58  ;;  %3818 = vmatprep.subr.bf16.mxu0 %v9846_v61 }
 0x1f2   : > { %3861 = vmatprep.subr.bf16.mxu1 %v9843_v60 }
 0x1f4   : > { %3819 = vmatpush2.bf16.msra.mxu0 %v9844_v0 }
 0x1f5   : > { %3862 = vmatpush2.bf16.msra.mxu1 %v9841_v63  ;;  %3874 = vmatprep.subr.bf16.mxu0 %v9855_v2  ;;  %v2519_v2 = vld [vmem:[%s12667_s29] sm:$0x3] }
 0x1f7   : > { %v2328_v8 = vpop.f32.mrf.mxu0  ;;  %3821 = vmatmul.mubr.bf16.vlgmr.msra.gmra.mxu0 %v9850_v4 }
 0x1f8   : > { %3864 = vmatmul.mubr.bf16.vlgmr.msra.gmra.mxu1 %v9847_v3  ;;  %v2329_v9 = vadd.f32 %v2328_v8, %v1777_v5  ;;  %3875 = vmatpush1.bf16.msra.mxu0 %v9853_v6  ;;  %v2371_v13 = vpop.f32.mrf.mxu1  ;;  %v2528_v8 = vrot.slane %v2519_v2, %v12272_v10 }
 0x1f9   : > { %v12278_v14 = vpop.f32.mrf.mxu0  ;;  %3876 = vmatprep.subr.bf16.mxu0 %v9858_v7  ;;  %3906 = vmatprep.mubr.bf16.mxu0 %v9903_v12 }
 0x1fa   : > { %v12281_v16 = vadd.f32 %v2371_v13, %v2329_v9  ;;  %v2331_v50 = vadd.f32 %v12278_v14, %v1781_v18  ;;  %v2373_v51 = vpop.f32.mrf.mxu1 }
 0x1fb   : > { %v2332_v17 = vpop.f32.mrf.mxu0 }
 0x1fc   : > { %v12284_v19 = vadd.f32 %v2332_v17, %v1777_v5  ;;  %3877 = vmatpush1.bf16.msra.mxu0 %v9856_v11  ;;  %v2374_v54 = vadd.f32 %v2373_v51, %v2331_v50  ;;  %v2375_v59 = vpop.f32.mrf.mxu1  ;;  %v2524_v5 = vrot.slane %v2519_v2, %v12252_v62 }
 0x1fd   : > { %v2334_v21 = vpop.f32.mrf.mxu0  ;;  %3878 = vmatprep.subr.bf16.mxu0 %v9861_v15 }
 0x1fe   : > { %v12288_v23 = vadd.f32 %v2334_v21, %v1781_v18  ;;  %v2377_v60 = vpop.f32.mrf.mxu1 }
 0x200   : > { %3879 = vmatpush1.bf16.msra.mxu0 %v9859_v20 }
 0x201   : > { %3880 = vmatprep.subr.bf16.mxu0 %v9864_v22 }
 0x204   : > { %3881 = vmatpush1.bf16.msra.mxu0 %v9862_v24 }
 0x205   : > { %3882 = vmatprep.subr.bf16.mxu0 %v9867_v25 }
 0x208   : > { %3883 = vmatpush1.bf16.msra.mxu0 %v9865_v26 }
 0x209   : > { %3884 = vmatprep.subr.bf16.mxu0 %v9870_v27 }
 0x20c   : > { %3885 = vmatpush1.bf16.msra.mxu0 %v9868_v28 }
 0x20d   : > { %3886 = vmatprep.subr.bf16.mxu0 %v9873_v29 }
 0x210   : > { %3887 = vmatpush1.bf16.msra.mxu0 %v9871_v30  ;;  %v2378_v30 = vadd.f32 %v2377_v60, %v12288_v23 }
 0x211   : > { %3888 = vmatprep.subr.bf16.mxu0 %v9876_v31 }
 0x214   : > { %3889 = vmatpush1.bf16.msra.mxu0 %v9874_v32  ;;  %v2376_v32 = vadd.f32 %v2375_v59, %v12284_v19 }
 0x215   : > { %3890 = vmatprep.subr.bf16.mxu0 %v9879_v33 }
 0x218   : > { %3891 = vmatpush2.bf16.msra.mxu0 %v9877_v34 }
 0x219   : > { %3892 = vmatprep.subr.bf16.mxu0 %v9882_v35 }
 0x21c   : > { %3893 = vmatpush2.bf16.msra.mxu0 %v9880_v36 }
 0x21d   : > { %3894 = vmatprep.subr.bf16.mxu0 %v9885_v37  ;;  %v3266_v37 = vld [vmem:[%s615_s24] sm:$0x3] }
 0x21e   : > { %v3271_v23 = vrot.slane %v3266_v37, %v12252_v62 }
 0x220   : > { %3895 = vmatpush2.bf16.msra.mxu0 %v9883_v38 }
 0x221   : > { %3896 = vmatprep.subr.bf16.mxu0 %v9888_v39 }
 0x224   : > { %3897 = vmatpush2.bf16.msra.mxu0 %v9886_v40  ;;  %v3275_v40 = vrot.slane %v3266_v37, %v12272_v10  ;;  %v9939_v37 = vld [vmem:[%s10651_s26 + $0x6c] ss:$24 sps:$4 sm:$0xff]  }
 0x225   : > { %3898 = vmatprep.subr.bf16.mxu0 %v9891_v41 }
 0x228   : > { %3899 = vmatpush2.bf16.msra.mxu0 %v9889_v42 }
 0x229   : > { %3900 = vmatprep.subr.bf16.mxu0 %v9894_v43 }
 0x22c   : > { %3901 = vmatpush2.bf16.msra.mxu0 %v9892_v44 }
 0x22d   : > { %3902 = vmatprep.subr.bf16.mxu0 %v9897_v45 }
 0x230   : > { %3903 = vmatpush2.bf16.msra.mxu0 %v9895_v46 }
 0x231   : > { %3904 = vmatprep.subr.bf16.mxu0 %v9900_v47 }
 0x234   : > { %3905 = vmatpush2.bf16.msra.mxu0 %v9898_v48 }
 0x237   : > { %v2414_v53 = vpop.f32.mrf.mxu0  ;;  %3907 = vmatmul.mubr.bf16.vlgmr.msra.gmra.mxu0 %v9901_v49 }
 0x238   : > { %v2415_v55 = vadd.f32 %v2414_v53, %v12281_v16  ;;  %v3075_v61 = vpop.f32.mrf.mxu1 }
 0x239   : > { %v2416_v56 = vpop.f32.mrf.mxu0  ;;  %v3076_v22 = vadd.f32 %v3075_v61, %v2524_v5  ;;  %v1661_v61 = vand.u32 127, %v1633_v52 }
 0x23a   : > { %v2417_v58 = vadd.f32 %v2416_v56, %v2374_v54  ;;  %v3077_v63 = vpop.f32.mrf.mxu1 }
 0x23b   : > { %v2418_v0 = vpop.f32.mrf.mxu0  ;;  %v3078_v15 = vadd.f32 %v3077_v63, %v2528_v8  ;;  %v1640_v63 = vand.u32 1, %v12245_v57 }
 0x23c   : > { %8848 = vmatprep.mubr.msk.f32.mxu1 %vm3917_vm0, %v2417_v58  ;;  %v3079_v1 = vpop.f32.mrf.mxu1  ;;  %v2419_v33 = vadd.f32 %v2418_v0, %v2376_v32  ;;  %v1666_v0 = vand.u32 1, %v1661_v61  ;;  %v9919_v32 = vld [vmem:[%s10651_s26 + $0xf8] ss:$24 sps:$4 sm:$0xff]  }
 0x23d   : > { %v2420_v3 = vpop.f32.mrf.mxu0  ;;  %v3080_v12 = vadd.f32 %v3079_v1, %v2524_v5  ;;  %v1635_v1 = vadd.s32 8, %v12245_v57  ;;  %v9928_v61 = vld [vmem:[%s10651_s26 + $0x90] ss:$24 sps:$4 sm:$0xff]  }
 0x23e   : > { %v3081_v4 = vpop.f32.mrf.mxu1  ;;  %v2421_v31 = vadd.f32 %v2420_v3, %v2378_v30  ;;  %vm1674_vm1 = vcmp.eq.s32.totalorder %v1640_v63, %v1666_v0  ;;  %v9913_v30 = vld [vmem:[%s10651_s26 + $0x128] ss:$24 sps:$4 sm:$0xff]   ;;  %v9936_v63 = vld [vmem:[%s10651_s26 + $0x64] ss:$24 sps:$4 sm:$0xff]  }
 0x23f   : > { %v3082_v16 = vadd.f32 %v3081_v4, %v2528_v8  ;;  %v1647_v3 = vand.u32 1, %v1635_v1  ;;  %v9942_v1 = vld [vmem:[%s10651_s26 + $0x34] ss:$24 sps:$4 sm:$0xff]  }
 0x241   : > { %vm1675_vm3 = vcmp.eq.s32.totalorder %v1647_v3, %v1666_v0  ;;  %v9934_v0 = vld [vmem:[%s10651_s26 + $0x60] ss:$24 sps:$4 sm:$0xff]   ;;  %v9948_v3 = vld [vmem:[%s10651_s26 + $0x4] ss:$24 sps:$4 sm:$0xff]  }
 0x277   : > { %v3118_v6 = vpop.f32.mrf.mxu0 }
 0x278   : > { %v3161_v7 = vpop.f32.mrf.mxu1  ;;  %v3119_v26 = vadd.f32 %v3118_v6, %v3076_v22 }
 0x279   : > { %v3120_v9 = vpop.f32.mrf.mxu0 }
 0x27a   : > { %v3163_v11 = vpop.f32.mrf.mxu1  ;;  %v3121_v20 = vadd.f32 %v3120_v9, %v3078_v15  ;;  %v3162_v29 = vadd.f32 %v3161_v7, %v3119_v26  ;;  %v9906_v26 = vld [vmem:[%s10651_s26 + $0x154] ss:$24 sps:$4 sm:$0xff]  }
 0x27b   : > { %v3122_v13 = vpop.f32.mrf.mxu0 }
 0x27c   : > { %v3165_v14 = vpop.f32.mrf.mxu1  ;;  %v3123_v17 = vadd.f32 %v3122_v13, %v3080_v12  ;;  %v3164_v28 = vadd.f32 %v3163_v11, %v3121_v20 }
 0x27d   : > { %v3124_v18 = vpop.f32.mrf.mxu0 }
 0x27e   : > { %v3125_v21 = vadd.f32 %v3124_v18, %v3082_v16  ;;  %v3167_v24 = vpop.f32.mrf.mxu1  ;;  %v3166_v27 = vadd.f32 %v3165_v14, %v3123_v17 }
 0x280   : > { %v3168_v25 = vadd.f32 %v3167_v24, %v3125_v21 }
 0x282   : > { %8846 = vmatprep.subr.msk.mxu1 %vm3917_vm0, %v3168_v25  ;;  %v10506_v25 = vmov 0.0  }
 0x283   : > { %3959 = vmatpush1.xpose.msra.mxu1 %v3166_v27  ;;  %v9907_v27 = vld [vmem:[%s10651_s26 + $0x158] ss:$24 sps:$4 sm:$0xff]  }
 0x284   : > { %8847 = vmatprep.subr.msk.mxu1 %vm3917_vm0, %v3164_v28  ;;  %v9909_v28 = vld [vmem:[%s10651_s26 + $0x15c] ss:$24 sps:$4 sm:$0xff]  }
 0x285   : > { %4595 = vmatprep.subr.bf16.mxu0 %v9909_v28  ;;  %v9979_v28 = vld [vmem:[%s10651_s26 + $0x130] ss:$24 sps:$4 sm:$0xff]  }
 0x286   : > { %4596 = vmatpush1.bf16.msra.mxu0 %v9907_v27  ;;  %v9981_v27 = vld [vmem:[%s10651_s26 + $0x134] ss:$24 sps:$4 sm:$0xff]  }
 0x287   : > { %3961 = vmatpush1.xpose.msra.mxu1 %v3162_v29  ;;  %v9915_v29 = vld [vmem:[%s10651_s26 + $0x12c] ss:$24 sps:$4 sm:$0xff]  }
 0x288   : > { %4597 = vmatprep.subr.bf16.mxu0 %v9915_v29  ;;  %v9984_v29 = vld [vmem:[%s10651_s26 + $0x104] ss:$24 sps:$4 sm:$0xff]  }
 0x28a   : > { %3995 = vmatmul.mubr.f32.vlgmr.msra.gmra.mxu1 %v2415_v55  ;;  %4598 = vmatpush1.bf16.msra.mxu0 %v9913_v30  ;;  %v9982_v30 = vld [vmem:[%s10651_s26 + $0x100] ss:$24 sps:$4 sm:$0xff]  }
 0x28b   : > { %8849 = vmatprep.mubr.msk.f32.mxu1 %vm3917_vm0, %v2421_v31  ;;  %v9921_v31 = vld [vmem:[%s10651_s26 + $0xfc] ss:$24 sps:$4 sm:$0xff]  }
 0x28c   : > { %4599 = vmatprep.subr.bf16.mxu0 %v9921_v31  ;;  %v9987_v31 = vld [vmem:[%s10651_s26 + $0xd4] ss:$24 sps:$4 sm:$0xff]  }
 0x28e   : > { %4000 = vmatmul.mubr.f32.gmra.mxu1 %v2419_v33  ;;  %v9927_v33 = vld [vmem:[%s10651_s26 + $0xcc] ss:$24 sps:$4 sm:$0xff]   ;;  %4600 = vmatpush1.bf16.msra.mxu0 %v9919_v32  ;;  %v9985_v32 = vld [vmem:[%s10651_s26 + $0xd0] ss:$24 sps:$4 sm:$0xff]  }
 0x28f   : > { %4102 = vmatprep.mubr.f32.mxu1 %v10506_v25  ;;  %4601 = vmatprep.subr.bf16.mxu0 %v9927_v33  ;;  %v9990_v33 = vld [vmem:[%s10651_s26 + $0xa4] ss:$24 sps:$4 sm:$0xff]  }
 0x2b7   : > { %v3822_v34 = vpop.f32.mrf.mxu0 }
 0x2b8   : > { %v3865_v36 = vpop.f32.mrf.mxu1  ;;  %v3823_v45 = vadd.f32 %v3822_v34, %v3271_v23  ;;  %v9925_v34 = vld [vmem:[%s10651_s26 + $0xc8] ss:$24 sps:$4 sm:$0xff]  }
 0x2b9   : > { %v3824_v35 = vpop.f32.mrf.mxu0  ;;  %4602 = vmatpush1.bf16.msra.mxu0 %v9925_v34  ;;  %v9988_v34 = vld [vmem:[%s10651_s26 + $0xa0] ss:$24 sps:$4 sm:$0xff]  }
 0x2ba   : > { %v3867_v39 = vpop.f32.mrf.mxu1  ;;  %v3825_v43 = vadd.f32 %v3824_v35, %v3275_v40  ;;  %v3866_v53 = vadd.f32 %v3865_v36, %v3823_v45  ;;  %v9933_v35 = vld [vmem:[%s10651_s26 + $0x9c] ss:$24 sps:$4 sm:$0xff]   ;;  %v9931_v36 = vld [vmem:[%s10651_s26 + $0x98] ss:$24 sps:$4 sm:$0xff]  }
 0x2bb   : > { %v3826_v38 = vpop.f32.mrf.mxu0  ;;  %4603 = vmatprep.subr.bf16.mxu0 %v9933_v35  ;;  %v9993_v35 = vld [vmem:[%s10651_s26 + $0x74] ss:$24 sps:$4 sm:$0xff]  }
 0x2bc   : > { %v3869_v41 = vpop.f32.mrf.mxu1  ;;  %v3827_v42 = vadd.f32 %v3826_v38, %v3271_v23  ;;  %v3868_v50 = vadd.f32 %v3867_v39, %v3825_v43  ;;  %v9937_v38 = vld [vmem:[%s10651_s26 + $0x68] ss:$24 sps:$4 sm:$0xff]   ;;  %v9945_v39 = vld [vmem:[%s10651_s26 + $0x3c] ss:$24 sps:$4 sm:$0xff]   ;;  %v9943_v23 = vld [vmem:[%s10651_s26 + $0x38] ss:$24 sps:$4 sm:$0xff]  }
 0x2bd   : > { %v3828_v19 = vpop.f32.mrf.mxu0  ;;  %4604 = vmatpush1.bf16.msra.mxu0 %v9931_v36  ;;  %v9963_v43 = vld [vmem:[%s10651_s26 + $0x1ec] ss:$24 sps:$4 sm:$0xff]   ;;  %v9991_v36 = vld [vmem:[%s10651_s26 + $0x70] ss:$24 sps:$4 sm:$0xff]  }
 0x2be   : > { %v3829_v44 = vadd.f32 %v3828_v19, %v3275_v40  ;;  %v3871_v47 = vpop.f32.mrf.mxu1  ;;  %v3870_v48 = vadd.f32 %v3869_v41, %v3827_v42  ;;  %4605 = vmatprep.subr.bf16.mxu0 %v9939_v37  ;;  %v9951_v40 = vld [vmem:[%s10651_s26 + $0xc] ss:$24 sps:$4 sm:$0xff]   ;;  %v9949_v19 = vld [vmem:[%s10651_s26 + $0x8] ss:$24 sps:$4 sm:$0xff]   ;;  %v9957_v41 = vld [vmem:[%s10651_s26 + $0x21c] ss:$24 sps:$4 sm:$0xff]  }
 0x2bf   : > { %v9955_v42 = vld [vmem:[%s10651_s26 + $0x218] ss:$24 sps:$4 sm:$0xff]   ;;  %v9996_v37 = vld [vmem:[%s10651_s26 + $0x44] ss:$24 sps:$4 sm:$0xff]  }
 0x2c0   : > { %v3872_v51 = vadd.f32 %v3871_v47, %v3829_v44  ;;  %v9961_v44 = vld [vmem:[%s10651_s26 + $0x1e8] ss:$24 sps:$4 sm:$0xff]  }
 0x2c1   : > { %4606 = vmatpush1.bf16.msra.mxu0 %v9937_v38  ;;  %v9994_v38 = vld [vmem:[%s10651_s26 + $0x40] ss:$24 sps:$4 sm:$0xff]  }
 0x2c2   : > { %4607 = vmatprep.subr.bf16.mxu0 %v9945_v39  ;;  %v9999_v39 = vld [vmem:[%s10651_s26 + $0x14] ss:$24 sps:$4 sm:$0xff]  }
 0x2c5   : > { %4608 = vmatpush1.bf16.msra.mxu0 %v9943_v23  ;;  %v9997_v23 = vld [vmem:[%s10651_s26 + $0x10] ss:$24 sps:$4 sm:$0xff]  }
 0x2c6   : > { %4609 = vmatprep.subr.bf16.mxu0 %v9951_v40  ;;  %v10002_v40 = vld [vmem:[%s10651_s26 + $0x224] ss:$24 sps:$4 sm:$0xff]  }
 0x2c9   : > { %4610 = vmatpush1.bf16.msra.mxu0 %v9949_v19  ;;  %v10000_v19 = vld [vmem:[%s10651_s26 + $0x220] ss:$24 sps:$4 sm:$0xff]  }
 0x2ca   : > { %4619 = vmatprep.subr.bf16.mxu0 %v9957_v41  ;;  %v10005_v41 = vld [vmem:[%s10651_s26 + $0x1f4] ss:$24 sps:$4 sm:$0xff]  }
 0x2cd   : > { %4620 = vmatpush2.bf16.msra.mxu0 %v9955_v42  ;;  %v10003_v42 = vld [vmem:[%s10651_s26 + $0x1f0] ss:$24 sps:$4 sm:$0xff]  }
 0x2ce   : > { %4621 = vmatprep.subr.bf16.mxu0 %v9963_v43  ;;  %v10008_v43 = vld [vmem:[%s10651_s26 + $0x1c4] ss:$24 sps:$4 sm:$0xff]  }
 0x2d1   : > { %4622 = vmatpush2.bf16.msra.mxu0 %v9961_v44  ;;  %v10006_v44 = vld [vmem:[%s10651_s26 + $0x1c0] ss:$24 sps:$4 sm:$0xff]  }
 0x2f7   : > { %v3908_v46 = vpop.f32.mrf.mxu0 }
 0x2f8   : > { %v3909_v60 = vadd.f32 %v3908_v46, %v3866_v53  ;;  %v9910_v53 = vld [vmem:[%s10651_s26 + $0x120] ss:$24 sps:$4 sm:$0xff]  }
 0x2f9   : > { %v3910_v49 = vpop.f32.mrf.mxu0 }
 0x2fa   : > { %v3911_v58 = vadd.f32 %v3910_v49, %v3868_v50  ;;  %v9912_v50 = vld [vmem:[%s10651_s26 + $0x124] ss:$24 sps:$4 sm:$0xff]  }
 0x2fb   : > { %v3912_v54 = vpop.f32.mrf.mxu0 }
 0x2fc   : > { %v3913_v55 = vadd.f32 %v3912_v54, %v3870_v48  ;;  %v9904_v48 = vld [vmem:[%s10651_s26 + $0x150] ss:$24 sps:$4 sm:$0xff]  }
 0x2fd   : > { %v3914_v56 = vpop.f32.mrf.mxu0 }
 0x2fe   : > { %v3915_v59 = vadd.f32 %v3914_v56, %v3872_v51  ;;  %v9916_v56 = vld [vmem:[%s10651_s26 + $0xf0] ss:$24 sps:$4 sm:$0xff]  }
 0x300   : > { %4066 = vmatprep.subr.mxu1 %v3915_v59  ;;  %v9922_v59 = vld [vmem:[%s10651_s26 + $0xc0] ss:$24 sps:$4 sm:$0xff]  }
 0x301   : > { %4067 = vmatpush1.msra.mxu1 %v3913_v55  ;;  %v9918_v55 = vld [vmem:[%s10651_s26 + $0xf4] ss:$24 sps:$4 sm:$0xff]  }
 0x302   : > { %4068 = vmatprep.subr.mxu1 %v3911_v58  ;;  %v9924_v58 = vld [vmem:[%s10651_s26 + $0xc4] ss:$24 sps:$4 sm:$0xff]  }
 0x303   : > { %4069 = vmatpush1.msra.mxu1 %v3909_v60  ;;  %v9930_v60 = vld [vmem:[%s10651_s26 + $0x94] ss:$24 sps:$4 sm:$0xff]  }
 0x304   : > { %4552 = vmatprep.subr.bf16.mxu1 %v9906_v26 }
 0x34a   : > { %v3996_v2 = vpop.f32.mrf.mxu1 }
 0x34b   : > { %v4005_v4 = vmul.f32 0.07216878, %v3996_v2  ;;  %v9940_v2 = vld [vmem:[%s10651_s26 + $0x30] ss:$24 sps:$4 sm:$0xff]  }
 0x34c   : > { %v3998_v5 = vpop.f32.mrf.mxu1 }
 0x34d   : > { %v4007_v6 = vsel %vm1674_vm1, %v4005_v4, -1e+30  ;;  %v9946_v4 = vld [vmem:[%s10651_s26] ss:$24 sps:$4 sm:$0xff]   ;;  %v9954_v5 = vld [vmem:[%s10651_s26 + $0x214] ss:$24 sps:$4 sm:$0xff]  }
 0x34e   : > { %v4001_v7 = vpop.f32.mrf.mxu1  ;;  %v4010_v8 = vsel %vm4009_vm2, %v4007_v6, -inf }
 0x34f   : > { %v4006_v9 = vmul.f32 0.07216878, %v4001_v7  ;;  %4011 = vmax.xlane.f32.xlu0 %v4010_v8  ;;  %v9960_v7 = vld [vmem:[%s10651_s26 + $0x1e4] ss:$24 sps:$4 sm:$0xff]   ;;  %v9958_v8 = vld [vmem:[%s10651_s26 + $0x1e0] ss:$24 sps:$4 sm:$0xff]  }
 0x350   : > { %v4003_v11 = vpop.f32.mrf.mxu1 }
 0x351   : > { %v4008_v52 = vsel %vm1675_vm3, %v4006_v9, -1e+30  ;;  %v9966_v9 = vld [vmem:[%s10651_s26 + $0x1b4] ss:$24 sps:$4 sm:$0xff]   ;;  %v9964_v11 = vld [vmem:[%s10651_s26 + $0x1b0] ss:$24 sps:$4 sm:$0xff]  }
 0x352   : > { %v4013_v12 = vsel %vm4009_vm2, %v4008_v52, -inf }
 0x353   : > { %4014 = vmax.xlane.f32.xlu0 %v4013_v12  ;;  %v9967_v12 = vld [vmem:[%s10651_s26 + $0x1b8] ss:$24 sps:$4 sm:$0xff]  }
 0x3d8   : > { %v4012_v13 = vpop.xlane.xlu0 %4011 }
 0x3d9   : > { %v4016_v14 = vsub.f32 %v4007_v6, %v4012_v13  ;;  %v9952_v6 = vld [vmem:[%s10651_s26 + $0x210] ss:$24 sps:$4 sm:$0xff]   ;;  %v9972_v13 = vld [vmem:[%s10651_s26 + $0x184] ss:$24 sps:$4 sm:$0xff]  }
 0x3db   : > { %v4018_v15 = vmul.f32 1.442695, %v4016_v14  ;;  %v9970_v14 = vld [vmem:[%s10651_s26 + $0x180] ss:$24 sps:$4 sm:$0xff]  }
 0x3dc   : > { %v4015_v16 = vpop.xlane.xlu0 %4014 }
 0x3dd   : > { %10012 = vpow2.f32 %v4018_v15  ;;  %v4017_v17 = vsub.f32 %v4008_v52, %v4015_v16  ;;  %v9969_v52 = vld [vmem:[%s10651_s26 + $0x1bc] ss:$24 sps:$4 sm:$0xff]   ;;  %v9975_v15 = vld [vmem:[%s10651_s26 + $0x18c] ss:$24 sps:$4 sm:$0xff]   ;;  %v9973_v16 = vld [vmem:[%s10651_s26 + $0x188] ss:$24 sps:$4 sm:$0xff]  }
 0x3de   : > { %4623 = vmatprep.subr.bf16.mxu0 %v9969_v52 }
 0x3df   : > { %v4020_v18 = vmul.f32 1.442695, %v4017_v17  ;;  %4624 = vmatpush2.bf16.msra.mxu0 %v9967_v12  ;;  %v9978_v17 = vld [vmem:[%s10651_s26 + $0x164] ss:$24 sps:$4 sm:$0xff]  }
 0x3e0   : > { %4625 = vmatprep.subr.bf16.mxu0 %v9975_v15 }
 0x3e1   : > { %10014 = vpow2.f32 %v4020_v18 }
 0x3e3   : > { %4626 = vmatpush2.bf16.msra.mxu0 %v9973_v16 }
 0x3ea   : > { %v10013_v20 = vpop.eup %10012 }
 0x3eb   : > { %v4022_v21 = vsel %vm4009_vm2, %v10013_v20, 0.0 }
 0x3ec   : > { %4023 = vadd.xlane.f32.xlu1 %v4022_v21 }
 0x3ee   : > { %v10015_v22 = vpop.eup %10014 }
 0x3ef   : > { %v4025_v24 = vsel %vm4009_vm2, %v10015_v22, 0.0 }
 0x3f0   : > { %4026 = vadd.xlane.f32.xlu1 %v4025_v24 }
 0x475   : > { %v4024_v45 = vpop.xlane.xlu1 %4023 }
 0x476   : > { %10016 = vrcp.f32 %v4024_v45  ;;  %v10011_v45 = vld [vmem:[%s10651_s26 + $0x194] ss:$24 sps:$4 sm:$0xff]  }
 0x479   : > { %v4027_v46 = vpop.xlane.xlu1 %4026 }
 0x47a   : > { %10018 = vrcp.f32 %v4027_v46  ;;  %v10009_v46 = vld [vmem:[%s10651_s26 + $0x190] ss:$24 sps:$4 sm:$0xff]  }
 0x483   : > { %v10017_v47 = vpop.eup %10016 }
 0x484   : > { %v4030_v49 = vmul.f32 %v10017_v47, %v10013_v20 }
 0x486   : > { %8850 = vmatmul.mubr.msk.f32.vlgmr.msra.gmra.mxu1 %vm4009_vm2, %v4030_v49 }
 0x487   : > { %v10019_v51 = vpop.eup %10018  ;;  %4108 = vmatprep.mubr.f32.mxu1 %v10506_v25  ;;  %4553 = vmatpush1.bf16.msra.mxu1 %v9904_v48  ;;  %v9976_v25 = vld [vmem:[%s10651_s26 + $0x160] ss:$24 sps:$4 sm:$0xff]  }
 0x488   : > { %v4031_v54 = vmul.f32 %v10019_v51, %v10015_v22  ;;  %4554 = vmatprep.subr.bf16.mxu1 %v9912_v50 }
 0x48a   : > { %8851 = vmatmul.mubr.msk.f32.gmra.mxu1 %vm4009_vm2, %v4031_v54 }
 0x48b   : > { %4555 = vmatpush1.bf16.msra.mxu1 %v9910_v53 }
 0x48c   : > { %4556 = vmatprep.subr.bf16.mxu1 %v9918_v55 }
 0x48f   : > { %4557 = vmatpush1.bf16.msra.mxu1 %v9916_v56 }
 0x490   : > { %4558 = vmatprep.subr.bf16.mxu1 %v9924_v58 }
 0x493   : > { %4559 = vmatpush1.bf16.msra.mxu1 %v9922_v59 }
 0x494   : > { %4560 = vmatprep.subr.bf16.mxu1 %v9930_v60 }
 0x497   : > { %4561 = vmatpush1.bf16.msra.mxu1 %v9928_v61 }
 0x498   : > { %4562 = vmatprep.subr.bf16.mxu1 %v9936_v63 }
 0x49b   : > { %4563 = vmatpush1.bf16.msra.mxu1 %v9934_v0 }
 0x49c   : > { %4564 = vmatprep.subr.bf16.mxu1 %v9942_v1 }
 0x49f   : > { %4565 = vmatpush1.bf16.msra.mxu1 %v9940_v2 }
 0x4a0   : > { %4566 = vmatprep.subr.bf16.mxu1 %v9948_v3 }
 0x4a3   : > { %4567 = vmatpush1.bf16.msra.mxu1 %v9946_v4 }
 0x4a4   : > { %4576 = vmatprep.subr.bf16.mxu1 %v9954_v5 }
 0x4a7   : > { %4577 = vmatpush2.bf16.msra.mxu1 %v9952_v6 }
 0x4a8   : > { %4578 = vmatprep.subr.bf16.mxu1 %v9960_v7 }
 0x4ab   : > { %4579 = vmatpush2.bf16.msra.mxu1 %v9958_v8 }
 0x4ac   : > { %4580 = vmatprep.subr.bf16.mxu1 %v9966_v9 }
 0x4af   : > { %4581 = vmatpush2.bf16.msra.mxu1 %v9964_v11 }
 0x4b0   : > { %4582 = vmatprep.subr.bf16.mxu1 %v9972_v13 }
 0x4b3   : > { %4583 = vmatpush2.bf16.msra.mxu1 %v9970_v14 }
 0x4b4   : > { %4638 = vmatprep.subr.bf16.mxu1 %v9978_v17 }
 0x546   : > { %v4104_v18 = vpop.f32.mrf.mxu1 }
 0x548   : > { %v4106_v20 = vpop.f32.mrf.mxu1 }
 0x54a   : > { %v4110_v21 = vpop.f32.mrf.mxu1 }
 0x54b   : > { %v4115_v26 = vpack.c.bf16 %v4110_v21, %v4104_v18 }
 0x54c   : > { %v4112_v22 = vpop.f32.mrf.mxu1 }
 0x54d   : > { %v4116_v24 = vpack.c.bf16 %v4112_v22, %v4106_v20 }
 0x54f   : > { %8924 = vmatprep.mubr.msk.bf16.mxu1 %vm3917_vm0, %v4116_v24  ;;  %8925 = vmatprep.mubr.msk.bf16.mxu0 %vm3917_vm0, %v4116_v24 }
 0x550   : > { %4585 = vmatmul.mubr.bf16.vlgmr.msra.gmra.mxu1 %v4115_v26  ;;  %4628 = vmatmul.mubr.bf16.vlgmr.msra.gmra.mxu0 %v4115_v26 }
 0x551   : > { %4639 = vmatpush1.bf16.msra.mxu1 %v9976_v25  ;;  %8926 = vmatprep.mubr.msk.bf16.mxu1 %vm3917_vm0, %v4116_v24 }
 0x552   : > { %4640 = vmatprep.subr.bf16.mxu1 %v9981_v27 }
 0x555   : > { %4641 = vmatpush1.bf16.msra.mxu1 %v9979_v28 }
 0x556   : > { %4642 = vmatprep.subr.bf16.mxu1 %v9984_v29 }
 0x559   : > { %4643 = vmatpush1.bf16.msra.mxu1 %v9982_v30 }
 0x55a   : > { %4644 = vmatprep.subr.bf16.mxu1 %v9987_v31 }
 0x55d   : > { %4645 = vmatpush1.bf16.msra.mxu1 %v9985_v32 }
 0x55e   : > { %4646 = vmatprep.subr.bf16.mxu1 %v9990_v33 }
 0x561   : > { %4647 = vmatpush1.bf16.msra.mxu1 %v9988_v34 }
 0x562   : > { %4648 = vmatprep.subr.bf16.mxu1 %v9993_v35 }
 0x565   : > { %4649 = vmatpush1.bf16.msra.mxu1 %v9991_v36 }
 0x566   : > { %4650 = vmatprep.subr.bf16.mxu1 %v9996_v37 }
 0x569   : > { %4651 = vmatpush1.bf16.msra.mxu1 %v9994_v38 }
 0x56a   : > { %4652 = vmatprep.subr.bf16.mxu1 %v9999_v39 }
 0x56d   : > { %4653 = vmatpush1.bf16.msra.mxu1 %v9997_v23 }
 0x56e   : > { %4662 = vmatprep.subr.bf16.mxu1 %v10002_v40 }
 0x571   : > { %4663 = vmatpush2.bf16.msra.mxu1 %v10000_v19 }
 0x572   : > { %4664 = vmatprep.subr.bf16.mxu1 %v10005_v41 }
 0x575   : > { %4665 = vmatpush2.bf16.msra.mxu1 %v10003_v42 }
 0x576   : > { %4666 = vmatprep.subr.bf16.mxu1 %v10008_v43 }
 0x579   : > { %4667 = vmatpush2.bf16.msra.mxu1 %v10006_v44 }
 0x57a   : > { %4668 = vmatprep.subr.bf16.mxu1 %v10011_v45 }
 0x57d   : > { %4669 = vmatpush2.bf16.msra.mxu1 %v10009_v46 }
 0x580   : > { %4671 = vmatmul.mubr.bf16.vlgmr.msra.gmra.mxu1 %v4115_v26 }
 0x610   : > { %v4586_v47 = vpop.f32.mrf.mxu1  ;;  %v4629_v48 = vpop.f32.mrf.mxu0 }
 0x612   : > { %v4588_v49 = vpop.f32.mrf.mxu1  ;;  %v4631_v50 = vpop.f32.mrf.mxu0 }
 0x614   : > { %v4590_v51 = vpop.f32.mrf.mxu1  ;;  %v4633_v53 = vpop.f32.mrf.mxu0 }
 0x616   : > { %v4592_v54 = vpop.f32.mrf.mxu1  ;;  %v4635_v55 = vpop.f32.mrf.mxu0 }
 0x640   : > { %v4672_v56 = vpop.f32.mrf.mxu1 }
 0x642   : > { %v4674_v58 = vpop.f32.mrf.mxu1  ;;  %4683 = sbr.rel (%p8539_p4) target bundleno = 1613 (0x64d), region = 194 }
 0x644   : > { %v4676_v59 = vpop.f32.mrf.mxu1 }
 0x646   : > { %v4678_v60 = vpop.f32.mrf.mxu1 }
 0x647   : > { %4684 = vst [vmem:[#allocation2 + $0x30] sm:$0xff] %v4586_v47  ;;  %4685 = vst [vmem:[#allocation2] sm:$0xff] %v4588_v49 }
 0x648   : > { %4686 = vst [vmem:[#allocation2 + $0x58] sm:$0xff] %v4629_v48  ;;  %4687 = vst [vmem:[#allocation2 + $0x18] sm:$0xff] %v4631_v50 }
 0x649   : > { %4688 = vst [vmem:[#allocation2 + $0x50] sm:$0xff] %v4672_v56  ;;  %4689 = vst [vmem:[#allocation2 + $0x20] sm:$0xff] %v4674_v58 }
 0x64a   : > { %4690 = vst [vmem:[#allocation2 + $0x8] sm:$0xff] %v4590_v51  ;;  %4691 = vst [vmem:[#allocation2 + $0x38] sm:$0xff] %v4592_v54 }
 0x64b   : > { %4692 = vst [vmem:[#allocation2 + $0x28] sm:$0xff] %v4633_v53  ;;  %4693 = vst [vmem:[#allocation2 + $0x48] sm:$0xff] %v4635_v55 }
 0x64c   : > { %4694 = vst [vmem:[#allocation2 + $0x10] sm:$0xff] %v4676_v59  ;;  %4695 = vst [vmem:[#allocation2 + $0x40] sm:$0xff] %v4678_v60 }
 0x64d PF: > { %p8928_p5 = scmp.le.s32.totalorder %s10613_s30, 0 }
 0x64f   : > { %4699 = sbr.rel (%p8928_p5) target bundleno = 1629 (0x65d), region = 198 }
 0x654   : > { %v4700_v61 = vld [vmem:[#allocation2 + $0x30] sm:$0xff]  ;;  %v4701_v63 = vld [vmem:[#allocation2] sm:$0xff]  ;;  %v4702_v0 = vld [vmem:[#allocation2 + $0x58] sm:$0xff] }
 0x655   : > { %v4712_v1 = vadd.f32 %v4700_v61, %v4586_v47  ;;  %v4713_v2 = vadd.f32 %v4701_v63, %v4588_v49  ;;  %v4714_v3 = vadd.f32 %v4702_v0, %v4629_v48  ;;  %v4703_v4 = vld [vmem:[#allocation2 + $0x18] sm:$0xff]  ;;  %v4704_v5 = vld [vmem:[#allocation2 + $0x50] sm:$0xff]  ;;  %v4705_v6 = vld [vmem:[#allocation2 + $0x20] sm:$0xff] }
 0x656   : > { %v4715_v7 = vadd.f32 %v4703_v4, %v4631_v50  ;;  %v4716_v8 = vadd.f32 %v4704_v5, %v4672_v56  ;;  %v4717_v9 = vadd.f32 %v4705_v6, %v4674_v58  ;;  %v4706_v11 = vld [vmem:[#allocation2 + $0x8] sm:$0xff]  ;;  %v4707_v52 = vld [vmem:[#allocation2 + $0x38] sm:$0xff]  ;;  %v4710_v17 = vld [vmem:[#allocation2 + $0x10] sm:$0xff] }
 0x657   : > { %v4708_v12 = vld [vmem:[#allocation2 + $0x28] sm:$0xff]  ;;  %4724 = vst [vmem:[#allocation2 + $0x30] sm:$0xff] %v4712_v1  ;;  %4725 = vst [vmem:[#allocation2] sm:$0xff] %v4713_v2  ;;  %v4718_v13 = vadd.f32 %v4706_v11, %v4590_v51  ;;  %v4719_v14 = vadd.f32 %v4707_v52, %v4592_v54  ;;  %v4711_v18 = vld [vmem:[#allocation2 + $0x40] sm:$0xff]  ;;  %v4722_v21 = vadd.f32 %v4710_v17, %v4676_v59 }
 0x658   : > { %4726 = vst [vmem:[#allocation2 + $0x58] sm:$0xff] %v4714_v3  ;;  %v4720_v15 = vadd.f32 %v4708_v12, %v4633_v53  ;;  %v4709_v16 = vld [vmem:[#allocation2 + $0x48] sm:$0xff]  ;;  %4727 = vst [vmem:[#allocation2 + $0x18] sm:$0xff] %v4715_v7  ;;  %v4723_v22 = vadd.f32 %v4711_v18, %v4678_v60 }
 0x659   : > { %4728 = vst [vmem:[#allocation2 + $0x50] sm:$0xff] %v4716_v8  ;;  %4729 = vst [vmem:[#allocation2 + $0x20] sm:$0xff] %v4717_v9  ;;  %v4721_v20 = vadd.f32 %v4709_v16, %v4635_v55 }
 0x65a   : > { %4730 = vst [vmem:[#allocation2 + $0x8] sm:$0xff] %v4718_v13  ;;  %4731 = vst [vmem:[#allocation2 + $0x38] sm:$0xff] %v4719_v14 }
 0x65b   : > { %4732 = vst [vmem:[#allocation2 + $0x28] sm:$0xff] %v4720_v15  ;;  %4733 = vst [vmem:[#allocation2 + $0x48] sm:$0xff] %v4721_v20 }
 0x65c   : > { %4734 = vst [vmem:[#allocation2 + $0x10] sm:$0xff] %v4722_v21  ;;  %4735 = vst [vmem:[#allocation2 + $0x40] sm:$0xff] %v4723_v22 }
 0x65d PF: > { %p8929_p6 = scmp.ne.s32.totalorder %s10613_s30, 3 }
 0x65f   : > { %4739 = sbr.rel (%p8929_p6) target bundleno = 3034 (0xbda), region = 202 }
 0x664   : > { %v12429_v24 = vsub.s32 2, %v12245_v57  ;;  %v12432_v25 = vsub.s32 3, %v12245_v57  ;;  %v4740_v26 = vld [vmem:[#allocation2 + $0x30] sm:$0xff]  ;;  %v12435_v27 = vsub.s32 4, %v12245_v57  ;;  %v12438_v28 = vsub.s32 5, %v12245_v57  ;;  %v4741_v29 = vld [vmem:[#allocation2] sm:$0xff] }
 0x665   : > { %v4742_v30 = vld [vmem:[#allocation2 + $0x58] sm:$0xff]  ;;  %v4744_v32 = vld [vmem:[#allocation2 + $0x50] sm:$0xff]  ;;  %v4745_v33 = vld [vmem:[#allocation2 + $0x20] sm:$0xff] }
 0x666   : > { %v4743_v31 = vld [vmem:[#allocation2 + $0x18] sm:$0xff]  ;;  %v4752_v34 = vld [vmem:[%s12637_s10] sm:$0x3f]  ;;  %v4746_v35 = vld [vmem:[#allocation2 + $0x8] sm:$0xff] }
 0x667   : > { %v4747_v36 = vld [vmem:[#allocation2 + $0x38] sm:$0xff]  ;;  %v4748_v37 = vld [vmem:[#allocation2 + $0x28] sm:$0xff]  ;;  %v4757_v38 = vrot.slane %v4752_v34, %v12252_v62  ;;  %v4761_v39 = vrot.slane %v4752_v34, %v12272_v10  ;;  %v4765_v23 = vrot.slane %v4752_v34, %v12429_v24  ;;  %v4769_v57 = vrot.slane %v4752_v34, %v12432_v25  ;;  %v4750_v19 = vld [vmem:[#allocation2 + $0x10] sm:$0xff] }
 0x668   : > { %v4749_v40 = vld [vmem:[#allocation2 + $0x48] sm:$0xff]  ;;  %v4751_v41 = vld [vmem:[#allocation2 + $0x40] sm:$0xff]  ;;  %v4773_v42 = vrot.slane %v4752_v34, %v12435_v27  ;;  %v4777_v43 = vrot.slane %v4752_v34, %v12438_v28 }
 0x669   : > { %v12449_v44 = vadd.f32 %v4757_v38, %v4740_v26  ;;  %v4785_v45 = vadd.f32 %v4761_v39, %v4741_v29  ;;  %v12451_v46 = vadd.f32 %v4765_v23, %v4742_v30  ;;  %v4787_v47 = vadd.f32 %v4769_v57, %v4743_v31 }
 0x66a   : > { %v12453_v48 = vadd.f32 %v4773_v42, %v4744_v32  ;;  %v12455_v49 = vadd.f32 %v4777_v43, %v4745_v33  ;;  %v12457_v50 = vadd.f32 %v4757_v38, %v4746_v35  ;;  %v4791_v51 = vadd.f32 %v4761_v39, %v4747_v36 }
 0x66b   : > { %v12459_v53 = vadd.f32 %v4765_v23, %v4748_v37  ;;  %v4793_v54 = vadd.f32 %v4769_v57, %v4749_v40  ;;  %v12461_v55 = vadd.f32 %v4773_v42, %v4750_v19  ;;  %v12463_v56 = vadd.f32 %v4777_v43, %v4751_v41 }
 0x66c   : > { %10496 = dma.done.wait [#allocation6], 24576 }
 0x66d   : > { %10497 = vsyncadd [#allocation6], 4294942720  ;;  %v12465_v58 = vpack.c.bf16 %v4791_v51, %v4785_v45  ;;  %v12467_v59 = vpack.c.bf16 %v4793_v54, %v4787_v47  ;;  %v4834_v60 = vld [vmem:[#allocation3 + $0x560] sm:$0xff]  ;;  %v4830_v3 = vld [vmem:[#allocation3 + $0x68] sm:$0xff] }
 0x66e   : > { %v4836_v61 = vld [vmem:[#allocation3 + $0x5a0] sm:$0xff]  ;;  %v4832_v4 = vld [vmem:[#allocation3 + $0x528] sm:$0xff]  ;;  %v10046_v26 = vld [vmem:[#allocation3 + $0x35c] ss:$-712 sps:$4 sm:$0xff]  }
 0x66f   : > { %6012 = vmatprep.mubr.bf16.mxu0 %v12465_v58  ;;  %6055 = vmatprep.mubr.bf16.mxu1 %v12467_v59  ;;  %v8959_v63 = vcombine.high %v4834_v60, %v4836_v61  ;;  %v10020_v0 = vld [vmem:[#allocation3 + $0x1d4] ss:$464 sps:$4 sm:$0xff]   ;;  %v8958_v1 = vcombine.low %v4834_v60, %v4836_v61  ;;  %v10022_v2 = vld [vmem:[#allocation3 + $0x1d0] ss:$464 sps:$4 sm:$0xff]   ;;  %v8955_v5 = vcombine.high %v4830_v3, %v4832_v4  ;;  %v10026_v9 = vld [vmem:[#allocation3 + $0x59c] ss:$-272 sps:$4 sm:$0xff]  }
 0x670   : > { %6023 = vmatprep.subr.bf16.mxu1 %v10020_v0  ;;  %v10023_v6 = vld [vmem:[#allocation3 + $0x41c] ss:$-88 sps:$4 sm:$0xff]   ;;  %v10025_v7 = vld [vmem:[#allocation3 + $0x418] ss:$-88 sps:$4 sm:$0xff]   ;;  %v8954_v8 = vcombine.low %v4830_v3, %v4832_v4  ;;  %v10028_v11 = vld [vmem:[#allocation3 + $0x5d4] ss:$-200 sps:$4 sm:$0xff]  }
 0x671   : > { %5980 = vmatprep.subr.bf16.mxu0 %v8959_v63  ;;  %6024 = vmatpush1.bf16.msra.mxu1 %v10022_v2  ;;  %v10030_v52 = vld [vmem:[#allocation3 + $0x598] ss:$-272 sps:$4 sm:$0xff]   ;;  %v10032_v13 = vld [vmem:[#allocation3 + $0x84] ss:$1112 sps:$4 sm:$0xff]   ;;  %v10040_v18 = vld [vmem:[#allocation3 + $0x34c] ss:$200 sps:$4 sm:$0xff]  }
 0x672   : > { %5981 = vmatpush1.bf16.msra.mxu0 %v8958_v1  ;;  %6025 = vmatprep.subr.bf16.mxu1 %v10023_v6  ;;  %v10031_v12 = vld [vmem:[#allocation3 + $0x5d0] ss:$-200 sps:$4 sm:$0xff]   ;;  %v10034_v14 = vld [vmem:[#allocation3 + $0x29c] ss:$-496 sps:$4 sm:$0xff]   ;;  %v10036_v15 = vld [vmem:[#allocation3 + $0x80] ss:$1112 sps:$4 sm:$0xff]  }
 0x673   : > { %5982 = vmatprep.subr.bf16.mxu0 %v8955_v5  ;;  %v10037_v16 = vld [vmem:[#allocation3 + $0x298] ss:$-496 sps:$4 sm:$0xff]   ;;  %v10038_v17 = vld [vmem:[#allocation3 + $0xbc] ss:$136 sps:$4 sm:$0xff]   ;;  %v4870_v33 = vld [vmem:[#allocation3 + $0x350] sm:$0xff] }
 0x674   : > { %v10042_v20 = vld [vmem:[#allocation3 + $0xb8] ss:$136 sps:$4 sm:$0xff]   ;;  %v10043_v21 = vld [vmem:[#allocation3 + $0x348] ss:$200 sps:$4 sm:$0xff]   ;;  %v10044_v22 = vld [vmem:[#allocation3 + $0x54c] ss:$-464 sps:$4 sm:$0xff]  }
 0x675   : > { %6026 = vmatpush1.bf16.msra.mxu1 %v10025_v7  ;;  %v10048_v29 = vld [vmem:[#allocation3 + $0x548] ss:$-464 sps:$4 sm:$0xff]   ;;  %v10050_v31 = vld [vmem:[#allocation3 + $0x4bc] ss:$-584 sps:$4 sm:$0xff]   ;;  %v4866_v39 = vld [vmem:[#allocation3 + $0x40] sm:$0xff] }
 0x676   : > { %5983 = vmatpush1.bf16.msra.mxu0 %v8954_v8  ;;  %6027 = vmatprep.subr.bf16.mxu1 %v10028_v11  ;;  %v10049_v30 = vld [vmem:[#allocation3 + $0x358] ss:$-712 sps:$4 sm:$0xff]   ;;  %v10052_v32 = vld [vmem:[#allocation3 + $0x3bc] ss:$-624 sps:$4 sm:$0xff]   ;;  %v4868_v23 = vld [vmem:[#allocation3 + $0x100] sm:$0xff] }
 0x677   : > { %5984 = vmatprep.subr.bf16.mxu0 %v10026_v9  ;;  %v4872_v34 = vld [vmem:[#allocation3 + $0x470] sm:$0xff]  ;;  %v10055_v36 = vld [vmem:[#allocation3 + $0x3b8] ss:$-624 sps:$4 sm:$0xff]   ;;  %v8991_v19 = vcombine.high %v4866_v39, %v4868_v23  ;;  %v10059_v41 = vld [vmem:[#allocation3 + $0x124] ss:$-136 sps:$4 sm:$0xff]   ;;  %v8990_v45 = vcombine.low %v4866_v39, %v4868_v23  ;;  %v12473_v39 = vpack.c.bf16 %v12457_v50, %v12449_v44  ;;  %v12477_v23 = vpack.c.bf16 %v12459_v53, %v12451_v46 }
 0x678   : > { %v10054_v35 = vld [vmem:[#allocation3 + $0x4b8] ss:$-584 sps:$4 sm:$0xff]   ;;  %v10056_v37 = vld [vmem:[#allocation3 + $0x4cc] ss:$-504 sps:$4 sm:$0xff]   ;;  %v8995_v38 = vcombine.high %v4870_v33, %v4872_v34  ;;  %v8994_v40 = vcombine.low %v4870_v33, %v4872_v34  ;;  %v10067_v4 = vld [vmem:[#allocation3 + $0x228] ss:$-136 sps:$4 sm:$0xff]  }
 0x679   : > { %6028 = vmatpush1.bf16.msra.mxu1 %v10031_v12  ;;  %v10058_v57 = vld [vmem:[#allocation3 + $0x4c8] ss:$-504 sps:$4 sm:$0xff]   ;;  %v10061_v47 = vld [vmem:[#allocation3 + $0x120] ss:$-136 sps:$4 sm:$0xff]   ;;  %v10062_v51 = vld [vmem:[#allocation3 + $0x4c] ss:$168 sps:$4 sm:$0xff]  }
 0x67a   : > { %5985 = vmatpush1.bf16.msra.mxu0 %v10030_v52  ;;  %6029 = vmatprep.subr.bf16.mxu1 %v10034_v14  ;;  %v4926_v42 = vld [vmem:[#allocation3 + $0x70] sm:$0xff]  ;;  %v4858_v60 = vld [vmem:[#allocation3 + $0x2b8] sm:$0xff]  ;;  %v10065_v2 = vld [vmem:[#allocation3 + $0x22c] ss:$-136 sps:$4 sm:$0xff]  }
 0x67b   : > { %5986 = vmatprep.subr.bf16.mxu0 %v10032_v13  ;;  %v4928_v43 = vld [vmem:[#allocation3 + $0x130] sm:$0xff]  ;;  %v4860_v61 = vld [vmem:[#allocation3 + $0x5b8] sm:$0xff]  ;;  %v10070_v6 = vld [vmem:[#allocation3 + $0x464] ss:$296 sps:$4 sm:$0xff]  }
 0x67c   : > { %v9051_v54 = vcombine.high %v4926_v42, %v4928_v43  ;;  %v10064_v63 = vld [vmem:[#allocation3 + $0x48] ss:$168 sps:$4 sm:$0xff]   ;;  %v9050_v0 = vcombine.low %v4926_v42, %v4928_v43  ;;  %v8983_v1 = vcombine.high %v4858_v60, %v4860_v61  ;;  %v8982_v3 = vcombine.low %v4858_v60, %v4860_v61  ;;  %v10068_v5 = vld [vmem:[#allocation3 + $0x2cc] ss:$616 sps:$4 sm:$0xff]   ;;  %v4823_v43 = vld [vmem:[#allocation3 + $0x340] sm:$0xff] }
 0x67d   : > { %6030 = vmatpush1.bf16.msra.mxu1 %v10037_v16  ;;  %v4914_v7 = vld [vmem:[#allocation3 + $0x3e8] sm:$0xff]  ;;  %v12481_v42 = vpack.c.bf16 %v12463_v56, %v12455_v49  ;;  %v10098_v46 = vld [vmem:[#allocation3 + $0x258] ss:$760 sps:$4 sm:$0xff]   ;;  %v10106_v53 = vld [vmem:[#allocation3 + $0x444] ss:$-1008 sps:$4 sm:$0xff]  }
 0x67e   : > { %5987 = vmatpush1.bf16.msra.mxu0 %v10036_v15  ;;  %6031 = vmatprep.subr.bf16.mxu1 %v10040_v18  ;;  %v4916_v8 = vld [vmem:[#allocation3 + $0x208] sm:$0xff]  ;;  %v10079_v15 = vld [vmem:[#allocation3 + $0x334] ss:$208 sps:$4 sm:$0xff]   ;;  %v4844_v18 = vld [vmem:[#allocation3 + $0x398] sm:$0xff] }
 0x67f   : > { %5988 = vmatprep.subr.bf16.mxu0 %v10038_v17  ;;  %v10072_v9 = vld [vmem:[#allocation3 + $0x2c8] ss:$616 sps:$4 sm:$0xff]   ;;  %v10074_v52 = vld [vmem:[#allocation3 + $0x5cc] ss:$-1256 sps:$4 sm:$0xff]   ;;  %v9039_v12 = vcombine.high %v4914_v7, %v4916_v8  ;;  %v9038_v16 = vcombine.low %v4914_v7, %v4916_v8  ;;  %v4842_v17 = vld [vmem:[#allocation3 + $0x438] sm:$0xff] }
 0x680   : > { %v10073_v11 = vld [vmem:[#allocation3 + $0x460] ss:$296 sps:$4 sm:$0xff]   ;;  %v10077_v14 = vld [vmem:[#allocation3 + $0x46c] ss:$-952 sps:$4 sm:$0xff]   ;;  %v10112_v61 = vld [vmem:[#allocation3 + $0xc4] ss:$216 sps:$4 sm:$0xff]  }
 0x681   : > { %6032 = vmatpush1.bf16.msra.mxu1 %v10043_v21  ;;  %v10076_v13 = vld [vmem:[#allocation3 + $0x5c8] ss:$-1256 sps:$4 sm:$0xff]   ;;  %v4908_v21 = vld [vmem:[#allocation3 + $0x5f0] sm:$0xff]  ;;  %v10083_v33 = vld [vmem:[#allocation3 + $0x2ac] ss:$720 sps:$4 sm:$0xff]  }
 0x682   : > { %5989 = vmatpush1.bf16.msra.mxu0 %v10042_v20  ;;  %6033 = vmatprep.subr.bf16.mxu1 %v10046_v26  ;;  %v4906_v20 = vld [vmem:[#allocation3 + $0x570] sm:$0xff]  ;;  %v10103_v50 = vld [vmem:[#allocation3 + $0x1bc] ss:$-144 sps:$4 sm:$0xff]   ;;  %v10101_v49 = vld [vmem:[#allocation3 + $0x1b8] ss:$-144 sps:$4 sm:$0xff]  }
 0x683   : > { %5990 = vmatprep.subr.bf16.mxu0 %v10044_v22  ;;  %v10081_v22 = vld [vmem:[#allocation3 + $0x468] ss:$-952 sps:$4 sm:$0xff]   ;;  %v10085_v34 = vld [vmem:[#allocation3 + $0x24c] ss:$-88 sps:$4 sm:$0xff]  }
 0x684   : > { %v10082_v26 = vld [vmem:[#allocation3 + $0x330] ss:$208 sps:$4 sm:$0xff]   ;;  %v10124_v8 = vld [vmem:[#allocation3 + $0x14] ss:$1320 sps:$4 sm:$0xff]  }
 0x685   : > { %6034 = vmatpush1.bf16.msra.mxu1 %v10049_v30  ;;  %v9031_v30 = vcombine.high %v4906_v20, %v4908_v21  ;;  %v10095_v44 = vld [vmem:[#allocation3 + $0x430] ss:$-872 sps:$4 sm:$0xff]  }
 0x686   : > { %5991 = vmatpush1.bf16.msra.mxu0 %v10048_v29  ;;  %6035 = vmatprep.subr.bf16.mxu1 %v10052_v32  ;;  %v8967_v29 = vcombine.high %v4842_v17, %v4844_v18  ;;  %v9030_v32 = vcombine.low %v4906_v20, %v4908_v21  ;;  %v10104_v56 = vld [vmem:[#allocation3 + $0x440] ss:$-1008 sps:$4 sm:$0xff]  }
 0x687   : > { %5992 = vmatprep.subr.bf16.mxu0 %v10050_v31  ;;  %v8966_v31 = vcombine.low %v4842_v17, %v4844_v18  ;;  %v10130_v17 = vld [vmem:[#allocation3 + $0x524] ss:$-120 sps:$4 sm:$0xff]   ;;  %v10133_v18 = vld [vmem:[#allocation3 + $0x2b4] ss:$-344 sps:$4 sm:$0xff]  }
 0x688   : > { %v4863_v20 = vld [vmem:[#allocation3 + $0x190] sm:$0xff] }
 0x689   : > { %6036 = vmatpush1.bf16.msra.mxu1 %v10055_v36  ;;  %v10088_v36 = vld [vmem:[#allocation3 + $0x248] ss:$-88 sps:$4 sm:$0xff]  }
 0x68a   : > { %5993 = vmatpush1.bf16.msra.mxu0 %v10054_v35  ;;  %6037 = vmatprep.subr.bf16.mxu1 %v8995_v38  ;;  %v10087_v35 = vld [vmem:[#allocation3 + $0x2a8] ss:$720 sps:$4 sm:$0xff]   ;;  %v10094_v38 = vld [vmem:[#allocation3 + $0x484] ss:$-720 sps:$4 sm:$0xff]  }
 0x68b   : > { %5994 = vmatprep.subr.bf16.mxu0 %v10056_v37  ;;  %v10091_v37 = vld [vmem:[#allocation3 + $0x18c] ss:$144 sps:$4 sm:$0xff]   ;;  %v4865_v21 = vld [vmem:[#allocation3 + $0x230] sm:$0xff] }
 0x68d   : > { %6038 = vmatpush1.bf16.msra.mxu1 %v8994_v40  ;;  %v10092_v40 = vld [vmem:[#allocation3 + $0x480] ss:$-720 sps:$4 sm:$0xff]  }
 0x68e   : > { %5995 = vmatpush1.bf16.msra.mxu0 %v10058_v57  ;;  %6039 = vmatprep.subr.bf16.mxu1 %v10059_v41  ;;  %v10089_v57 = vld [vmem:[#allocation3 + $0x188] ss:$144 sps:$4 sm:$0xff]   ;;  %v10100_v41 = vld [vmem:[#allocation3 + $0x25c] ss:$760 sps:$4 sm:$0xff]  }
 0x68f   : > { %5996 = vmatprep.subr.bf16.mxu0 %v8991_v19  ;;  %v10097_v19 = vld [vmem:[#allocation3 + $0x434] ss:$-872 sps:$4 sm:$0xff]  }
 0x691   : > { %6040 = vmatpush2.bf16.msra.mxu1 %v10061_v47  ;;  %v10109_v47 = vld [vmem:[#allocation3 + $0x26c] ss:$-144 sps:$4 sm:$0xff]  }
 0x692   : > { %5997 = vmatpush2.bf16.msra.mxu0 %v8990_v45  ;;  %6041 = vmatprep.subr.bf16.mxu1 %v9051_v54  ;;  %v4825_v45 = vld [vmem:[#allocation3 + $0x360] sm:$0xff]  ;;  %v10107_v54 = vld [vmem:[#allocation3 + $0x268] ss:$-144 sps:$4 sm:$0xff]  }
 0x693   : > { %5998 = vmatprep.subr.bf16.mxu0 %v10062_v51  ;;  %v8949_v51 = vcombine.high %v4823_v43, %v4825_v45  ;;  %v8948_v60 = vcombine.low %v4823_v43, %v4825_v45  ;;  %v10157_v45 = vld [vmem:[#allocation3 + $0x2e4] ss:$792 sps:$4 sm:$0xff]  }
 0x695   : > { %6042 = vmatpush2.bf16.msra.mxu1 %v9050_v0  ;;  %v10110_v0 = vld [vmem:[#allocation3 + $0xc0] ss:$216 sps:$4 sm:$0xff]  }
 0x696   : > { %5999 = vmatpush2.bf16.msra.mxu0 %v10064_v63  ;;  %6043 = vmatprep.subr.bf16.mxu1 %v10065_v2  ;;  %v10115_v63 = vld [vmem:[#allocation3 + $0x36c] ss:$-360 sps:$4 sm:$0xff]  }
 0x697   : > { %6000 = vmatprep.subr.bf16.mxu0 %v8983_v1  ;;  %v10118_v1 = vld [vmem:[#allocation3 + $0x494] ss:$-368 sps:$4 sm:$0xff]   ;;  %v10121_v2 = vld [vmem:[#allocation3 + $0x4fc] ss:$-528 sps:$4 sm:$0xff]  }
 0x699   : > { %6044 = vmatpush2.bf16.msra.mxu1 %v10067_v4  ;;  %v4940_v4 = vld [vmem:[#allocation3 + $0x60] sm:$0xff] }
 0x69a   : > { %6001 = vmatpush2.bf16.msra.mxu0 %v8982_v3  ;;  %6045 = vmatprep.subr.bf16.mxu1 %v10070_v6  ;;  %v4938_v3 = vld [vmem:[#allocation3 + $0x20] sm:$0xff]  ;;  %v10119_v6 = vld [vmem:[#allocation3 + $0x4f8] ss:$-528 sps:$4 sm:$0xff]  }
 0x69b   : > { %6002 = vmatprep.subr.bf16.mxu0 %v10068_v5  ;;  %v10116_v5 = vld [vmem:[#allocation3 + $0x490] ss:$-368 sps:$4 sm:$0xff]   ;;  %v9063_v7 = vcombine.high %v4938_v3, %v4940_v4 }
 0x69d   : > { %6046 = vmatpush2.bf16.msra.mxu1 %v10073_v11  ;;  %v4936_v11 = vld [vmem:[#allocation3 + $0x4c0] sm:$0xff] }
 0x69e   : > { %6003 = vmatpush2.bf16.msra.mxu0 %v10072_v9  ;;  %6047 = vmatprep.subr.bf16.mxu1 %v9039_v12  ;;  %v4934_v9 = vld [vmem:[#allocation3 + $0x240] sm:$0xff]  ;;  %v10122_v12 = vld [vmem:[#allocation3 + $0x10] ss:$1320 sps:$4 sm:$0xff]  }
 0x69f   : > { %6004 = vmatprep.subr.bf16.mxu0 %v10074_v52  ;;  %v9062_v52 = vcombine.low %v4938_v3, %v4940_v4  ;;  %v12489_v3 = vpack.c.bf16 %v12461_v55, %v12453_v48  ;;  %v10170_v4 = vld [vmem:[#allocation3 + $0x2f8] ss:$-312 sps:$4 sm:$0xff]   ;;  %v10184_v55 = vld [vmem:[#allocation3 + $0x3e4] ss:$-632 sps:$4 sm:$0xff]  }
 0x6a1   : > { %6048 = vmatpush2.bf16.msra.mxu1 %v9038_v16  ;;  %v10125_v16 = vld [vmem:[#allocation3 + $0x448] ss:$184 sps:$4 sm:$0xff]  }
 0x6a2   : > { %6005 = vmatpush2.bf16.msra.mxu0 %v10076_v13  ;;  %6049 = vmatprep.subr.bf16.mxu1 %v10079_v15  ;;  %v9059_v13 = vcombine.high %v4934_v9, %v4936_v11  ;;  %v9058_v15 = vcombine.low %v4934_v9, %v4936_v11  ;;  %v4893_v9 = vld [vmem:[#allocation3 + $0x160] sm:$0xff] }
 0x6a3   : > { %6006 = vmatprep.subr.bf16.mxu0 %v10077_v14  ;;  %v10127_v14 = vld [vmem:[#allocation3 + $0x44c] ss:$184 sps:$4 sm:$0xff]   ;;  %v10176_v11 = vld [vmem:[#allocation3 + $0x458] ss:$-952 sps:$4 sm:$0xff]  }
 0x6a5   : > { %6050 = vmatpush2.bf16.msra.mxu1 %v10082_v26  ;;  %v10131_v26 = vld [vmem:[#allocation3 + $0x2b0] ss:$-344 sps:$4 sm:$0xff]  }
 0x6a6   : > { %6007 = vmatpush2.bf16.msra.mxu0 %v10081_v22  ;;  %6051 = vmatprep.subr.bf16.mxu1 %v9031_v30  ;;  %v10128_v22 = vld [vmem:[#allocation3 + $0x520] ss:$-120 sps:$4 sm:$0xff]   ;;  %v8989_v30 = vcombine.high %v4863_v20, %v4865_v21 }
 0x6a7   : > { %6008 = vmatprep.subr.bf16.mxu0 %v8967_v29  ;;  %v10136_v29 = vld [vmem:[#allocation3 + $0x4e4] ss:$-216 sps:$4 sm:$0xff]  }
 0x6a9   : > { %6052 = vmatpush2.bf16.msra.mxu1 %v9030_v32  ;;  %v8988_v32 = vcombine.low %v4863_v20, %v4865_v21  ;;  %v4943_v21 = vld [vmem:[#allocation3 + $0x310] sm:$0xff] }
 0x6aa   : > { %6009 = vmatpush2.bf16.msra.mxu0 %v8966_v31  ;;  %6053 = vmatprep.subr.bf16.mxu1 %v10085_v34  ;;  %v10134_v31 = vld [vmem:[#allocation3 + $0x4e0] ss:$-216 sps:$4 sm:$0xff]   ;;  %v10142_v34 = vld [vmem:[#allocation3 + $0x8c] ss:$592 sps:$4 sm:$0xff]  }
 0x6ab   : > { %6010 = vmatprep.subr.bf16.mxu0 %v10083_v33  ;;  %v10139_v33 = vld [vmem:[#allocation3 + $0x42c] ss:$240 sps:$4 sm:$0xff]  }
 0x6ad   : > { %6054 = vmatpush2.bf16.msra.mxu1 %v10088_v36  ;;  %v10140_v36 = vld [vmem:[#allocation3 + $0x88] ss:$592 sps:$4 sm:$0xff]  }
 0x6ae   : > { %6011 = vmatpush2.bf16.msra.mxu0 %v10087_v35  ;;  %6109 = vmatprep.subr.bf16.mxu1 %v10094_v38  ;;  %v10137_v35 = vld [vmem:[#allocation3 + $0x428] ss:$240 sps:$4 sm:$0xff]   ;;  %v10148_v38 = vld [vmem:[#allocation3 + $0x23c] ss:$-568 sps:$4 sm:$0xff]  }
 0x6af   : > { %6066 = vmatprep.subr.bf16.mxu0 %v10091_v37  ;;  %v10145_v37 = vld [vmem:[#allocation3 + $0x154] ss:$1072 sps:$4 sm:$0xff]  }
 0x6b0   : > { %6056 = vmatmul.mubr.bf16.vlgmr.msra.gmra.mxu1 %v12477_v23 }
 0x6b1   : > { %6013 = vmatmul.mubr.bf16.vlgmr.msra.gmra.mxu0 %v12473_v39  ;;  %6110 = vmatpush1.bf16.msra.mxu1 %v10092_v40  ;;  %v10146_v40 = vld [vmem:[#allocation3 + $0x238] ss:$-568 sps:$4 sm:$0xff]  }
 0x6b2   : > { %6067 = vmatpush1.bf16.msra.mxu0 %v10089_v57  ;;  %6111 = vmatprep.subr.bf16.mxu1 %v10100_v41  ;;  %v10143_v57 = vld [vmem:[#allocation3 + $0x150] ss:$1072 sps:$4 sm:$0xff]   ;;  %v10154_v41 = vld [vmem:[#allocation3 + $0x4b4] ss:$296 sps:$4 sm:$0xff]  }
 0x6b3   : > { %6068 = vmatprep.subr.bf16.mxu0 %v10097_v19  ;;  %6098 = vmatprep.mubr.bf16.mxu0 %v12481_v42  ;;  %v10151_v19 = vld [vmem:[#allocation3 + $0x174] ss:$304 sps:$4 sm:$0xff]  }
 0x6b4   : > { %6141 = vmatprep.mubr.bf16.mxu1 %v12465_v58  ;;  %v10113_v58 = vld [vmem:[#allocation3 + $0x368] ss:$-360 sps:$4 sm:$0xff]  }
 0x6b5   : > { %6112 = vmatpush1.bf16.msra.mxu1 %v10098_v46  ;;  %v4976_v46 = vld [vmem:[#allocation3 + $0x5e0] sm:$0xff] }
 0x6b6   : > { %6069 = vmatpush1.bf16.msra.mxu0 %v10095_v44  ;;  %6113 = vmatprep.subr.bf16.mxu1 %v10106_v53  ;;  %v4974_v44 = vld [vmem:[#allocation3 + $0x220] sm:$0xff]  ;;  %v10152_v53 = vld [vmem:[#allocation3 + $0x4b0] ss:$296 sps:$4 sm:$0xff]  }
 0x6b7   : > { %6070 = vmatprep.subr.bf16.mxu0 %v10103_v50  ;;  %v10149_v50 = vld [vmem:[#allocation3 + $0x170] ss:$304 sps:$4 sm:$0xff]   ;;  %v9099_v43 = vcombine.high %v4974_v44, %v4976_v46 }
 0x6b9   : > { %6114 = vmatpush1.bf16.msra.mxu1 %v10104_v56  ;;  %v10155_v56 = vld [vmem:[#allocation3 + $0x2e0] ss:$792 sps:$4 sm:$0xff]  }
 0x6ba   : > { %6071 = vmatpush1.bf16.msra.mxu0 %v10101_v49  ;;  %6115 = vmatprep.subr.bf16.mxu1 %v8949_v51  ;;  %v9098_v49 = vcombine.low %v4974_v44, %v4976_v46  ;;  %v10163_v51 = vld [vmem:[#allocation3 + $0x264] ss:$304 sps:$4 sm:$0xff]   ;;  %v10208_v44 = vld [vmem:[#allocation3 + $0x32c] ss:$16 sps:$4 sm:$0xff]  }
 0x6bb   : > { %6072 = vmatprep.subr.bf16.mxu0 %v10109_v47  ;;  %v10160_v47 = vld [vmem:[#allocation3 + $0x34] ss:$1424 sps:$4 sm:$0xff]  }
 0x6bc   : > { %v10211_v46 = vld [vmem:[#allocation3 + $0x11c] ss:$312 sps:$4 sm:$0xff]  }
 0x6bd   : > { %6116 = vmatpush1.bf16.msra.mxu1 %v8948_v60  ;;  %v10161_v60 = vld [vmem:[#allocation3 + $0x260] ss:$304 sps:$4 sm:$0xff]  }
 0x6be   : > { %6073 = vmatpush1.bf16.msra.mxu0 %v10107_v54  ;;  %6117 = vmatprep.subr.bf16.mxu1 %v10115_v63  ;;  %v10158_v54 = vld [vmem:[#allocation3 + $0x30] ss:$1424 sps:$4 sm:$0xff]   ;;  %v10169_v63 = vld [vmem:[#allocation3 + $0x384] ss:$-144 sps:$4 sm:$0xff]  }
 0x6bf   : > { %6074 = vmatprep.subr.bf16.mxu0 %v10112_v61  ;;  %v10166_v61 = vld [vmem:[#allocation3 + $0x30c] ss:$-752 sps:$4 sm:$0xff]  }
 0x6c1   : > { %6118 = vmatpush1.bf16.msra.mxu1 %v10113_v58  ;;  %v10167_v58 = vld [vmem:[#allocation3 + $0x380] ss:$-144 sps:$4 sm:$0xff]  }
 0x6c2   : > { %6075 = vmatpush1.bf16.msra.mxu0 %v10110_v0  ;;  %6119 = vmatprep.subr.bf16.mxu1 %v10121_v2  ;;  %v10164_v0 = vld [vmem:[#allocation3 + $0x308] ss:$-752 sps:$4 sm:$0xff]   ;;  %v10175_v2 = vld [vmem:[#allocation3 + $0x17c] ss:$80 sps:$4 sm:$0xff]  }
 0x6c3   : > { %6076 = vmatprep.subr.bf16.mxu0 %v10118_v1  ;;  %v10172_v1 = vld [vmem:[#allocation3 + $0x2fc] ss:$-312 sps:$4 sm:$0xff]  }
 0x6c5   : > { %6120 = vmatpush1.bf16.msra.mxu1 %v10119_v6  ;;  %v10178_v6 = vld [vmem:[#allocation3 + $0x45c] ss:$-952 sps:$4 sm:$0xff]  }
 0x6c6   : > { %6077 = vmatpush1.bf16.msra.mxu0 %v10116_v5  ;;  %6121 = vmatprep.subr.bf16.mxu1 %v10124_v8  ;;  %v10173_v5 = vld [vmem:[#allocation3 + $0x178] ss:$80 sps:$4 sm:$0xff]   ;;  %v4891_v8 = vld [vmem:[#allocation3 + $0x420] sm:$0xff] }
 0x6c7   : > { %6078 = vmatprep.subr.bf16.mxu0 %v9063_v7  ;;  %v10181_v7 = vld [vmem:[#allocation3 + $0x47c] ss:$-720 sps:$4 sm:$0xff]   ;;  %v9017_v48 = vcombine.high %v4891_v8, %v4893_v9 }
 0x6c9   : > { %6122 = vmatpush1.bf16.msra.mxu1 %v10122_v12  ;;  %v9016_v12 = vcombine.low %v4891_v8, %v4893_v9  ;;  %v10235_v8 = vld [vmem:[#allocation3 + $0x5c] ss:$616 sps:$4 sm:$0xff]  }
 0x6ca   : > { %6079 = vmatpush1.bf16.msra.mxu0 %v9062_v52  ;;  %6123 = vmatprep.subr.bf16.mxu1 %v10127_v14  ;;  %v10179_v52 = vld [vmem:[#allocation3 + $0x478] ss:$-720 sps:$4 sm:$0xff]   ;;  %v10187_v14 = vld [vmem:[#allocation3 + $0x4a4] ss:$-80 sps:$4 sm:$0xff]  }
 0x6cb   : > { %6080 = vmatprep.subr.bf16.mxu0 %v9059_v13  ;;  %v10182_v13 = vld [vmem:[#allocation3 + $0x3e0] ss:$-632 sps:$4 sm:$0xff]   ;;  %v10238_v9 = vld [vmem:[#allocation3 + $0x1e4] ss:$496 sps:$4 sm:$0xff]  }
 0x6cd   : > { %6124 = vmatpush1.bf16.msra.mxu1 %v10125_v16  ;;  %v4885_v16 = vld [vmem:[#allocation3 + $0x278] sm:$0xff] }
 0x6ce   : > { %6081 = vmatpush1.bf16.msra.mxu0 %v9058_v15  ;;  %6125 = vmatprep.subr.bf16.mxu1 %v10133_v18  ;;  %v4883_v15 = vld [vmem:[#allocation3 + $0x1f8] sm:$0xff]  ;;  %v10188_v18 = vld [vmem:[#allocation3 + $0x3b0] ss:$-8 sps:$4 sm:$0xff]  }
 0x6cf   : > { %6082 = vmatprep.subr.bf16.mxu0 %v10130_v17  ;;  %v10185_v17 = vld [vmem:[#allocation3 + $0x4a0] ss:$-80 sps:$4 sm:$0xff]   ;;  %v9009_v20 = vcombine.high %v4883_v15, %v4885_v16 }
 0x6d1   : > { %6126 = vmatpush2.bf16.msra.mxu1 %v10131_v26  ;;  %v10191_v26 = vld [vmem:[#allocation3 + $0x540] ss:$-1136 sps:$4 sm:$0xff]  }
 0x6d2   : > { %6083 = vmatpush2.bf16.msra.mxu0 %v10128_v22  ;;  %6127 = vmatprep.subr.bf16.mxu1 %v8989_v30  ;;  %v9008_v22 = vcombine.low %v4883_v15, %v4885_v16  ;;  %v10239_v16 = vld [vmem:[#allocation3 + $0x110] ss:$-8 sps:$4 sm:$0xff]  }
 0x6d3   : > { %6084 = vmatprep.subr.bf16.mxu0 %v10136_v29  ;;  %v10196_v29 = vld [vmem:[#allocation3 + $0x5ac] ss:$-216 sps:$4 sm:$0xff]  }
 0x6d5   : > { %6128 = vmatpush2.bf16.msra.mxu1 %v8988_v32 }
 0x6d6   : > { %6085 = vmatpush2.bf16.msra.mxu0 %v10134_v31  ;;  %6129 = vmatprep.subr.bf16.mxu1 %v10142_v34  ;;  %v10194_v31 = vld [vmem:[#allocation3 + $0x5a8] ss:$-216 sps:$4 sm:$0xff]   ;;  %v10202_v34 = vld [vmem:[#allocation3 + $0x3cc] ss:$40 sps:$4 sm:$0xff]  }
 0x6d7   : > { %6086 = vmatprep.subr.bf16.mxu0 %v10139_v33  ;;  %v10199_v33 = vld [vmem:[#allocation3 + $0x56c] ss:$-616 sps:$4 sm:$0xff]  }
 0x6d9   : > { %6130 = vmatpush2.bf16.msra.mxu1 %v10140_v36  ;;  %v4937_v36 = vld [vmem:[#allocation3 + $0x370] sm:$0xff] }
 0x6da   : > { %6087 = vmatpush2.bf16.msra.mxu0 %v10137_v35  ;;  %6131 = vmatprep.subr.bf16.mxu1 %v10148_v38  ;;  %v4935_v35 = vld [vmem:[#allocation3 + $0x5b0] sm:$0xff] }
 0x6db   : > { %6088 = vmatprep.subr.bf16.mxu0 %v10145_v37  ;;  %v10197_v37 = vld [vmem:[#allocation3 + $0x568] ss:$-616 sps:$4 sm:$0xff]  }
 0x6dc   : > { %v10200_v38 = vld [vmem:[#allocation3 + $0x3c8] ss:$40 sps:$4 sm:$0xff]  }
 0x6dd   : > { %6132 = vmatpush2.bf16.msra.mxu1 %v10146_v40  ;;  %v9061_v40 = vcombine.high %v4935_v35, %v4937_v36 }
 0x6de   : > { %6089 = vmatpush2.bf16.msra.mxu0 %v10143_v57  ;;  %6133 = vmatprep.subr.bf16.mxu1 %v10154_v41  ;;  %v10205_v57 = vld [vmem:[#allocation3 + $0xec] ss:$1032 sps:$4 sm:$0xff]   ;;  %v9060_v41 = vcombine.low %v4935_v35, %v4937_v36 }
 0x6df   : > { %6090 = vmatprep.subr.bf16.mxu0 %v10151_v19  ;;  %v10203_v19 = vld [vmem:[#allocation3 + $0xe8] ss:$1032 sps:$4 sm:$0xff]  }
 0x6e1   : > { %6134 = vmatpush2.bf16.msra.mxu1 %v10152_v53  ;;  %v10209_v53 = vld [vmem:[#allocation3 + $0x118] ss:$312 sps:$4 sm:$0xff]  }
 0x6e2   : > { %6091 = vmatpush2.bf16.msra.mxu0 %v10149_v50  ;;  %6135 = vmatprep.subr.bf16.mxu1 %v10157_v45  ;;  %v10206_v50 = vld [vmem:[#allocation3 + $0x328] ss:$16 sps:$4 sm:$0xff]   ;;  %v10217_v45 = vld [vmem:[#allocation3 + $0x49c] ss:$-1168 sps:$4 sm:$0xff]  }
 0x6e3   : > { %6092 = vmatprep.subr.bf16.mxu0 %v9099_v43  ;;  %v10214_v43 = vld [vmem:[#allocation3 + $0x13c] ss:$984 sps:$4 sm:$0xff]  }
 0x6e5   : > { %6136 = vmatpush2.bf16.msra.mxu1 %v10155_v56  ;;  %v10215_v56 = vld [vmem:[#allocation3 + $0x498] ss:$-1168 sps:$4 sm:$0xff]  }
 0x6e6   : > { %6093 = vmatpush2.bf16.msra.mxu0 %v9098_v49  ;;  %6137 = vmatprep.subr.bf16.mxu1 %v10163_v51  ;;  %v10212_v49 = vld [vmem:[#allocation3 + $0x138] ss:$984 sps:$4 sm:$0xff]   ;;  %v10223_v51 = vld [vmem:[#allocation3 + $0x1ec] ss:$-104 sps:$4 sm:$0xff]  }
 0x6e7   : > { %6094 = vmatprep.subr.bf16.mxu0 %v10160_v47  ;;  %v10220_v47 = vld [vmem:[#allocation3 + $0x28c] ss:$720 sps:$4 sm:$0xff]  }
 0x6e9   : > { %6138 = vmatpush2.bf16.msra.mxu1 %v10161_v60  ;;  %v4921_v60 = vld [vmem:[#allocation3 + $0x3f8] sm:$0xff] }
 0x6ea   : > { %6095 = vmatpush2.bf16.msra.mxu0 %v10158_v54  ;;  %6139 = vmatprep.subr.bf16.mxu1 %v10169_v63  ;;  %v4919_v54 = vld [vmem:[#allocation3 + $0x3d8] sm:$0xff]  ;;  %v10221_v63 = vld [vmem:[#allocation3 + $0x1e8] ss:$-104 sps:$4 sm:$0xff]  }
 0x6eb   : > { %6096 = vmatprep.subr.bf16.mxu0 %v10166_v61  ;;  %v10218_v61 = vld [vmem:[#allocation3 + $0x288] ss:$720 sps:$4 sm:$0xff]  }
 0x6ed   : > { %6140 = vmatpush2.bf16.msra.mxu1 %v10167_v58  ;;  %v10226_v58 = vld [vmem:[#allocation3 + $0x284] ss:$-584 sps:$4 sm:$0xff]  }
 0x6ee   : > { %6097 = vmatpush2.bf16.msra.mxu0 %v10164_v0  ;;  %6195 = vmatprep.subr.bf16.mxu1 %v10175_v2  ;;  %v9045_v0 = vcombine.high %v4919_v54, %v4921_v60  ;;  %v10224_v2 = vld [vmem:[#allocation3 + $0x280] ss:$-584 sps:$4 sm:$0xff]  }
 0x6ef   : > { %6152 = vmatprep.subr.bf16.mxu0 %v10172_v1  ;;  %v9044_v1 = vcombine.low %v4919_v54, %v4921_v60 }
 0x6f0   : > { %6142 = vmatmul.mubr.bf16.vlgmr.msra.gmra.mxu1 %v12473_v39  ;;  %v10190_v39 = vld [vmem:[#allocation3 + $0x3b4] ss:$-8 sps:$4 sm:$0xff]  }
 0x6f1   : > { %6099 = vmatmul.mubr.bf16.vlgmr.msra.gmra.mxu0 %v12489_v3  ;;  %6196 = vmatpush1.bf16.msra.mxu1 %v10173_v5  ;;  %v10232_v5 = vld [vmem:[#allocation3 + $0x294] ss:$600 sps:$4 sm:$0xff]  }
 0x6f2   : > { %6153 = vmatpush1.bf16.msra.mxu0 %v10170_v4  ;;  %6197 = vmatprep.subr.bf16.mxu1 %v10181_v7  ;;  %v10229_v4 = vld [vmem:[#allocation3 + $0x38c] ss:$-112 sps:$4 sm:$0xff]   ;;  %v10230_v7 = vld [vmem:[#allocation3 + $0x290] ss:$600 sps:$4 sm:$0xff]  }
 0x6f3   : > { %6154 = vmatprep.subr.bf16.mxu0 %v10178_v6  ;;  %6184 = vmatprep.mubr.bf16.mxu0 %v12467_v59  ;;  %v10193_v59 = vld [vmem:[#allocation3 + $0x544] ss:$-1136 sps:$4 sm:$0xff]   ;;  %v10227_v6 = vld [vmem:[#allocation3 + $0x388] ss:$-112 sps:$4 sm:$0xff]  }
 0x6f4   : > { %6227 = vmatprep.mubr.bf16.mxu1 %v12481_v42  ;;  %v4945_v42 = vld [vmem:[#allocation3 + $0x210] sm:$0xff] }
 0x6f5   : > { %6198 = vmatpush1.bf16.msra.mxu1 %v10179_v52  ;;  %v9069_v30 = vcombine.high %v4943_v21, %v4945_v42  ;;  %v9068_v32 = vcombine.low %v4943_v21, %v4945_v42  ;;  %v4909_v52 = vld [vmem:[#allocation3 + $0x5e8] sm:$0xff]  ;;  %v4998_v42 = vld [vmem:[%s12638_s11] sm:$0xf] }
 0x6f6   : > { %6155 = vmatpush1.bf16.msra.mxu0 %v10176_v11  ;;  %6199 = vmatprep.subr.bf16.mxu1 %v10184_v55  ;;  %v4907_v11 = vld [vmem:[#allocation3 + $0x28] sm:$0xff]  ;;  %v10236_v55 = vld [vmem:[#allocation3 + $0x1e0] ss:$496 sps:$4 sm:$0xff]  }
 0x6f7   : > { %6156 = vmatprep.subr.bf16.mxu0 %v9017_v48  ;;  %v10233_v48 = vld [vmem:[#allocation3 + $0x58] ss:$616 sps:$4 sm:$0xff]   ;;  %v9032_v15 = vcombine.low %v4907_v11, %v4909_v52 }
 0x6f9   : > { %6200 = vmatpush1.bf16.msra.mxu1 %v10182_v13  ;;  %v10241_v13 = vld [vmem:[#allocation3 + $0x114] ss:$-8 sps:$4 sm:$0xff]  }
 0x6fa   : > { %6157 = vmatpush1.bf16.msra.mxu0 %v9016_v12  ;;  %6201 = vmatprep.subr.bf16.mxu1 %v10190_v39  ;;  %v9033_v12 = vcombine.high %v4907_v11, %v4909_v52  ;;  %v4969_v39 = vld [vmem:[#allocation3 + $0xf8] sm:$0xff] }
 0x6fb   : > { %6158 = vmatprep.subr.bf16.mxu0 %v10187_v14  ;;  %v4967_v14 = vld [vmem:[#allocation3 + $0xd8] sm:$0xff] }
 0x6fd   : > { %6202 = vmatpush1.bf16.msra.mxu1 %v10188_v18  ;;  %v9093_v18 = vcombine.high %v4967_v14, %v4969_v39 }
 0x6fe   : > { %6159 = vmatpush1.bf16.msra.mxu0 %v10185_v17  ;;  %6203 = vmatprep.subr.bf16.mxu1 %v10193_v59  ;;  %v10244_v17 = vld [vmem:[#allocation3 + $0x7c] ss:$1304 sps:$4 sm:$0xff]   ;;  %v9092_v59 = vcombine.low %v4967_v14, %v4969_v39 }
 0x6ff   : > { %6160 = vmatprep.subr.bf16.mxu0 %v9009_v20  ;;  %v10242_v20 = vld [vmem:[#allocation3 + $0x78] ss:$1304 sps:$4 sm:$0xff]  }
 0x701   : > { %6204 = vmatpush1.bf16.msra.mxu1 %v10191_v26  ;;  %v5003_v26 = vrot.slane %v4998_v42, %v12252_v62 }
 0x702   : > { %6161 = vmatpush1.bf16.msra.mxu0 %v9008_v22  ;;  %6205 = vmatprep.subr.bf16.mxu1 %v9069_v30  ;;  %v5007_v30 = vrot.slane %v4998_v42, %v12272_v10 }
 0x703   : > { %6162 = vmatprep.subr.bf16.mxu0 %v10196_v29 }
 0x705   : > { %6206 = vmatpush1.bf16.msra.mxu1 %v9068_v32 }
 0x706   : > { %6163 = vmatpush1.bf16.msra.mxu0 %v10194_v31  ;;  %6207 = vmatprep.subr.bf16.mxu1 %v10202_v34 }
 0x707   : > { %6164 = vmatprep.subr.bf16.mxu0 %v10199_v33 }
 0x709   : > { %6208 = vmatpush1.bf16.msra.mxu1 %v10200_v38 }
 0x70a   : > { %6165 = vmatpush1.bf16.msra.mxu0 %v10197_v37  ;;  %6209 = vmatprep.subr.bf16.mxu1 %v9061_v40 }
 0x70b   : > { %6166 = vmatprep.subr.bf16.mxu0 %v10205_v57 }
 0x70d   : > { %6210 = vmatpush1.bf16.msra.mxu1 %v9060_v41 }
 0x70e   : > { %6167 = vmatpush1.bf16.msra.mxu0 %v10203_v19  ;;  %6211 = vmatprep.subr.bf16.mxu1 %v10211_v46 }
 0x70f   : > { %6168 = vmatprep.subr.bf16.mxu0 %v10208_v44 }
 0x711   : > { %6212 = vmatpush2.bf16.msra.mxu1 %v10209_v53 }
 0x712   : > { %6169 = vmatpush2.bf16.msra.mxu0 %v10206_v50  ;;  %6213 = vmatprep.subr.bf16.mxu1 %v10217_v45 }
 0x713   : > { %6170 = vmatprep.subr.bf16.mxu0 %v10214_v43 }
 0x715   : > { %6214 = vmatpush2.bf16.msra.mxu1 %v10215_v56 }
 0x716   : > { %6171 = vmatpush2.bf16.msra.mxu0 %v10212_v49  ;;  %6215 = vmatprep.subr.bf16.mxu1 %v10223_v51 }
 0x717   : > { %6172 = vmatprep.subr.bf16.mxu0 %v10220_v47 }
 0x719   : > { %6216 = vmatpush2.bf16.msra.mxu1 %v10221_v63 }
 0x71a   : > { %6173 = vmatpush2.bf16.msra.mxu0 %v10218_v61  ;;  %6217 = vmatprep.subr.bf16.mxu1 %v10226_v58  ;;  %v5015_v58 = vrot.slane %v4998_v42, %v12432_v25 }
 0x71b   : > { %6174 = vmatprep.subr.bf16.mxu0 %v9045_v0  ;;  %v5011_v0 = vrot.slane %v4998_v42, %v12429_v24 }
 0x71d   : > { %6218 = vmatpush2.bf16.msra.mxu1 %v10224_v2 }
 0x71e   : > { %6175 = vmatpush2.bf16.msra.mxu0 %v9044_v1  ;;  %6219 = vmatprep.subr.bf16.mxu1 %v10232_v5 }
 0x71f   : > { %6176 = vmatprep.subr.bf16.mxu0 %v10229_v4 }
 0x721   : > { %6220 = vmatpush2.bf16.msra.mxu1 %v10230_v7 }
 0x722   : > { %6177 = vmatpush2.bf16.msra.mxu0 %v10227_v6  ;;  %6221 = vmatprep.subr.bf16.mxu1 %v10238_v9 }
 0x723   : > { %6178 = vmatprep.subr.bf16.mxu0 %v10235_v8 }
 0x725   : > { %6222 = vmatpush2.bf16.msra.mxu1 %v10236_v55 }
 0x726   : > { %6179 = vmatpush2.bf16.msra.mxu0 %v10233_v48  ;;  %6223 = vmatprep.subr.bf16.mxu1 %v10241_v13 }
 0x727   : > { %6180 = vmatprep.subr.bf16.mxu0 %v9033_v12 }
 0x729   : > { %6224 = vmatpush2.bf16.msra.mxu1 %v10239_v16 }
 0x72a   : > { %6181 = vmatpush2.bf16.msra.mxu0 %v9032_v15  ;;  %6225 = vmatprep.subr.bf16.mxu1 %v9093_v18 }
 0x72b   : > { %6182 = vmatprep.subr.bf16.mxu0 %v10244_v17 }
 0x72d   : > { %6226 = vmatpush2.bf16.msra.mxu1 %v9092_v59 }
 0x72e   : > { %6183 = vmatpush2.bf16.msra.mxu0 %v10242_v20 }
 0x730   : > { %6228 = vmatmul.mubr.bf16.vlgmr.msra.gmra.mxu1 %v12489_v3 }
 0x731   : > { %6185 = vmatmul.mubr.bf16.vlgmr.msra.gmra.mxu0 %v12477_v23 }
 0x770   : > { %v6057_v29 = vpop.f32.mrf.mxu1 }
 0x771   : > { %v6014_v21 = vpop.f32.mrf.mxu0 }
 0x772   : > { %v6015_v32 = vadd.f32 %v6014_v21, %v5003_v26  ;;  %v6059_v33 = vpop.f32.mrf.mxu1 }
 0x773   : > { %v6016_v22 = vpop.f32.mrf.mxu0 }
 0x774   : > { %v6017_v34 = vadd.f32 %v6016_v22, %v5007_v30  ;;  %v6058_v36 = vadd.f32 %v6057_v29, %v6015_v32  ;;  %v6061_v37 = vpop.f32.mrf.mxu1 }
 0x775   : > { %v6018_v31 = vpop.f32.mrf.mxu0 }
 0x776   : > { %v6019_v23 = vadd.f32 %v6018_v31, %v5003_v26  ;;  %v6060_v38 = vadd.f32 %v6059_v33, %v6017_v34  ;;  %v6063_v50 = vpop.f32.mrf.mxu1 }
 0x777   : > { %v6020_v35 = vpop.f32.mrf.mxu0 }
 0x778   : > { %v6021_v57 = vadd.f32 %v6020_v35, %v5007_v30  ;;  %v6062_v41 = vadd.f32 %v6061_v37, %v6019_v23 }
 0x77a   : > { %v6064_v43 = vadd.f32 %v6063_v50, %v6021_v57 }
 0x7b0   : > { %v6143_v60 = vpop.f32.mrf.mxu1 }
 0x7b1   : > { %v6100_v3 = vpop.f32.mrf.mxu0  ;;  %v6144_v2 = vadd.f32 %v6143_v60, %v5011_v0 }
 0x7b2   : > { %v12502_v40 = vadd.f32 %v6100_v3, %v6058_v36  ;;  %v6145_v61 = vpop.f32.mrf.mxu1 }
 0x7b3   : > { %v6102_v19 = vpop.f32.mrf.mxu0  ;;  %v6146_v6 = vadd.f32 %v6145_v61, %v5015_v58 }
 0x7b4   : > { %v6238_v44 = vmax.f32 %v12502_v40, 0.0  ;;  %v6103_v46 = vadd.f32 %v6102_v19, %v6060_v38  ;;  %v6147_v63 = vpop.f32.mrf.mxu1 }
 0x7b5   : > { %v6104_v53 = vpop.f32.mrf.mxu0  ;;  %v6148_v11 = vadd.f32 %v6147_v63, %v5011_v0 }
 0x7b6   : > { %v6239_v45 = vmax.f32 %v6103_v46, 0.0  ;;  %v12505_v49 = vadd.f32 %v6104_v53, %v6062_v41  ;;  %v6149_v1 = vpop.f32.mrf.mxu1 }
 0x7b7   : > { %v6106_v56 = vpop.f32.mrf.mxu0  ;;  %v6150_v13 = vadd.f32 %v6149_v1, %v5015_v58 }
 0x7b8   : > { %v6242_v47 = vmax.f32 %v12505_v49, 0.0  ;;  %v6107_v51 = vadd.f32 %v6106_v56, %v6064_v43 }
 0x7ba   : > { %v6243_v54 = vmax.f32 %v6107_v51, 0.0 }
 0x7f0   : > { %v6229_v5 = vpop.f32.mrf.mxu1 }
 0x7f1   : > { %v6186_v4 = vpop.f32.mrf.mxu0 }
 0x7f2   : > { %v6187_v7 = vadd.f32 %v6186_v4, %v6144_v2  ;;  %v6231_v9 = vpop.f32.mrf.mxu1 }
 0x7f3   : > { %v6188_v8 = vpop.f32.mrf.mxu0 }
 0x7f4   : > { %v12510_v52 = vadd.f32 %v6229_v5, %v6187_v7  ;;  %v6189_v48 = vadd.f32 %v6188_v8, %v6146_v6  ;;  %v6233_v12 = vpop.f32.mrf.mxu1 }
 0x7f5   : > { %v6190_v55 = vpop.f32.mrf.mxu0 }
 0x7f6   : > { %v6240_v14 = vmax.f32 %v12510_v52, 0.0  ;;  %v6232_v39 = vadd.f32 %v6231_v9, %v6189_v48  ;;  %v6191_v15 = vadd.f32 %v6190_v55, %v6148_v11  ;;  %v6235_v59 = vpop.f32.mrf.mxu1 }
 0x7f7   : > { %v6192_v16 = vpop.f32.mrf.mxu0 }
 0x7f8   : > { %v6241_v17 = vmax.f32 %v6232_v39, 0.0  ;;  %v12513_v18 = vadd.f32 %v6233_v12, %v6191_v15  ;;  %v6193_v20 = vadd.f32 %v6192_v16, %v6150_v13 }
 0x7fa   : > { %v6244_v21 = vmax.f32 %v12513_v18, 0.0  ;;  %v6236_v42 = vadd.f32 %v6235_v59, %v6193_v20 }
 0x7fc   : > { %v6245_v22 = vmax.f32 %v6236_v42, 0.0 }
 0x7fd   : > { %10498 = dma.done.wait [#allocation6 + $0x1], 24576 }
 0x7fe   : > { %10499 = vsyncadd [#allocation6 + $0x1], 4294942720  ;;  %v12516_v26 = vpack.c.bf16 %v6243_v54, %v6239_v45  ;;  %v12518_v29 = vpack.c.bf16 %v6245_v22, %v6241_v17  ;;  %v10245_v30 = vld [vmem:[#allocation4 + $0x42c] ss:$-312 sps:$4 sm:$0xff]   ;;  %v10247_v33 = vld [vmem:[#allocation4 + $0x428] ss:$-312 sps:$4 sm:$0xff]  }
 0x7ff   : > { %v6393_v31 = vld [vmem:[#allocation4 + $0x2a8] sm:$0xff]  ;;  %7439 = vmatprep.subr.bf16.mxu0 %v10245_v30  ;;  %v6279_v41 = vld [vmem:[#allocation4 + $0x4a0] sm:$0xff]  ;;  %v6369_v60 = vld [vmem:[#allocation4 + $0x530] sm:$0xff]  ;;  %s12668_s14 = sld [smem:[#allocation18_spill]] }
 0x800   : > { %7471 = vmatprep.mubr.bf16.mxu0 %v12516_v26  ;;  %7514 = vmatprep.mubr.bf16.mxu1 %v12518_v29  ;;  %v6396_v32 = vld [vmem:[#allocation4 + $0x508] sm:$0xff]  ;;  %v6282_v46 = vld [vmem:[#allocation4 + $0x200] sm:$0xff]  ;;  %v6372_v61 = vld [vmem:[#allocation4 + $0x3b0] sm:$0xff]  ;;  %s12669_s15 = sld [smem:[#allocation19_spill]] }
 0x801   : > { %v9261_v34 = vcombine.high %v6393_v31, %v6396_v32  ;;  %v9260_v35 = vcombine.low %v6393_v31, %v6396_v32  ;;  %v10248_v36 = vld [vmem:[#allocation4 + $0x4c4] ss:$232 sps:$4 sm:$0xff]   ;;  %7440 = vmatpush1.bf16.msra.mxu0 %v10247_v33  ;;  %v10252_v37 = vld [vmem:[#allocation4 + $0x4c0] ss:$232 sps:$4 sm:$0xff]   ;;  %v9147_v50 = vcombine.high %v6279_v41, %v6282_v46  ;;  %v9146_v51 = vcombine.low %v6279_v41, %v6282_v46  ;;  %v6267_v63 = vld [vmem:[#allocation4 + $0x130] sm:$0xff]  ;;  %s12670_s22 = sld [smem:[#allocation20_spill]] }
 0x802   : > { %v10250_v23 = vld [vmem:[#allocation4 + $0x114] ss:$920 sps:$4 sm:$0xff]   ;;  %7441 = vmatprep.subr.bf16.mxu0 %v10248_v36  ;;  %v10253_v3 = vld [vmem:[#allocation4 + $0x110] ss:$920 sps:$4 sm:$0xff]   ;;  %v6375_v53 = vld [vmem:[#allocation4 + $0xe0] sm:$0xff]  ;;  %v9237_v1 = vcombine.high %v6369_v60, %v6372_v61  ;;  %v9236_v7 = vcombine.low %v6369_v60, %v6372_v61 }
 0x803   : > { %7482 = vmatprep.subr.bf16.mxu1 %v9261_v34  ;;  %v10254_v38 = vld [vmem:[#allocation4 + $0x27c] ss:$-80 sps:$4 sm:$0xff]   ;;  %v10258_v19 = vld [vmem:[#allocation4 + $0x278] ss:$-80 sps:$4 sm:$0xff]   ;;  %v6378_v43 = vld [vmem:[#allocation4 + $0xa0] sm:$0xff] }
 0x804   : > { %7483 = vmatpush1.bf16.msra.mxu1 %v9260_v35  ;;  %v10256_v57 = vld [vmem:[#allocation4 + $0x16c] ss:$-152 sps:$4 sm:$0xff]   ;;  %v10259_v45 = vld [vmem:[#allocation4 + $0x168] ss:$-152 sps:$4 sm:$0xff]   ;;  %v9243_v56 = vcombine.high %v6375_v53, %v6378_v43  ;;  %v9242_v0 = vcombine.low %v6375_v53, %v6378_v43  ;;  %v6363_v4 = vld [vmem:[#allocation4 + $0xf8] sm:$0xff] }
 0x805   : > { %7484 = vmatprep.subr.bf16.mxu1 %v10250_v23  ;;  %7442 = vmatpush1.bf16.msra.mxu0 %v10252_v37  ;;  %v10260_v54 = vld [vmem:[#allocation4 + $0x84] ss:$496 sps:$4 sm:$0xff]   ;;  %v10262_v2 = vld [vmem:[#allocation4 + $0x80] ss:$496 sps:$4 sm:$0xff]   ;;  %v6366_v5 = vld [vmem:[#allocation4 + $0xb8] sm:$0xff] }
 0x806   : > { %7443 = vmatprep.subr.bf16.mxu0 %v10254_v38  ;;  %v6270_v58 = vld [vmem:[#allocation4 + $0x70] sm:$0xff]  ;;  %v9231_v8 = vcombine.high %v6363_v4, %v6366_v5  ;;  %v9230_v48 = vcombine.low %v6363_v4, %v6366_v5  ;;  %v10269_v13 = vld [vmem:[#allocation4 + $0x384] ss:$-440 sps:$4 sm:$0xff]   ;;  %v10273_v16 = vld [vmem:[#allocation4 + $0x380] ss:$-440 sps:$4 sm:$0xff]  }
 0x807   : > { %v9135_v6 = vcombine.high %v6267_v63, %v6270_v58  ;;  %v9134_v9 = vcombine.low %v6267_v63, %v6270_v58  ;;  %v10263_v11 = vld [vmem:[#allocation4 + $0x3fc] ss:$-936 sps:$4 sm:$0xff]   ;;  %v10267_v12 = vld [vmem:[#allocation4 + $0x3f8] ss:$-936 sps:$4 sm:$0xff]   ;;  %v10277_v59 = vld [vmem:[#allocation4 + $0x44] ss:$552 sps:$4 sm:$0xff]  }
 0x808   : > { %7485 = vmatpush1.bf16.msra.mxu1 %v10253_v3  ;;  %v10265_v55 = vld [vmem:[#allocation4 + $0x56c] ss:$-504 sps:$4 sm:$0xff]   ;;  %v10268_v39 = vld [vmem:[#allocation4 + $0x568] ss:$-504 sps:$4 sm:$0xff]   ;;  %v10271_v15 = vld [vmem:[#allocation4 + $0x41c] ss:$-472 sps:$4 sm:$0xff]  }
 0x809   : > { %7486 = vmatprep.subr.bf16.mxu1 %v10256_v57  ;;  %7444 = vmatpush1.bf16.msra.mxu0 %v10258_v19  ;;  %v10275_v17 = vld [vmem:[#allocation4 + $0xb4] ss:$-168 sps:$4 sm:$0xff]   ;;  %v10274_v20 = vld [vmem:[#allocation4 + $0x418] ss:$-472 sps:$4 sm:$0xff]   ;;  %v10279_v42 = vld [vmem:[#allocation4 + $0xb0] ss:$-168 sps:$4 sm:$0xff]  }
 0x80a   : > { %7445 = vmatprep.subr.bf16.mxu0 %v9147_v50  ;;  %v10281_v22 = vld [vmem:[#allocation4 + $0x23c] ss:$168 sps:$4 sm:$0xff]   ;;  %v10280_v30 = vld [vmem:[#allocation4 + $0x40] ss:$552 sps:$4 sm:$0xff]   ;;  %v10286_v36 = vld [vmem:[#allocation4 + $0x1f0] ss:$424 sps:$4 sm:$0xff]  }
 0x80b   : > { %v10283_v31 = vld [vmem:[#allocation4 + $0x1f4] ss:$424 sps:$4 sm:$0xff]   ;;  %v10285_v32 = vld [vmem:[#allocation4 + $0x238] ss:$168 sps:$4 sm:$0xff]   ;;  %v6429_v33 = vld [vmem:[#allocation4 + $0x288] sm:$0xff] }
 0x80c   : > { %7487 = vmatpush1.bf16.msra.mxu1 %v10259_v45  ;;  %v6432_v34 = vld [vmem:[#allocation4 + $0x108] sm:$0xff]  ;;  %v6423_v3 = vld [vmem:[#allocation4 + $0x5c0] sm:$0xff]  ;;  %v6280_v52 = vld [vmem:[#allocation4 + $0x5b8] sm:$0xff] }
 0x80d   : > { %7488 = vmatprep.subr.bf16.mxu1 %v9243_v56  ;;  %7446 = vmatpush1.bf16.msra.mxu0 %v9146_v51  ;;  %v10287_v35 = vld [vmem:[#allocation4 + $0x3ac] ss:$-272 sps:$4 sm:$0xff]   ;;  %v9297_v23 = vcombine.high %v6429_v33, %v6432_v34  ;;  %v10289_v37 = vld [vmem:[#allocation4 + $0x3a8] ss:$-272 sps:$4 sm:$0xff]   ;;  %v6426_v38 = vld [vmem:[#allocation4 + $0x5a0] sm:$0xff]  ;;  %v9296_v19 = vcombine.low %v6429_v33, %v6432_v34 }
 0x80e   : > { %7447 = vmatprep.subr.bf16.mxu0 %v10260_v54  ;;  %v10290_v57 = vld [vmem:[#allocation4 + $0x3a4] ss:$336 sps:$4 sm:$0xff]   ;;  %v9291_v41 = vcombine.high %v6423_v3, %v6426_v38  ;;  %v10292_v46 = vld [vmem:[#allocation4 + $0x3a0] ss:$336 sps:$4 sm:$0xff]   ;;  %v10293_v50 = vld [vmem:[#allocation4 + $0x4c] ss:$240 sps:$4 sm:$0xff]   ;;  %v9290_v53 = vcombine.low %v6423_v3, %v6426_v38 }
 0x80f   : > { %v6315_v43 = vld [vmem:[#allocation4 + $0x548] sm:$0xff]  ;;  %v10299_v61 = vld [vmem:[#allocation4 + $0x154] ss:$752 sps:$4 sm:$0xff]   ;;  %v10301_v58 = vld [vmem:[#allocation4 + $0x150] ss:$752 sps:$4 sm:$0xff]  }
 0x810   : > { %7489 = vmatpush1.bf16.msra.mxu1 %v9242_v0  ;;  %v6318_v45 = vld [vmem:[#allocation4 + $0x5c8] sm:$0xff]  ;;  %v10302_v0 = vld [vmem:[#allocation4 + $0x21c] ss:$-344 sps:$4 sm:$0xff]   ;;  %v10307_v5 = vld [vmem:[#allocation4 + $0x1a0] ss:$-176 sps:$4 sm:$0xff]  }
 0x811   : > { %7490 = vmatprep.subr.bf16.mxu1 %v9237_v1  ;;  %7448 = vmatpush1.bf16.msra.mxu0 %v10262_v2  ;;  %v10295_v56 = vld [vmem:[#allocation4 + $0x364] ss:$-344 sps:$4 sm:$0xff]   ;;  %v10297_v51 = vld [vmem:[#allocation4 + $0x48] ss:$240 sps:$4 sm:$0xff]   ;;  %v9183_v54 = vcombine.high %v6315_v43, %v6318_v45  ;;  %v9182_v63 = vcombine.low %v6315_v43, %v6318_v45 }
 0x812   : > { %7449 = vmatprep.subr.bf16.mxu0 %v9135_v6  ;;  %v10298_v60 = vld [vmem:[#allocation4 + $0x360] ss:$-344 sps:$4 sm:$0xff]   ;;  %v10304_v1 = vld [vmem:[#allocation4 + $0x1a4] ss:$-176 sps:$4 sm:$0xff]   ;;  %v10310_v6 = vld [vmem:[#allocation4 + $0x1c] ss:$752 sps:$4 sm:$0xff]  }
 0x813   : > { %v10306_v2 = vld [vmem:[#allocation4 + $0x218] ss:$-344 sps:$4 sm:$0xff]   ;;  %v10308_v4 = vld [vmem:[#allocation4 + $0x174] ss:$664 sps:$4 sm:$0xff]   ;;  %v10322_v40 = vld [vmem:[#allocation4 + $0x3bc] ss:$-856 sps:$4 sm:$0xff]  }
 0x814   : > { %7491 = vmatpush1.bf16.msra.mxu1 %v9236_v7  ;;  %v10312_v7 = vld [vmem:[#allocation4 + $0x170] ss:$664 sps:$4 sm:$0xff]   ;;  %v10320_v49 = vld [vmem:[#allocation4 + $0x3b8] ss:$-856 sps:$4 sm:$0xff]   ;;  %v10337_v43 = vld [vmem:[#allocation4 + $0x464] ss:$-376 sps:$4 sm:$0xff]  }
 0x815   : > { %7492 = vmatprep.subr.bf16.mxu1 %v9231_v8  ;;  %7450 = vmatpush1.bf16.msra.mxu0 %v9134_v9  ;;  %v10313_v8 = vld [vmem:[#allocation4 + $0x18] ss:$752 sps:$4 sm:$0xff]   ;;  %v10316_v9 = vld [vmem:[#allocation4 + $0x3c4] ss:$-456 sps:$4 sm:$0xff]  }
 0x816   : > { %7451 = vmatprep.subr.bf16.mxu0 %v10263_v11  ;;  %v6292_v11 = vld [vmem:[#allocation4 + $0x68] sm:$0xff]  ;;  %v10326_v33 = vld [vmem:[#allocation4 + $0x158] ss:$-312 sps:$4 sm:$0xff]  }
 0x817   : > { %v10329_v3 = vld [vmem:[#allocation4 + $0x588] ss:$-176 sps:$4 sm:$0xff]   ;;  %v6352_v45 = vld [vmem:[#allocation4 + $0x2c0] sm:$0xff] }
 0x818   : > { %7493 = vmatpush1.bf16.msra.mxu1 %v9230_v48  ;;  %v6295_v48 = vld [vmem:[#allocation4 + $0x2c8] sm:$0xff] }
 0x819   : > { %7494 = vmatprep.subr.bf16.mxu1 %v10265_v55  ;;  %7452 = vmatpush1.bf16.msra.mxu0 %v10267_v12  ;;  %v12526_v55 = vpack.c.bf16 %v6242_v47, %v6238_v44  ;;  %v10319_v12 = vld [vmem:[#allocation4 + $0x24c] ss:$8 sps:$4 sm:$0xff]   ;;  %v9160_v44 = vcombine.low %v6292_v11, %v6295_v48 }
 0x81a   : > { %7453 = vmatprep.subr.bf16.mxu0 %v10269_v13  ;;  %v10314_v13 = vld [vmem:[#allocation4 + $0x3c0] ss:$-456 sps:$4 sm:$0xff]   ;;  %v10325_v47 = vld [vmem:[#allocation4 + $0x2c] ss:$1328 sps:$4 sm:$0xff]  }
 0x81c   : > { %7495 = vmatpush1.bf16.msra.mxu1 %v10268_v39  ;;  %v12532_v39 = vpack.c.bf16 %v6244_v21, %v6240_v14  ;;  %v6283_v14 = vld [vmem:[#allocation4 + $0x258] sm:$0xff] }
 0x81d   : > { %7496 = vmatprep.subr.bf16.mxu1 %v10271_v15  ;;  %7454 = vmatpush1.bf16.msra.mxu0 %v10273_v16  ;;  %v9161_v15 = vcombine.high %v6292_v11, %v6295_v48  ;;  %v10317_v16 = vld [vmem:[#allocation4 + $0x248] ss:$8 sps:$4 sm:$0xff]   ;;  %v10344_v11 = vld [vmem:[#allocation4 + $0x58] ss:$456 sps:$4 sm:$0xff]  }
 0x81e   : > { %7455 = vmatprep.subr.bf16.mxu0 %v10275_v17  ;;  %v6382_v17 = vld [vmem:[#allocation4 + $0x510] sm:$0xff]  ;;  %v10323_v21 = vld [vmem:[#allocation4 + $0x28] ss:$1328 sps:$4 sm:$0xff]  }
 0x820   : > { %7497 = vmatpush1.bf16.msra.mxu1 %v10274_v20  ;;  %v6385_v20 = vld [vmem:[#allocation4 + $0x550] sm:$0xff] }
 0x821   : > { %7498 = vmatprep.subr.bf16.mxu1 %v10277_v59  ;;  %7456 = vmatpush2.bf16.msra.mxu0 %v10279_v42  ;;  %v9251_v18 = vcombine.high %v6382_v17, %v6385_v20  ;;  %v9149_v59 = vcombine.high %v6280_v52, %v6283_v14  ;;  %v6274_v42 = vld [vmem:[#allocation4 + $0x540] sm:$0xff] }
 0x822   : > { %7457 = vmatprep.subr.bf16.mxu0 %v10281_v22  ;;  %v9250_v22 = vcombine.low %v6382_v17, %v6385_v20  ;;  %v10352_v17 = vld [vmem:[#allocation4 + $0x294] ss:$216 sps:$4 sm:$0xff]  }
 0x824   : > { %7499 = vmatpush2.bf16.msra.mxu1 %v10280_v30  ;;  %v6277_v30 = vld [vmem:[#allocation4 + $0x1c0] sm:$0xff] }
 0x825   : > { %7500 = vmatprep.subr.bf16.mxu1 %v10283_v31  ;;  %7458 = vmatpush2.bf16.msra.mxu0 %v10285_v32  ;;  %v10328_v31 = vld [vmem:[#allocation4 + $0x15c] ss:$-312 sps:$4 sm:$0xff]   ;;  %v9148_v32 = vcombine.low %v6280_v52, %v6283_v14  ;;  %v9143_v34 = vcombine.high %v6274_v42, %v6277_v30  ;;  %v10350_v14 = vld [vmem:[#allocation4 + $0x290] ss:$216 sps:$4 sm:$0xff]  }
 0x826   : > { %7459 = vmatprep.subr.bf16.mxu0 %v10287_v35  ;;  %v6268_v35 = vld [vmem:[#allocation4 + $0x430] sm:$0xff] }
 0x828   : > { %7501 = vmatpush2.bf16.msra.mxu1 %v10286_v36  ;;  %v6271_v36 = vld [vmem:[#allocation4 + $0x4b0] sm:$0xff] }
 0x829   : > { %7502 = vmatprep.subr.bf16.mxu1 %v9297_v23  ;;  %7460 = vmatpush2.bf16.msra.mxu0 %v10289_v37  ;;  %v10331_v23 = vld [vmem:[#allocation4 + $0x58c] ss:$-176 sps:$4 sm:$0xff]   ;;  %v9142_v37 = vcombine.low %v6274_v42, %v6277_v30  ;;  %v9137_v38 = vcombine.high %v6268_v35, %v6271_v36  ;;  %v10353_v42 = vld [vmem:[#allocation4 + $0xc8] ss:$1080 sps:$4 sm:$0xff]  }
 0x82a   : > { %7461 = vmatprep.subr.bf16.mxu0 %v10290_v57  ;;  %v6262_v57 = vld [vmem:[#allocation4 + $0x260] sm:$0xff]  ;;  %v10356_v30 = vld [vmem:[#allocation4 + $0xe8] ss:$560 sps:$4 sm:$0xff]  }
 0x82c   : > { %7503 = vmatpush2.bf16.msra.mxu1 %v9296_v19  ;;  %v6265_v19 = vld [vmem:[#allocation4 + $0x3e0] sm:$0xff] }
 0x82d   : > { %7504 = vmatprep.subr.bf16.mxu1 %v9291_v41  ;;  %7462 = vmatpush2.bf16.msra.mxu0 %v10292_v46  ;;  %v10334_v41 = vld [vmem:[#allocation4 + $0x394] ss:$584 sps:$4 sm:$0xff]   ;;  %v9136_v46 = vcombine.low %v6268_v35, %v6271_v36  ;;  %v6406_v35 = vld [vmem:[#allocation4 + $0x448] sm:$0xff] }
 0x82e   : > { %7463 = vmatprep.subr.bf16.mxu0 %v10293_v50  ;;  %v9131_v50 = vcombine.high %v6262_v57, %v6265_v19  ;;  %v6409_v36 = vld [vmem:[#allocation4 + $0x148] sm:$0xff] }
 0x830   : > { %7505 = vmatpush2.bf16.msra.mxu1 %v9290_v53  ;;  %v10332_v53 = vld [vmem:[#allocation4 + $0x390] ss:$584 sps:$4 sm:$0xff]  }
 0x831   : > { %7506 = vmatprep.subr.bf16.mxu1 %v10295_v56  ;;  %7464 = vmatpush2.bf16.msra.mxu0 %v10297_v51  ;;  %v9130_v56 = vcombine.low %v6262_v57, %v6265_v19  ;;  %v6355_v51 = vld [vmem:[#allocation4 + $0x400] sm:$0xff]  ;;  %v9274_v19 = vcombine.low %v6406_v35, %v6409_v36 }
 0x832   : > { %7465 = vmatprep.subr.bf16.mxu0 %v9183_v54  ;;  %v10340_v54 = vld [vmem:[#allocation4 + $0x474] ss:$376 sps:$4 sm:$0xff]   ;;  %v10367_v57 = vld [vmem:[#allocation4 + $0x104] ss:$600 sps:$4 sm:$0xff]  }
 0x834   : > { %7507 = vmatpush2.bf16.msra.mxu1 %v10298_v60  ;;  %v10335_v60 = vld [vmem:[#allocation4 + $0x460] ss:$-376 sps:$4 sm:$0xff]  }
 0x835   : > { %7508 = vmatprep.subr.bf16.mxu1 %v10299_v61  ;;  %7466 = vmatpush2.bf16.msra.mxu0 %v9182_v63  ;;  %v10338_v61 = vld [vmem:[#allocation4 + $0x470] ss:$376 sps:$4 sm:$0xff]   ;;  %v9221_v63 = vcombine.high %v6352_v45, %v6355_v51 }
 0x836   : > { %7467 = vmatprep.subr.bf16.mxu0 %v10302_v0  ;;  %v6442_v0 = vld [vmem:[#allocation4 + $0x458] sm:$0xff] }
 0x838   : > { %7509 = vmatpush2.bf16.msra.mxu1 %v10301_v58  ;;  %v6445_v58 = vld [vmem:[#allocation4 + $0x2f8] sm:$0xff] }
 0x839   : > { %7510 = vmatprep.subr.bf16.mxu1 %v10304_v1  ;;  %7468 = vmatpush2.bf16.msra.mxu0 %v10306_v2  ;;  %v10343_v1 = vld [vmem:[#allocation4 + $0x3ec] ss:$376 sps:$4 sm:$0xff]   ;;  %v9220_v2 = vcombine.low %v6352_v45, %v6355_v51  ;;  %v10371_v45 = vld [vmem:[#allocation4 + $0x4e0] ss:$-1128 sps:$4 sm:$0xff]  }
 0x83a   : > { %7469 = vmatprep.subr.bf16.mxu0 %v10308_v4  ;;  %v10341_v4 = vld [vmem:[#allocation4 + $0x3e8] ss:$376 sps:$4 sm:$0xff]   ;;  %v10374_v51 = vld [vmem:[#allocation4 + $0x410] ss:$392 sps:$4 sm:$0xff]  }
 0x83c   : > { %7511 = vmatpush2.bf16.msra.mxu1 %v10307_v5  ;;  %v9311_v5 = vcombine.high %v6442_v0, %v6445_v58 }
 0x83d   : > { %7512 = vmatprep.subr.bf16.mxu1 %v10310_v6  ;;  %7470 = vmatpush2.bf16.msra.mxu0 %v10312_v7  ;;  %v6436_v6 = vld [vmem:[#allocation4 + $0x88] sm:$0xff] }
 0x83e   : > { %7525 = vmatprep.subr.bf16.mxu0 %v10316_v9  ;;  %v6439_v7 = vld [vmem:[#allocation4 + $0x388] sm:$0xff]  ;;  %v9310_v9 = vcombine.low %v6442_v0, %v6445_v58 }
 0x83f   : > { %v9305_v48 = vcombine.high %v6436_v6, %v6439_v7  ;;  %v10380_v58 = vld [vmem:[#allocation4 + $0x2d8] ss:$80 sps:$4 sm:$0xff]  }
 0x840   : > { %7513 = vmatpush2.bf16.msra.mxu1 %v10313_v8  ;;  %7472 = vmatmul.mubr.bf16.vlgmr.msra.gmra.mxu0 %v12526_v55  ;;  %v10346_v8 = vld [vmem:[#allocation4 + $0x5c] ss:$456 sps:$4 sm:$0xff]  }
 0x841   : > { %7568 = vmatprep.subr.bf16.mxu1 %v10319_v12  ;;  %7526 = vmatpush1.bf16.msra.mxu0 %v10314_v13  ;;  %v6430_v12 = vld [vmem:[#allocation4 + $0xd8] sm:$0xff] }
 0x842   : > { %7557 = vmatprep.mubr.bf16.mxu0 %v12516_v26  ;;  %7527 = vmatprep.subr.bf16.mxu0 %v9161_v15  ;;  %v6433_v13 = vld [vmem:[#allocation4 + $0x478] sm:$0xff]  ;;  %v10349_v15 = vld [vmem:[#allocation4 + $0x124] ss:$840 sps:$4 sm:$0xff]  }
 0x843   : > { %7515 = vmatmul.mubr.bf16.vlgmr.msra.gmra.mxu1 %v12532_v39  ;;  %v9298_v20 = vcombine.low %v6430_v12, %v6433_v13 }
 0x844   : > { %7569 = vmatpush1.bf16.msra.mxu1 %v10317_v16  ;;  %7600 = vmatprep.mubr.bf16.mxu1 %v12518_v29  ;;  %v9304_v16 = vcombine.low %v6436_v6, %v6439_v7  ;;  %v10383_v7 = vld [vmem:[#allocation4 + $0x438] ss:$-552 sps:$4 sm:$0xff]  }
 0x845   : > { %7570 = vmatprep.subr.bf16.mxu1 %v10322_v40  ;;  %7528 = vmatpush1.bf16.msra.mxu0 %v9160_v44  ;;  %v10347_v40 = vld [vmem:[#allocation4 + $0x120] ss:$840 sps:$4 sm:$0xff]   ;;  %v9299_v44 = vcombine.high %v6430_v12, %v6433_v13  ;;  %v10386_v12 = vld [vmem:[#allocation4 + $0x2b8] ss:$-648 sps:$4 sm:$0xff]  }
 0x846   : > { %7529 = vmatprep.subr.bf16.mxu0 %v10325_v47  ;;  %v6427_v47 = vld [vmem:[#allocation4 + $0x1a8] sm:$0xff] }
 0x848   : > { %7571 = vmatpush1.bf16.msra.mxu1 %v10320_v49  ;;  %v6424_v49 = vld [vmem:[#allocation4 + $0x488] sm:$0xff] }
 0x849   : > { %7572 = vmatprep.subr.bf16.mxu1 %v9251_v18  ;;  %7530 = vmatpush1.bf16.msra.mxu0 %v10323_v21  ;;  %v9293_v52 = vcombine.high %v6424_v49, %v6427_v47  ;;  %v10355_v18 = vld [vmem:[#allocation4 + $0xcc] ss:$1080 sps:$4 sm:$0xff]   ;;  %v9292_v21 = vcombine.low %v6424_v49, %v6427_v47  ;;  %v10397_v49 = vld [vmem:[#allocation4 + $0x574] ss:$-984 sps:$4 sm:$0xff]   ;;  %v10392_v47 = vld [vmem:[#allocation4 + $0x128] ss:$1160 sps:$4 sm:$0xff]  }
 0x84a   : > { %7531 = vmatprep.subr.bf16.mxu0 %v9149_v59  ;;  %v10358_v59 = vld [vmem:[#allocation4 + $0xec] ss:$560 sps:$4 sm:$0xff]  }
 0x84c   : > { %7573 = vmatpush1.bf16.msra.mxu1 %v9250_v22  ;;  %v10361_v22 = vld [vmem:[#allocation4 + $0x284] ss:$888 sps:$4 sm:$0xff]  }
 0x84d   : > { %7574 = vmatprep.subr.bf16.mxu1 %v10328_v31  ;;  %7532 = vmatpush1.bf16.msra.mxu0 %v9148_v32  ;;  %v6310_v31 = vld [vmem:[#allocation4 + $0x4d0] sm:$0xff] }
 0x84e   : > { %7533 = vmatprep.subr.bf16.mxu0 %v9143_v34  ;;  %v6313_v32 = vld [vmem:[#allocation4 + $0x330] sm:$0xff]  ;;  %v10359_v34 = vld [vmem:[#allocation4 + $0x280] ss:$888 sps:$4 sm:$0xff]  }
 0x850   : > { %7575 = vmatpush1.bf16.msra.mxu1 %v10326_v33  ;;  %v10364_v33 = vld [vmem:[#allocation4 + $0x4fc] ss:$-432 sps:$4 sm:$0xff]  }
 0x851   : > { %7576 = vmatprep.subr.bf16.mxu1 %v10331_v23  ;;  %7534 = vmatpush1.bf16.msra.mxu0 %v9142_v37  ;;  %v9179_v23 = vcombine.high %v6310_v31, %v6313_v32  ;;  %v10362_v37 = vld [vmem:[#allocation4 + $0x4f8] ss:$-432 sps:$4 sm:$0xff]  }
 0x852   : > { %7535 = vmatprep.subr.bf16.mxu0 %v9137_v38  ;;  %v9178_v38 = vcombine.low %v6310_v31, %v6313_v32  ;;  %v10403_v31 = vld [vmem:[#allocation4 + $0x1bc] ss:$968 sps:$4 sm:$0xff]   ;;  %v10398_v32 = vld [vmem:[#allocation4 + $0x190] ss:$936 sps:$4 sm:$0xff]  }
 0x854   : > { %7577 = vmatpush1.bf16.msra.mxu1 %v10329_v3  ;;  %v9275_v3 = vcombine.high %v6406_v35, %v6409_v36  ;;  %v6341_v35 = vld [vmem:[#allocation4 + $0x4e8] sm:$0xff] }
 0x855   : > { %7578 = vmatprep.subr.bf16.mxu1 %v10334_v41  ;;  %7536 = vmatpush1.bf16.msra.mxu0 %v9136_v46  ;;  %v10370_v41 = vld [vmem:[#allocation4 + $0x3cc] ss:$-408 sps:$4 sm:$0xff]   ;;  %v10365_v46 = vld [vmem:[#allocation4 + $0x100] ss:$600 sps:$4 sm:$0xff]  }
 0x856   : > { %7537 = vmatprep.subr.bf16.mxu0 %v9131_v50  ;;  %v10373_v50 = vld [vmem:[#allocation4 + $0x4e4] ss:$-1128 sps:$4 sm:$0xff]   ;;  %v6344_v36 = vld [vmem:[#allocation4 + $0xa8] sm:$0xff] }
 0x858   : > { %7579 = vmatpush1.bf16.msra.mxu1 %v10332_v53  ;;  %v10368_v53 = vld [vmem:[#allocation4 + $0x3c8] ss:$-408 sps:$4 sm:$0xff]  }
 0x859   : > { %7580 = vmatprep.subr.bf16.mxu1 %v10337_v43  ;;  %7538 = vmatpush1.bf16.msra.mxu0 %v9130_v56  ;;  %v10376_v43 = vld [vmem:[#allocation4 + $0x414] ss:$392 sps:$4 sm:$0xff]  }
 0x85a   : > { %7539 = vmatprep.subr.bf16.mxu0 %v10340_v54  ;;  %v10379_v56 = vld [vmem:[#allocation4 + $0x144] ss:$656 sps:$4 sm:$0xff]  }
 0x85b   : > { %v6287_v54 = vld [vmem:[#allocation4 + $0x90] sm:$0xff] }
 0x85c   : > { %7581 = vmatpush1.bf16.msra.mxu1 %v10335_v60  ;;  %v6290_v60 = vld [vmem:[#allocation4 + $0x3f0] sm:$0xff] }
 0x85d   : > { %7582 = vmatprep.subr.bf16.mxu1 %v9221_v63  ;;  %7540 = vmatpush1.bf16.msra.mxu0 %v10338_v61  ;;  %v10382_v61 = vld [vmem:[#allocation4 + $0x2dc] ss:$80 sps:$4 sm:$0xff]   ;;  %v10377_v63 = vld [vmem:[#allocation4 + $0x140] ss:$656 sps:$4 sm:$0xff]   ;;  %v9157_v0 = vcombine.high %v6287_v54, %v6290_v60 }
 0x85e   : > { %7541 = vmatprep.subr.bf16.mxu0 %v10343_v1  ;;  %v6281_v1 = vld [vmem:[#allocation4 + $0x320] sm:$0xff] }
 0x860   : > { %7583 = vmatpush1.bf16.msra.mxu1 %v9220_v2  ;;  %v6284_v2 = vld [vmem:[#allocation4 + $0x5e0] sm:$0xff] }
 0x861   : > { %7584 = vmatprep.subr.bf16.mxu1 %v9311_v5  ;;  %7542 = vmatpush2.bf16.msra.mxu0 %v10341_v4  ;;  %v10385_v4 = vld [vmem:[#allocation4 + $0x43c] ss:$-552 sps:$4 sm:$0xff]   ;;  %v9156_v5 = vcombine.low %v6287_v54, %v6290_v60  ;;  %v9151_v6 = vcombine.high %v6281_v1, %v6284_v2  ;;  %v10413_v60 = vld [vmem:[#allocation4 + $0x2d0] ss:$264 sps:$4 sm:$0xff]  }
 0x862   : > { %7543 = vmatprep.subr.bf16.mxu0 %v10346_v8  ;;  %v6275_v8 = vld [vmem:[#allocation4 + $0x490] sm:$0xff] }
 0x863   : > { %v10418_v54 = vld [vmem:[#allocation4 + $0x1b4] ss:$392 sps:$4 sm:$0xff]  }
 0x864   : > { %7585 = vmatpush2.bf16.msra.mxu1 %v9310_v9  ;;  %v10388_v9 = vld [vmem:[#allocation4 + $0x2bc] ss:$-648 sps:$4 sm:$0xff]  }
 0x865   : > { %7586 = vmatprep.subr.bf16.mxu1 %v9305_v48  ;;  %7544 = vmatpush2.bf16.msra.mxu0 %v10344_v11  ;;  %v9150_v11 = vcombine.low %v6281_v1, %v6284_v2  ;;  %v10427_v1 = vld [vmem:[#allocation4 + $0x37c] ss:$536 sps:$4 sm:$0xff]   ;;  %v10422_v2 = vld [vmem:[#allocation4 + $0x2b0] ss:$-408 sps:$4 sm:$0xff]  }
 0x866   : > { %7545 = vmatprep.subr.bf16.mxu0 %v10349_v15  ;;  %v10394_v15 = vld [vmem:[#allocation4 + $0x12c] ss:$1160 sps:$4 sm:$0xff]  }
 0x868   : > { %7587 = vmatpush2.bf16.msra.mxu1 %v9304_v16  ;;  %v10389_v16 = vld [vmem:[#allocation4 + $0x180] ss:$400 sps:$4 sm:$0xff]  }
 0x869   : > { %7588 = vmatprep.subr.bf16.mxu1 %v9299_v44  ;;  %7546 = vmatpush2.bf16.msra.mxu0 %v10347_v40  ;;  %v6263_v40 = vld [vmem:[#allocation4 + $0x10] sm:$0xff] }
 0x86a   : > { %7547 = vmatprep.subr.bf16.mxu0 %v10352_v17  ;;  %v6266_v44 = vld [vmem:[#allocation4 + $0x5d0] sm:$0xff] }
 0x86b   : > { %v6359_v17 = vld [vmem:[#allocation4 + $0x1d0] sm:$0xff] }
 0x86c   : > { %7589 = vmatpush2.bf16.msra.mxu1 %v9298_v20  ;;  %v6362_v20 = vld [vmem:[#allocation4 + $0x350] sm:$0xff] }
 0x86d   : > { %7590 = vmatprep.subr.bf16.mxu1 %v9293_v52  ;;  %7548 = vmatpush2.bf16.msra.mxu0 %v10350_v14  ;;  %v9133_v52 = vcombine.high %v6263_v40, %v6266_v44  ;;  %v10395_v14 = vld [vmem:[#allocation4 + $0x570] ss:$-984 sps:$4 sm:$0xff]  }
 0x86e   : > { %7549 = vmatprep.subr.bf16.mxu0 %v10355_v18  ;;  %v9229_v18 = vcombine.high %v6359_v17, %v6362_v20 }
 0x870   : > { %7591 = vmatpush2.bf16.msra.mxu1 %v9292_v21  ;;  %v9132_v21 = vcombine.low %v6263_v40, %v6266_v44 }
 0x871   : > { %7592 = vmatprep.subr.bf16.mxu1 %v10358_v59  ;;  %7550 = vmatpush2.bf16.msra.mxu0 %v10353_v42  ;;  %v10400_v59 = vld [vmem:[#allocation4 + $0x194] ss:$936 sps:$4 sm:$0xff]   ;;  %v9228_v42 = vcombine.low %v6359_v17, %v6362_v20  ;;  %v6447_v17 = vld [vmem:[%s12668_s14] sm:$0x3f] }
 0x872   : > { %7551 = vmatprep.subr.bf16.mxu0 %v10361_v22  ;;  %v6347_v22 = vld [vmem:[#allocation4 + $0x1d8] sm:$0xff] }
 0x874   : > { %7593 = vmatpush2.bf16.msra.mxu1 %v10356_v30  ;;  %v6350_v30 = vld [vmem:[#allocation4 + $0x98] sm:$0xff] }
 0x875   : > { %7594 = vmatprep.subr.bf16.mxu1 %v10364_v33  ;;  %7552 = vmatpush2.bf16.msra.mxu0 %v10359_v34  ;;  %v9217_v33 = vcombine.high %v6347_v22, %v6350_v30  ;;  %v10401_v34 = vld [vmem:[#allocation4 + $0x1b8] ss:$968 sps:$4 sm:$0xff]  }
 0x876   : > { %7553 = vmatprep.subr.bf16.mxu0 %v9179_v23  ;;  %v10406_v23 = vld [vmem:[#allocation4 + $0x18c] ss:$280 sps:$4 sm:$0xff]  }
 0x878   : > { %7595 = vmatpush2.bf16.msra.mxu1 %v10362_v37  ;;  %v9216_v37 = vcombine.low %v6347_v22, %v6350_v30 }
 0x879   : > { %7596 = vmatprep.subr.bf16.mxu1 %v9275_v3  ;;  %7554 = vmatpush2.bf16.msra.mxu0 %v9178_v38  ;;  %v9211_v3 = vcombine.high %v6341_v35, %v6344_v36  ;;  %v10404_v38 = vld [vmem:[#allocation4 + $0x188] ss:$280 sps:$4 sm:$0xff]  }
 0x87a   : > { %7555 = vmatprep.subr.bf16.mxu0 %v10367_v57  ;;  %v10409_v57 = vld [vmem:[#allocation4 + $0x164] ss:$24 sps:$4 sm:$0xff]  }
 0x87c   : > { %7597 = vmatpush2.bf16.msra.mxu1 %v9274_v19  ;;  %v9210_v19 = vcombine.low %v6341_v35, %v6344_v36 }
 0x87d   : > { %7598 = vmatprep.subr.bf16.mxu1 %v10370_v41  ;;  %7556 = vmatpush2.bf16.msra.mxu0 %v10365_v46  ;;  %v6431_v41 = vld [vmem:[#allocation4 + $0x520] sm:$0xff] }
 0x87e   : > { %7611 = vmatprep.subr.bf16.mxu0 %v10373_v50  ;;  %v6434_v46 = vld [vmem:[#allocation4 + $0x300] sm:$0xff]  ;;  %v10412_v50 = vld [vmem:[#allocation4 + $0x57c] ss:$120 sps:$4 sm:$0xff]  }
 0x880   : > { %7599 = vmatpush2.bf16.msra.mxu1 %v10368_v53  ;;  %7558 = vmatmul.mubr.bf16.vlgmr.msra.gmra.mxu0 %v12526_v55  ;;  %v10407_v53 = vld [vmem:[#allocation4 + $0x160] ss:$24 sps:$4 sm:$0xff]  }
 0x881   : > { %7654 = vmatprep.subr.bf16.mxu1 %v10376_v43  ;;  %7612 = vmatpush1.bf16.msra.mxu0 %v10371_v45  ;;  %v9301_v43 = vcombine.high %v6431_v41, %v6434_v46  ;;  %v10410_v45 = vld [vmem:[#allocation4 + $0x578] ss:$120 sps:$4 sm:$0xff]  }
 0x882   : > { %7643 = vmatprep.mubr.bf16.mxu0 %v12516_v26  ;;  %7613 = vmatprep.subr.bf16.mxu0 %v10379_v56  ;;  %v6278_v26 = vld [vmem:[#allocation4 + $0x450] sm:$0xff] }
 0x883   : > { %7601 = vmatmul.mubr.bf16.vlgmr.msra.gmra.mxu1 %v12532_v39  ;;  %v9145_v48 = vcombine.high %v6275_v8, %v6278_v26  ;;  %v9144_v13 = vcombine.low %v6275_v8, %v6278_v26  ;;  %v10415_v56 = vld [vmem:[#allocation4 + $0x2d4] ss:$264 sps:$4 sm:$0xff]   ;;  %v6305_v8 = vld [vmem:[#allocation4 + $0x340] sm:$0xff] }
 0x884   : > { %7655 = vmatpush1.bf16.msra.mxu1 %v10374_v51  ;;  %7686 = vmatprep.mubr.bf16.mxu1 %v12518_v29  ;;  %v10391_v29 = vld [vmem:[#allocation4 + $0x184] ss:$400 sps:$4 sm:$0xff]   ;;  %v9300_v51 = vcombine.low %v6431_v41, %v6434_v46 }
 0x885   : > { %7656 = vmatprep.subr.bf16.mxu1 %v10382_v61  ;;  %7614 = vmatpush1.bf16.msra.mxu0 %v10377_v63  ;;  %v10421_v61 = vld [vmem:[#allocation4 + $0x52c] ss:$-264 sps:$4 sm:$0xff]   ;;  %v10416_v63 = vld [vmem:[#allocation4 + $0x1b0] ss:$392 sps:$4 sm:$0xff]  }
 0x886   : > { %7615 = vmatprep.subr.bf16.mxu0 %v9157_v0  ;;  %v10424_v0 = vld [vmem:[#allocation4 + $0x2b4] ss:$-408 sps:$4 sm:$0xff]   ;;  %v6308_v26 = vld [vmem:[#allocation4] sm:$0xff] }
 0x888   : > { %7657 = vmatpush1.bf16.msra.mxu1 %v10380_v58  ;;  %v10419_v58 = vld [vmem:[#allocation4 + $0x528] ss:$-264 sps:$4 sm:$0xff]  }
 0x889   : > { %7658 = vmatprep.subr.bf16.mxu1 %v10385_v4  ;;  %7616 = vmatpush1.bf16.msra.mxu0 %v9156_v5  ;;  %v10430_v4 = vld [vmem:[#allocation4 + $0x1e4] ss:$824 sps:$4 sm:$0xff]   ;;  %v10425_v5 = vld [vmem:[#allocation4 + $0x378] ss:$536 sps:$4 sm:$0xff]  }
 0x88a   : > { %7617 = vmatprep.subr.bf16.mxu0 %v9151_v6  ;;  %v10433_v6 = vld [vmem:[#allocation4 + $0x4bc] ss:$-56 sps:$4 sm:$0xff]  }
 0x88c   : > { %7659 = vmatpush1.bf16.msra.mxu1 %v10383_v7  ;;  %v10428_v7 = vld [vmem:[#allocation4 + $0x1e0] ss:$824 sps:$4 sm:$0xff]  }
 0x88d   : > { %7660 = vmatprep.subr.bf16.mxu1 %v10388_v9  ;;  %7618 = vmatpush1.bf16.msra.mxu0 %v9150_v11  ;;  %v10436_v9 = vld [vmem:[#allocation4 + $0x3c] ss:$1168 sps:$4 sm:$0xff]   ;;  %v10431_v11 = vld [vmem:[#allocation4 + $0x4b8] ss:$-56 sps:$4 sm:$0xff]  }
 0x88e   : > { %7619 = vmatprep.subr.bf16.mxu0 %v9145_v48  ;;  %v9175_v48 = vcombine.high %v6305_v8, %v6308_v26 }
 0x890   : > { %7661 = vmatpush1.bf16.msra.mxu1 %v10386_v12  ;;  %v10434_v12 = vld [vmem:[#allocation4 + $0x38] ss:$1168 sps:$4 sm:$0xff]  }
 0x891   : > { %7662 = vmatprep.subr.bf16.mxu1 %v10391_v29  ;;  %7620 = vmatpush1.bf16.msra.mxu0 %v9144_v13  ;;  %v10439_v29 = vld [vmem:[#allocation4 + $0x49c] ss:$-688 sps:$4 sm:$0xff]   ;;  %v9174_v13 = vcombine.low %v6305_v8, %v6308_v26 }
 0x892   : > { %7621 = vmatprep.subr.bf16.mxu0 %v10394_v15  ;;  %v10437_v15 = vld [vmem:[#allocation4 + $0x498] ss:$-688 sps:$4 sm:$0xff]  }
 0x894   : > { %7663 = vmatpush1.bf16.msra.mxu1 %v10389_v16 }
 0x895   : > { %7664 = vmatprep.subr.bf16.mxu1 %v10397_v49  ;;  %7622 = vmatpush1.bf16.msra.mxu0 %v10392_v47 }
 0x896   : > { %7623 = vmatprep.subr.bf16.mxu0 %v9133_v52 }
 0x898   : > { %7665 = vmatpush1.bf16.msra.mxu1 %v10395_v14  ;;  %v6452_v14 = vrot.slane %v6447_v17, %v12252_v62 }
 0x899   : > { %7666 = vmatprep.subr.bf16.mxu1 %v9229_v18  ;;  %7624 = vmatpush1.bf16.msra.mxu0 %v9132_v21  ;;  %v6456_v18 = vrot.slane %v6447_v17, %v12272_v10 }
 0x89a   : > { %7625 = vmatprep.subr.bf16.mxu0 %v10400_v59 }
 0x89c   : > { %7667 = vmatpush1.bf16.msra.mxu1 %v9228_v42 }
 0x89d   : > { %7668 = vmatprep.subr.bf16.mxu1 %v10403_v31  ;;  %7626 = vmatpush1.bf16.msra.mxu0 %v10398_v32  ;;  %v6464_v32 = vrot.slane %v6447_v17, %v12432_v25 }
 0x89e   : > { %7627 = vmatprep.subr.bf16.mxu0 %v9217_v33 }
 0x8a0   : > { %7669 = vmatpush1.bf16.msra.mxu1 %v10401_v34 }
 0x8a1   : > { %7670 = vmatprep.subr.bf16.mxu1 %v10406_v23  ;;  %7628 = vmatpush2.bf16.msra.mxu0 %v9216_v37 }
 0x8a2   : > { %7629 = vmatprep.subr.bf16.mxu0 %v9211_v3 }
 0x8a4   : > { %7671 = vmatpush2.bf16.msra.mxu1 %v10404_v38 }
 0x8a5   : > { %7672 = vmatprep.subr.bf16.mxu1 %v10409_v57  ;;  %7630 = vmatpush2.bf16.msra.mxu0 %v9210_v19 }
 0x8a6   : > { %7631 = vmatprep.subr.bf16.mxu0 %v10412_v50 }
 0x8a8   : > { %7673 = vmatpush2.bf16.msra.mxu1 %v10407_v53  ;;  %v6468_v53 = vrot.slane %v6447_v17, %v12435_v27 }
 0x8a9   : > { %7674 = vmatprep.subr.bf16.mxu1 %v9301_v43  ;;  %7632 = vmatpush2.bf16.msra.mxu0 %v10410_v45 }
 0x8aa   : > { %7633 = vmatprep.subr.bf16.mxu0 %v10415_v56 }
 0x8ac   : > { %7675 = vmatpush2.bf16.msra.mxu1 %v9300_v51 }
 0x8ad   : > { %7676 = vmatprep.subr.bf16.mxu1 %v10418_v54  ;;  %7634 = vmatpush2.bf16.msra.mxu0 %v10413_v60  ;;  %v6472_v60 = vrot.slane %v6447_v17, %v12438_v28 }
 0x8ae   : > { %7635 = vmatprep.subr.bf16.mxu0 %v10421_v61 }
 0x8b0   : > { %7677 = vmatpush2.bf16.msra.mxu1 %v10416_v63 }
 0x8b1   : > { %7678 = vmatprep.subr.bf16.mxu1 %v10424_v0  ;;  %7636 = vmatpush2.bf16.msra.mxu0 %v10419_v58 }
 0x8b2   : > { %7637 = vmatprep.subr.bf16.mxu0 %v10427_v1 }
 0x8b4   : > { %7679 = vmatpush2.bf16.msra.mxu1 %v10422_v2 }
 0x8b5   : > { %7680 = vmatprep.subr.bf16.mxu1 %v10430_v4  ;;  %7638 = vmatpush2.bf16.msra.mxu0 %v10425_v5 }
 0x8b6   : > { %7639 = vmatprep.subr.bf16.mxu0 %v10433_v6 }
 0x8b8   : > { %7681 = vmatpush2.bf16.msra.mxu1 %v10428_v7 }
 0x8b9   : > { %7682 = vmatprep.subr.bf16.mxu1 %v10436_v9  ;;  %7640 = vmatpush2.bf16.msra.mxu0 %v10431_v11 }
 0x8ba   : > { %7641 = vmatprep.subr.bf16.mxu0 %v9175_v48 }
 0x8bc   : > { %7683 = vmatpush2.bf16.msra.mxu1 %v10434_v12 }
 0x8bd   : > { %7684 = vmatprep.subr.bf16.mxu1 %v10439_v29  ;;  %7642 = vmatpush2.bf16.msra.mxu0 %v9174_v13 }
 0x8c0   : > { %7685 = vmatpush2.bf16.msra.mxu1 %v10437_v15  ;;  %7644 = vmatmul.mubr.bf16.vlgmr.msra.gmra.mxu0 %v12526_v55  ;;  %v6460_v55 = vrot.slane %v6447_v17, %v12429_v24 }
 0x8c3   : > { %7687 = vmatmul.mubr.bf16.vlgmr.msra.gmra.mxu1 %v12532_v39 }
 0x900   : > { %v7473_v16 = vpop.f32.mrf.mxu0 }
 0x901   : > { %v7474_v39 = vadd.f32 %v7473_v16, %v6452_v14 }
 0x902   : > { %v7475_v44 = vpop.f32.mrf.mxu0 }
 0x903   : > { %v7516_v40 = vpop.f32.mrf.mxu1  ;;  %v7476_v42 = vadd.f32 %v7475_v44, %v6456_v18 }
 0x904   : > { %v7477_v47 = vpop.f32.mrf.mxu0  ;;  %v7517_v33 = vadd.f32 %v7516_v40, %v7474_v39 }
 0x905   : > { %v7518_v49 = vpop.f32.mrf.mxu1  ;;  %v7478_v38 = vadd.f32 %v7477_v47, %v6452_v14 }
 0x906   : > { %v7479_v52 = vpop.f32.mrf.mxu0  ;;  %v7519_v34 = vadd.f32 %v7518_v49, %v7476_v42 }
 0x907   : > { %v7520_v20 = vpop.f32.mrf.mxu1  ;;  %v7480_v23 = vadd.f32 %v7479_v52, %v6456_v18 }
 0x908   : > { %v7697_v19 = vadd.f32 %v7519_v34, %v7517_v33  ;;  %v7521_v56 = vadd.f32 %v7520_v20, %v7478_v38 }
 0x909   : > { %v7522_v59 = vpop.f32.mrf.mxu1 }
 0x90a   : > { %v7523_v50 = vadd.f32 %v7522_v59, %v7480_v23 }
 0x90c   : > { %v7704_v0 = vadd.f32 %v7523_v50, %v7521_v56 }
 0x940   : > { %v7559_v21 = vpop.f32.mrf.mxu0 }
 0x941   : > { %v7560_v31 = vadd.f32 %v7559_v21, %v6460_v55 }
 0x942   : > { %v7561_v30 = vpop.f32.mrf.mxu0 }
 0x943   : > { %v7602_v22 = vpop.f32.mrf.mxu1  ;;  %v7562_v3 = vadd.f32 %v7561_v30, %v6464_v32 }
 0x944   : > { %v7563_v36 = vpop.f32.mrf.mxu0  ;;  %v7603_v37 = vadd.f32 %v7602_v22, %v7560_v31 }
 0x945   : > { %v7604_v35 = vpop.f32.mrf.mxu1  ;;  %v7564_v57 = vadd.f32 %v7563_v36, %v6460_v55 }
 0x946   : > { %v7565_v46 = vpop.f32.mrf.mxu0  ;;  %v7698_v43 = vadd.f32 %v7697_v19, %v7603_v37  ;;  %v7605_v45 = vadd.f32 %v7604_v35, %v7562_v3 }
 0x947   : > { %v7606_v41 = vpop.f32.mrf.mxu1  ;;  %v7566_v54 = vadd.f32 %v7565_v46, %v6464_v32 }
 0x948   : > { %v7607_v51 = vadd.f32 %v7606_v41, %v7564_v57  ;;  %v7699_v1 = vadd.f32 %v7698_v43, %v7605_v45 }
 0x949   : > { %v7608_v61 = vpop.f32.mrf.mxu1 }
 0x94a   : > { %v7705_v5 = vadd.f32 %v7704_v0, %v7607_v51  ;;  %v7609_v6 = vadd.f32 %v7608_v61, %v7566_v54 }
 0x94c   : > { %v7706_v15 = vadd.f32 %v7705_v5, %v7609_v6 }
 0x980   : > { %v7645_v63 = vpop.f32.mrf.mxu0 }
 0x981   : > { %v7646_v58 = vadd.f32 %v7645_v63, %v6468_v53 }
 0x982   : > { %v7647_v4 = vpop.f32.mrf.mxu0 }
 0x983   : > { %v7688_v2 = vpop.f32.mrf.mxu1  ;;  %v7648_v8 = vadd.f32 %v7647_v4, %v6472_v60 }
 0x984   : > { %v7689_v7 = vadd.f32 %v7688_v2, %v7646_v58  ;;  %v7649_v9 = vpop.f32.mrf.mxu0 }
 0x985   : > { %v7690_v26 = vpop.f32.mrf.mxu1  ;;  %v7650_v48 = vadd.f32 %v7649_v9, %v6468_v53  ;;  %v7770_v9 = vld [vmem:[%s12669_s15] sm:$0x3f] }
 0x986   : > { %v7691_v11 = vadd.f32 %v7690_v26, %v7648_v8  ;;  %v7700_v12 = vadd.f32 %v7699_v1, %v7689_v7  ;;  %v7651_v13 = vpop.f32.mrf.mxu0 }
 0x987   : > { %v7692_v29 = vpop.f32.mrf.mxu1  ;;  %v7652_v40 = vadd.f32 %v7651_v13, %v6472_v60  ;;  %v7787_v13 = vrot.slane %v7770_v9, %v12432_v25 }
 0x988   : > { %v7693_v16 = vadd.f32 %v7692_v29, %v7650_v48  ;;  %v7701_v44 = vadd.f32 %v7700_v12, %v7691_v11  ;;  %v7775_v48 = vrot.slane %v7770_v9, %v12252_v62  ;;  %v7779_v12 = vrot.slane %v7770_v9, %v12272_v10 }
 0x989   : > { %v7694_v49 = vpop.f32.mrf.mxu1  ;;  %v7783_v29 = vrot.slane %v7770_v9, %v12429_v24 }
 0x98a   : > { %v7707_v47 = vadd.f32 %v7706_v15, %v7693_v16  ;;  %v7695_v17 = vadd.f32 %v7694_v49, %v7652_v40  ;;  %7702 = vadd.xlane.f32.xlu0 %v7701_v44  ;;  %v7791_v15 = vrot.slane %v7770_v9, %v12435_v27 }
 0x98c   : > { %v7708_v20 = vadd.f32 %v7707_v47, %v7695_v17 }
 0x98e   : > { %7709 = vadd.xlane.f32.xlu0 %v7708_v20 }
 0xa13   : > { %v7703_v52 = vpop.xlane.xlu0 %7702 }
 0xa14   : > { %v7712_v14 = vmul.f32 0.0013020834, %v7703_v52 }
 0xa16   : > { %v7714_v18 = vsub.f32 %v7517_v33, %v7712_v14  ;;  %v7715_v21 = vsub.f32 %v7519_v34, %v7712_v14  ;;  %v7716_v59 = vsub.f32 %v7603_v37, %v7712_v14  ;;  %v7717_v39 = vsub.f32 %v7605_v45, %v7712_v14 }
 0xa17   : > { %v7710_v55 = vpop.xlane.xlu0 %7709  ;;  %v7718_v31 = vsub.f32 %v7689_v7, %v7712_v14  ;;  %v7719_v38 = vsub.f32 %v7691_v11, %v7712_v14  ;;  %v7814_v11 = vld [vmem:[%s12670_s22] sm:$0x3f] }
 0xa18   : > { %v7713_v42 = vmul.f32 0.0013020834, %v7710_v55  ;;  %v7726_v22 = vmul.f32 %v7714_v18, %v7714_v18  ;;  %v7727_v30 = vmul.f32 %v7715_v21, %v7715_v21  ;;  %v7728_v32 = vmul.f32 %v7716_v59, %v7716_v59 }
 0xa19   : > { %v7729_v57 = vmul.f32 %v7717_v39, %v7717_v39  ;;  %v7730_v41 = vmul.f32 %v7718_v31, %v7718_v31  ;;  %v7731_v45 = vmul.f32 %v7719_v38, %v7719_v38  ;;  %v7819_v44 = vrot.slane %v7814_v11, %v12252_v62 }
 0xa1a   : > { %v7738_v35 = vadd.f32 %v7727_v30, %v7726_v22  ;;  %v12553_v36 = vsub.f32 %v7521_v56, %v7713_v42  ;;  %v12555_v23 = vsub.f32 %v7523_v50, %v7713_v42  ;;  %v12557_v3 = vsub.f32 %v7607_v51, %v7713_v42 }
 0xa1b   : > { %v12559_v33 = vsub.f32 %v7609_v6, %v7713_v42  ;;  %v7724_v53 = vsub.f32 %v7693_v16, %v7713_v42  ;;  %v7725_v51 = vsub.f32 %v7695_v17, %v7713_v42  ;;  %v7795_v16 = vrot.slane %v7770_v9, %v12438_v28 }
 0xa1c   : > { %v7739_v19 = vadd.f32 %v7738_v35, %v7728_v32  ;;  %v7732_v34 = vmul.f32 %v12553_v36, %v12553_v36  ;;  %v7733_v37 = vmul.f32 %v12555_v23, %v12555_v23  ;;  %v7734_v50 = vmul.f32 %v12557_v3, %v12557_v3 }
 0xa1d   : > { %v7735_v54 = vmul.f32 %v12559_v33, %v12559_v33  ;;  %v7736_v63 = vmul.f32 %v7724_v53, %v7724_v53  ;;  %v7737_v58 = vmul.f32 %v7725_v51, %v7725_v51  ;;  %v7823_v49 = vrot.slane %v7814_v11, %v12272_v10 }
 0xa1e   : > { %v7740_v46 = vadd.f32 %v7739_v19, %v7729_v57  ;;  %v7745_v43 = vadd.f32 %v7733_v37, %v7732_v34  ;;  %v7827_v47 = vrot.slane %v7814_v11, %v12429_v24  ;;  %v7831_v17 = vrot.slane %v7814_v11, %v12432_v25 }
 0xa1f   : > { %v7835_v42 = vrot.slane %v7814_v11, %v12435_v27  ;;  %v7839_v22 = vrot.slane %v7814_v11, %v12438_v28 }
 0xa20   : > { %v7741_v56 = vadd.f32 %v7740_v46, %v7730_v41  ;;  %v7746_v60 = vadd.f32 %v7745_v43, %v7734_v50 }
 0xa22   : > { %v7742_v61 = vadd.f32 %v7741_v56, %v7731_v45  ;;  %v7747_v0 = vadd.f32 %v7746_v60, %v7735_v54 }
 0xa24   : > { %7743 = vadd.xlane.f32.xlu1 %v7742_v61  ;;  %v7748_v1 = vadd.f32 %v7747_v0, %v7736_v63 }
 0xa26   : > { %v7749_v2 = vadd.f32 %v7748_v1, %v7737_v58 }
 0xa28   : > { %7750 = vadd.xlane.f32.xlu1 %v7749_v2 }
 0xaad   : > { %v7744_v4 = vpop.xlane.xlu1 %7743 }
 0xaae   : > { %v7752_v5 = vmul.f32 0.0013020834, %v7744_v4 }
 0xab0   : > { %v7754_v6 = vadd.f32 1e-05, %v7752_v5 }
 0xab1   : > { %v7751_v7 = vpop.xlane.xlu1 %7750 }
 0xab2   : > { %10440 = vrsqrt.f32 %v7754_v6  ;;  %v7753_v8 = vmul.f32 0.0013020834, %v7751_v7 }
 0xab4   : > { %v7755_v26 = vadd.f32 1e-05, %v7753_v8 }
 0xab6   : > { %10442 = vrsqrt.f32 %v7755_v26 }
 0xabf   : > { %v10441_v40 = vpop.eup %10440 }
 0xac0   : > { %v7758_v20 = vmul.f32 %v10441_v40, %v7714_v18  ;;  %v7759_v52 = vmul.f32 %v10441_v40, %v7715_v21  ;;  %v7760_v14 = vmul.f32 %v10441_v40, %v7716_v59  ;;  %v7761_v55 = vmul.f32 %v10441_v40, %v7717_v39 }
 0xac1   : > { %v7762_v30 = vmul.f32 %v10441_v40, %v7718_v31  ;;  %v7763_v32 = vmul.f32 %v10441_v40, %v7719_v38 }
 0xac2   : > { %v7802_v35 = vmul.f32 %v7775_v48, %v7758_v20  ;;  %v7803_v57 = vmul.f32 %v7779_v12, %v7759_v52  ;;  %v7804_v19 = vmul.f32 %v7783_v29, %v7760_v14  ;;  %v7805_v62 = vmul.f32 %v7787_v13, %v7761_v55 }
 0xac3   : > { %v10443_v34 = vpop.eup %10442  ;;  %v7806_v10 = vmul.f32 %v7791_v15, %v7762_v30  ;;  %v7807_v37 = vmul.f32 %v7795_v16, %v7763_v32 }
 0xac4   : > { %v12587_v24 = vadd.f32 %v7819_v44, %v7802_v35  ;;  %v7847_v25 = vadd.f32 %v7823_v49, %v7803_v57  ;;  %v12589_v18 = vadd.f32 %v7827_v47, %v7804_v19  ;;  %v7849_v21 = vadd.f32 %v7831_v17, %v7805_v62 }
 0xac5   : > { %v12591_v59 = vadd.f32 %v7835_v42, %v7806_v10  ;;  %v12593_v27 = vadd.f32 %v7839_v22, %v7807_v37  ;;  %v7764_v28 = vmul.f32 %v10443_v34, %v12553_v36  ;;  %v7765_v39 = vmul.f32 %v10443_v34, %v12555_v23 }
 0xac6   : > { %v7766_v31 = vmul.f32 %v10443_v34, %v12557_v3  ;;  %v7767_v38 = vmul.f32 %v10443_v34, %v12559_v33  ;;  %v7768_v41 = vmul.f32 %v10443_v34, %v7724_v53  ;;  %v7769_v46 = vmul.f32 %v10443_v34, %v7725_v51 }
 0xac7   : > { %v7808_v50 = vmul.f32 %v7775_v48, %v7764_v28  ;;  %v7809_v43 = vmul.f32 %v7779_v12, %v7765_v39 }
 0xac8   : > { %v7810_v45 = vmul.f32 %v7783_v29, %v7766_v31  ;;  %v7811_v56 = vmul.f32 %v7787_v13, %v7767_v38  ;;  %v7812_v54 = vmul.f32 %v7791_v15, %v7768_v41  ;;  %v7813_v60 = vmul.f32 %v7795_v16, %v7769_v46 }
 0xac9   : > { %v12599_v61 = vadd.f32 %v7819_v44, %v7808_v50  ;;  %v7853_v63 = vadd.f32 %v7823_v49, %v7809_v43 }
 0xaca   : > { %v12601_v0 = vadd.f32 %v7827_v47, %v7810_v45  ;;  %v7855_v36 = vadd.f32 %v7831_v17, %v7811_v56  ;;  %v12603_v58 = vadd.f32 %v7835_v42, %v7812_v54  ;;  %v12605_v23 = vadd.f32 %v7839_v22, %v7813_v60 }
 0xacb   : > { %10500 = dma.done.wait [#allocation6 + $0x2], 6144 }
 0xacc   : > { %10501 = vsyncadd [#allocation6 + $0x2], 4294961152  ;;  %v7863_v3 = vpack.c.bf16 %v7853_v63, %v7847_v25  ;;  %v7865_v33 = vpack.c.bf16 %v7855_v36, %v7849_v21  ;;  %v10444_v53 = vld [vmem:[#allocation5 + $0x78] sm:$0xff]   ;;  %v10448_v4 = vld [vmem:[#allocation5 + $0x70] sm:$0xff]   ;;  %v7862_v35 = vpack.c.bf16 %v12599_v61, %v12587_v24  ;;  %v7867_v19 = vpack.c.bf16 %v12605_v23, %v12593_v27  ;;  %s12671_s25 = sld [smem:[#allocation21_spill]] }
 0xacd   : > { %v10445_v51 = vld [vmem:[#allocation5 + $0x38] sm:$0xff]   ;;  %9368 = vmatprep.subr.bf16.mxu0 %v10444_v53  ;;  %v10449_v5 = vld [vmem:[#allocation5 + $0x30] sm:$0xff]   ;;  %v10452_v8 = vld [vmem:[#allocation5 + $0x68] sm:$0xff]   ;;  %v7864_v34 = vpack.c.bf16 %v12601_v0, %v12589_v18  ;;  %v7866_v45 = vpack.c.bf16 %v12603_v58, %v12591_v59  ;;  %s12672_s1 = sld [smem:[#allocation22_spill]] }
 0xace   : > { %8291 = vmatprep.mubr.bf16.mxu0 %v7863_v3  ;;  %8332 = vmatprep.mubr.bf16.mxu1 %v7865_v33  ;;  %v10446_v1 = vld [vmem:[#allocation5 + $0xf8] sm:$0xff]   ;;  %v10450_v6 = vld [vmem:[#allocation5 + $0xf0] sm:$0xff]   ;;  %v10453_v26 = vld [vmem:[#allocation5 + $0x28] sm:$0xff]  }
 0xacf   : > { %9369 = vmatpush3.bf16.msra.mxu0 %v10445_v51  ;;  %v10447_v2 = vld [vmem:[#allocation5 + $0xb8] sm:$0xff]   ;;  %9390 = vmatprep.subr.bf16.mxu1 %v10446_v1  ;;  %v10451_v7 = vld [vmem:[#allocation5 + $0xb0] sm:$0xff]   ;;  %v10454_v9 = vld [vmem:[#allocation5 + $0xe8] sm:$0xff]  }
 0xad0   : > { %9391 = vmatpush3.bf16.msra.mxu1 %v10447_v2  ;;  %9370 = vmatprep.subr.bf16.mxu0 %v10448_v4  ;;  %v10455_v11 = vld [vmem:[#allocation5 + $0xa8] sm:$0xff]   ;;  %v10456_v48 = vld [vmem:[#allocation5 + $0x60] sm:$0xff]   ;;  %v10460_v15 = vld [vmem:[#allocation5 + $0x58] sm:$0xff]  }
 0xad1   : > { %9392 = vmatprep.subr.bf16.mxu1 %v10450_v6  ;;  %v10457_v12 = vld [vmem:[#allocation5 + $0x20] sm:$0xff]   ;;  %v10461_v16 = vld [vmem:[#allocation5 + $0x18] sm:$0xff]   ;;  %v10464_v49 = vld [vmem:[#allocation5 + $0x50] sm:$0xff]  }
 0xad2   : > { %v10458_v29 = vld [vmem:[#allocation5 + $0xe0] sm:$0xff]   ;;  %v10462_v40 = vld [vmem:[#allocation5 + $0xd8] sm:$0xff]   ;;  %v10465_v47 = vld [vmem:[#allocation5 + $0x10] sm:$0xff]  }
 0xad3   : > { %9371 = vmatpush3.bf16.msra.mxu0 %v10449_v5  ;;  %v10459_v13 = vld [vmem:[#allocation5 + $0xa0] sm:$0xff]   ;;  %v10463_v44 = vld [vmem:[#allocation5 + $0x98] sm:$0xff]   ;;  %v10466_v17 = vld [vmem:[#allocation5 + $0xd0] sm:$0xff]  }
 0xad4   : > { %9393 = vmatpush3.bf16.msra.mxu1 %v10451_v7  ;;  %9372 = vmatprep.subr.bf16.mxu0 %v10452_v8  ;;  %v10467_v20 = vld [vmem:[#allocation5 + $0x90] sm:$0xff]   ;;  %v10468_v52 = vld [vmem:[#allocation5 + $0x48] sm:$0xff]   ;;  %v10472_v22 = vld [vmem:[#allocation5 + $0x40] sm:$0xff]  }
 0xad5   : > { %9394 = vmatprep.subr.bf16.mxu1 %v10454_v9  ;;  %v10469_v14 = vld [vmem:[#allocation5 + $0x8] sm:$0xff]   ;;  %v10473_v30 = vld [vmem:[#allocation5] sm:$0xff]   ;;  %v10476_v62 = vld [vmem:[#allocation5 + $0x178] sm:$0xff]  }
 0xad6   : > { %v10470_v55 = vld [vmem:[#allocation5 + $0xc8] sm:$0xff]   ;;  %v10474_v32 = vld [vmem:[#allocation5 + $0xc0] sm:$0xff]   ;;  %v10477_v10 = vld [vmem:[#allocation5 + $0x138] sm:$0xff]  }
 0xad7   : > { %9373 = vmatpush3.bf16.msra.mxu0 %v10453_v26  ;;  %v10471_v42 = vld [vmem:[#allocation5 + $0x88] sm:$0xff]   ;;  %v10475_v57 = vld [vmem:[#allocation5 + $0x80] sm:$0xff]   ;;  %v10478_v37 = vld [vmem:[#allocation5 + $0x170] sm:$0xff]  }
 0xad8   : > { %9395 = vmatpush3.bf16.msra.mxu1 %v10455_v11  ;;  %9374 = vmatprep.subr.bf16.mxu0 %v10456_v48  ;;  %v10479_v25 = vld [vmem:[#allocation5 + $0x130] sm:$0xff]   ;;  %v10480_v24 = vld [vmem:[#allocation5 + $0x168] sm:$0xff]   ;;  %v10482_v27 = vld [vmem:[#allocation5 + $0x160] sm:$0xff]  }
 0xad9   : > { %9396 = vmatprep.subr.bf16.mxu1 %v10458_v29  ;;  %v10481_v21 = vld [vmem:[#allocation5 + $0x128] sm:$0xff]   ;;  %v10483_v28 = vld [vmem:[#allocation5 + $0x120] sm:$0xff]   ;;  %v10484_v39 = vld [vmem:[#allocation5 + $0x158] sm:$0xff]  }
 0xada   : > { %v10485_v18 = vld [vmem:[#allocation5 + $0x118] sm:$0xff]   ;;  %v10486_v31 = vld [vmem:[#allocation5 + $0x150] sm:$0xff]   ;;  %v10488_v41 = vld [vmem:[#allocation5 + $0x148] sm:$0xff]  }
 0xadb   : > { %9375 = vmatpush3.bf16.msra.mxu0 %v10457_v12  ;;  %v10487_v38 = vld [vmem:[#allocation5 + $0x110] sm:$0xff]   ;;  %v10489_v46 = vld [vmem:[#allocation5 + $0x108] sm:$0xff]   ;;  %v10490_v50 = vld [vmem:[#allocation5 + $0x140] sm:$0xff]  }
 0xadc   : > { %9397 = vmatpush3.bf16.msra.mxu1 %v10459_v13  ;;  %9376 = vmatprep.subr.bf16.mxu0 %v10460_v15  ;;  %v10491_v43 = vld [vmem:[#allocation5 + $0x100] sm:$0xff]  }
 0xadd   : > { %9398 = vmatprep.subr.bf16.mxu1 %v10462_v40  ;;  %v9314_v36 = vld [vmem:[%s12671_s25] ss:$0 sm:$0xff] }
 0xadf   : > { %9377 = vmatpush3.bf16.msra.mxu0 %v10461_v16 }
 0xae0   : > { %9399 = vmatpush3.bf16.msra.mxu1 %v10463_v44  ;;  %9378 = vmatprep.subr.bf16.mxu0 %v10464_v49 }
 0xae1   : > { %9400 = vmatprep.subr.bf16.mxu1 %v10466_v17 }
 0xae3   : > { %9379 = vmatpush3.bf16.msra.mxu0 %v10465_v47 }
 0xae4   : > { %9401 = vmatpush3.bf16.msra.mxu1 %v10467_v20  ;;  %9380 = vmatprep.subr.bf16.mxu0 %v10468_v52 }
 0xae5   : > { %9402 = vmatprep.subr.bf16.mxu1 %v10470_v55 }
 0xae7   : > { %9381 = vmatpush3.bf16.msra.mxu0 %v10469_v14 }
 0xae8   : > { %9403 = vmatpush3.bf16.msra.mxu1 %v10471_v42  ;;  %9382 = vmatprep.subr.bf16.mxu0 %v10472_v22 }
 0xae9   : > { %9404 = vmatprep.subr.bf16.mxu1 %v10474_v32 }
 0xaeb   : > { %9383 = vmatpush3.bf16.msra.mxu0 %v10473_v30 }
 0xaec   : > { %9405 = vmatpush3.bf16.msra.mxu1 %v10475_v57  ;;  %9412 = vmatprep.subr.bf16.mxu0 %v10476_v62 }
 0xaee   : > { %8292 = vmatmul.mubr.bf16.vlgmr.msra.gmra.mxu0 %v7862_v35 }
 0xaef   : > { %9413 = vmatpush3.bf16.msra.mxu0 %v10477_v10  ;;  %8373 = vmatprep.mubr.bf16.mxu0 %v7867_v19 }
 0xaf0   : > { %8333 = vmatmul.mubr.bf16.vlgmr.msra.gmra.mxu1 %v7864_v34  ;;  %9414 = vmatprep.subr.bf16.mxu0 %v10478_v37 }
 0xaf3   : > { %9415 = vmatpush3.bf16.msra.mxu0 %v10479_v25 }
 0xaf4   : > { %9416 = vmatprep.subr.bf16.mxu0 %v10480_v24 }
 0xaf7   : > { %9417 = vmatpush3.bf16.msra.mxu0 %v10481_v21 }
 0xaf8   : > { %9418 = vmatprep.subr.bf16.mxu0 %v10482_v27 }
 0xafb   : > { %9419 = vmatpush3.bf16.msra.mxu0 %v10483_v28 }
 0xafc   : > { %9420 = vmatprep.subr.bf16.mxu0 %v10484_v39 }
 0xaff   : > { %9421 = vmatpush3.bf16.msra.mxu0 %v10485_v18 }
 0xb00   : > { %9422 = vmatprep.subr.bf16.mxu0 %v10486_v31 }
 0xb03   : > { %9423 = vmatpush3.bf16.msra.mxu0 %v10487_v38 }
 0xb04   : > { %9424 = vmatprep.subr.bf16.mxu0 %v10488_v41 }
 0xb07   : > { %9425 = vmatpush3.bf16.msra.mxu0 %v10489_v46 }
 0xb08   : > { %9426 = vmatprep.subr.bf16.mxu0 %v10490_v50 }
 0xb0b   : > { %9427 = vmatpush3.bf16.msra.mxu0 %v10491_v43 }
 0xb0e   : > { %8374 = vmatmul.mubr.bf16.vlgmr.msra.gmra.mxu0 %v7866_v45 }
 0xbae   : > { %v9384_v56 = vpop.f32.mrf.mxu0 }
 0xbb0   : > { %v9385_v54 = vpop.f32.mrf.mxu0  ;;  %v9406_v60 = vpop.f32.mrf.mxu1 }
 0xbb1   : > { %v9386_v0 = vadd.f32 %v9385_v54, %v9384_v56 }
 0xbb2   : > { %v9387_v61 = vpop.f32.mrf.mxu0  ;;  %v9407_v63 = vpop.f32.mrf.mxu1 }
 0xbb3   : > { %v8294_v33 = vadd.f32 %v9386_v0, %v9314_v36  ;;  %v9408_v53 = vadd.f32 %v9407_v63, %v9406_v60 }
 0xbb4   : > { %v9388_v23 = vpop.f32.mrf.mxu0  ;;  %v9409_v3 = vpop.f32.mrf.mxu1 }
 0xbb5   : > { %v9389_v51 = vadd.f32 %v9388_v23, %v9387_v61  ;;  %v8335_v58 = vadd.f32 %v9408_v53, %v8294_v33 }
 0xbb6   : > { %v9410_v1 = vpop.f32.mrf.mxu1 }
 0xbb7   : > { %v8297_v4 = vadd.f32 %v9389_v51, %v9314_v36  ;;  %v9411_v5 = vadd.f32 %v9410_v1, %v9409_v3 }
 0xbb9   : > { %v8338_v9 = vadd.f32 %v9411_v5, %v8297_v4 }
 0xbce   : > { %v9428_v2 = vpop.f32.mrf.mxu0 }
 0xbd0   : > { %v9429_v59 = vpop.f32.mrf.mxu0 }
 0xbd1   : > { %v9430_v6 = vadd.f32 %v9429_v59, %v9428_v2 }
 0xbd2   : > { %v9431_v7 = vpop.f32.mrf.mxu0 }
 0xbd3   : > { %v8376_v8 = vadd.f32 %v9430_v6, %v8335_v58 }
 0xbd4   : > { %v9432_v26 = vpop.f32.mrf.mxu0 }
 0xbd5   : > { %8382 = vst [vmem:[%s12672_s1] sm:$0xff] %v8376_v8  ;;  %v9433_v11 = vadd.f32 %v9432_v26, %v9431_v7 }
 0xbd7   : > { %v8379_v48 = vadd.f32 %v9433_v11, %v8338_v9 }
 0xbd9   : > { %8383 = vst [vmem:[%s12672_s1 + $0x8] sm:$0xff] %v8379_v48 }
 0xbda PF: > { %s12673_s0 = sld [smem:[#allocation13_spill]] }
 0xbe0   : > { %s29_s0 = sadd.s32 1, %s12673_s0  }
 0xbe1   : > { %p26_p7 = scmp.ge.s32.totalorder %s29_s0, 6  }
 0xbe3   :  { %28 = sbr.rel (!%p26_p7) target bundleno = 10 (0xa), region = 276 }
 0xbe8   :  { %8395 = vsyncmov [#allocation6] }
 0xbeb   :  { %s8396_s13 = vpop.sfrf %8395 }
 0xbec   :  { %p9365_p8 = scmp.ne.s32.totalorder %s8396_s13, 0 }
 0xbee   :  { %8400 = shalt.err (%p9365_p8)  }
 0xbef   :  { %8402 = vsyncmov [#allocation6 + $0x1] }
 0xbf2   :  { %s8403_s14 = vpop.sfrf %8402 }
 0xbf3   :  { %p9366_p9 = scmp.ne.s32.totalorder %s8403_s14, 0 }
 0xbf5   :  { %8407 = shalt.err (%p9366_p9)  }
 0xbf6   :  { %8409 = vsyncmov [#allocation6 + $0x2] }
 0xbf9   :  { %s8410_s21 = vpop.sfrf %8409 }
 0xbfa   :  { %p9367_p10 = scmp.ne.s32.totalorder %s8410_s21, 0 }
 0xbfc   :  { %8414 = shalt.err (%p9367_p10)  }

</bundles_post_ra>
